<compile_context>
chip_gen: v7x
topology: tpu7x:2x2x1
jax: 0.10.0
libtpu: 0.0.40
codegen_flags: <defaults>
</compile_context>

<pallas_src>
import functools

import jax
import jax.numpy as jnp
from jax.experimental import pallas as pl
from jax.experimental.pallas import tpu as pltpu


_Z_RESIDENT_MAX_BYTES = 4 << 20  # keep Z fully VMEM-resident up to this size


def _round_up(x, m):
    return ((x + m - 1) // m) * m


def _vmem_capacity_bytes():
    """Physical VMEM per TensorCore (128 MiB v5e/v6e, 64 MiB v7x); conservative fallback."""
    try:
        info = pltpu.get_tpu_info()
        for attr in ("vmem_capacity_bytes", "vmem_size_bytes", "vmem_bytes"):
            v = getattr(info, attr, None)
            if v:
                return int(v)
    except Exception:
        pass
    return 64 << 20


def _choose_tiles(n_pad, f_out_max):
    """Largest (tm, tk) whose double-buffered working set fits the scoped VMEM budget."""
    cap = _vmem_capacity_bytes()
    scoped_limit = int(min(cap - (8 << 20), 100 << 20))
    budget = int(scoped_limit * 0.75)

    z_resident = n_pad * f_out_max * 2 <= _Z_RESIDENT_MAX_BYTES

    def est(tm, tk):
        a = tm * tk * 1 * 2                                        # int8 A, double-buffered
        z = (n_pad * f_out_max * 2 * 2) if z_resident else (tk * f_out_max * 2 * 2)
        o = tm * f_out_max * 4 * 2                                 # output block (worst-case f32)
        acc = tm * f_out_max * 4                                   # f32 scratch accumulator
        misc = (tm * 4 + f_out_max * 4) * 2 + (64 << 10)
        return a + z + o + acc + misc

    tm_cands = [t for t in (1024, 512, 256, 128) if n_pad % t == 0 and n_pad // t >= 2]
    tk_cands = [t for t in (2048, 1024, 512, 256, 128) if n_pad % t == 0]
    if not tm_cands:
        tm_cands = [128]
    if not tk_cands:
        tk_cands = [128]

    best = None
    for tm in tm_cands:
        for tk in tk_cands:
            if est(tm, tk) <= budget:
                if best is None or tm * tk > best[0] * best[1]:
                    best = (tm, tk)
    if best is None:
        best = (min(tm_cands), min(tk_cands))
    return best[0], best[1], scoped_limit


# ----------------------------------------------------------------------------
# Kernel 1: per-layer feature transform  Z = dinv * (H @ W)   (bf16 output)
# ----------------------------------------------------------------------------
def _z_kernel(x_ref, w_ref, dinv_ref, z_ref):
    xw = jnp.dot(x_ref[...], w_ref[...], preferred_element_type=jnp.float32)
    z_ref[...] = (xw * dinv_ref[...]).astype(jnp.bfloat16)


def gcn_transform(h, w, dinv2d):
    n_pad, f_in = h.shape
    f_out_raw = w.shape[1]
    f_out = _round_up(f_out_raw, 128)

    w_p = jnp.zeros((f_in, f_out), jnp.bfloat16)
    w_p = w_p.at[: w.shape[0], :f_out_raw].set(w.astype(jnp.bfloat16))

    tz = 512 if n_pad % 512 == 0 else 256
    grid = (n_pad // tz,)

    return pl.pallas_call(
        _z_kernel,
        out_shape=jax.ShapeDtypeStruct((n_pad, f_out), jnp.bfloat16),
        grid_spec=pltpu.PrefetchScalarGridSpec(
            num_scalar_prefetch=0,
            grid=grid,
            in_specs=[
                pl.BlockSpec((tz, f_in), lambda i: (i, 0)),
                pl.BlockSpec((f_in, f_out), lambda i: (0, 0)),
                pl.BlockSpec((tz, 1), lambda i: (i, 0)),
            ],
            out_specs=pl.BlockSpec((tz, f_out), lambda i: (i, 0)),
        ),
        compiler_params=pltpu.CompilerParams(dimension_semantics=("parallel",)),
    )(h, w_p, dinv2d)


# ----------------------------------------------------------------------------
# Kernel 2: aggregation  O_i = relu?(dinv_i * (sum_k A[i,k] @ Z_k) + b)
# Grid (n_pad//tm, n_pad//tk); k remapped through the prefetched non-empty-tile map.
# ----------------------------------------------------------------------------
def _agg_kernel(nnz_ref, kmap_ref, a_ref, z_ref, di_ref, b_ref, o_ref, acc_ref,
                *, relu, tk, z_resident, n_bk):
    i = pl.program_id(0)
    k = pl.program_id(1)

    @pl.when(k == 0)
    def _():
        acc_ref[...] = jnp.zeros_like(acc_ref)

    # Only the first nnz[i] steps correspond to non-empty adjacency tiles; trailing
    # steps have a clamped (duplicate) block index -> no new DMA, and no compute here.
    @pl.when(k < nnz_ref[i])
    def _():
        a = a_ref[...].astype(jnp.bfloat16)            # int8 0/1 -> bf16 (exact)
        if z_resident:
            kb = kmap_ref[i * n_bk + k]
            start = pl.multiple_of(kb * tk, tk)
            z = z_ref[pl.ds(start, tk), :]
        else:
            z = z_ref[...]
        acc_ref[...] += jnp.dot(a, z, preferred_element_type=jnp.float32)

    @pl.when(k == pl.num_programs(1) - 1)
    def _():
        out = acc_ref[...] * di_ref[...] + b_ref[...]
        if relu:
            out = jnp.maximum(out, 0.0)
        o_ref[...] = out.astype(o_ref.dtype)


def gcn_aggregate(adj_i8, z, dinv2d, b, nnz, kmap_flat, *,
                  tm, tk, relu, out_dtype, vmem_limit):
    n_pad = adj_i8.shape[0]
    f_out = z.shape[1]
    n_bk = n_pad // tk

    b_p = jnp.zeros((1, f_out), jnp.float32)
    b_p = b_p.at[0, : b.shape[0]].set(b.astype(jnp.float32))

    z_resident = n_pad * f_out * 2 <= _Z_RESIDENT_MAX_BYTES

    kernel = functools.partial(
        _agg_kernel, relu=relu, tk=tk, z_resident=z_resident, n_bk=n_bk
    )

    a_spec = pl.BlockSpec((tm, tk), lambda i, k, nnz_r, kmap_r: (i, kmap_r[i * n_bk + k]))
    if z_resident:
        # Constant index -> Z stays VMEM-resident across the whole grid (no refetch).
        z_spec = pl.BlockSpec((n_pad, f_out), lambda i, k, nnz_r, kmap_r: (0, 0))
    else:
        z_spec = pl.BlockSpec((tk, f_out),
                              lambda i, k, nnz_r, kmap_r: (kmap_r[i * n_bk + k], 0))

    return pl.pallas_call(
        kernel,
        out_shape=jax.ShapeDtypeStruct((n_pad, f_out), out_dtype),
        grid_spec=pltpu.PrefetchScalarGridSpec(
            num_scalar_prefetch=2,
            grid=(n_pad // tm, n_bk),
            in_specs=[
                a_spec,                                                      # adjacency (int8)
                z_spec,                                                      # transformed features
                pl.BlockSpec((tm, 1), lambda i, k, nnz_r, kmap_r: (i, 0)),   # dinv (dest rows)
                pl.BlockSpec((1, f_out), lambda i, k, nnz_r, kmap_r: (0, 0)),  # bias
            ],
            out_specs=pl.BlockSpec((tm, f_out), lambda i, k, nnz_r, kmap_r: (i, 0)),
            scratch_shapes=[pltpu.VMEM((tm, f_out), jnp.float32)],
        ),
        compiler_params=pltpu.CompilerParams(
            dimension_semantics=("parallel", "arbitrary"),
            vmem_limit_bytes=vmem_limit,
        ),
    )(nnz, kmap_flat, adj_i8, z, dinv2d, b_p)


# ----------------------------------------------------------------------------
# GCN model (forward only, inference semantics)
# ----------------------------------------------------------------------------
def glorot(key, fan_in, fan_out):
    limit = jnp.sqrt(6.0 / (fan_in + fan_out))
    return jax.random.uniform(
        key, (fan_in, fan_out), jnp.float32, minval=-limit, maxval=limit
    )


def init_gcn_params(key, in_channels, hidden_channels, out_channels, num_layers):
    dims = [in_channels] + [hidden_channels] * (num_layers - 1) + [out_channels]
    params = []
    for li in range(num_layers):
        key, sub = jax.random.split(key)
        w = glorot(sub, dims[li], dims[li + 1])
        b = jnp.zeros((dims[li + 1],), jnp.float32)
        params.append((w, b))
    return params


def gcn_forward(params, x, adj, dropout_p=0.5):
    """Mirrors GCN_mgae.forward(x, adj_t) in eval mode (dropout = identity)."""
    # TODO(synk): training-mode dropout mask not implemented (eval semantics only).
    N, f_in = x.shape
    n_pad = _round_up(max(N, 256), 256)
    f_in_pad = _round_up(f_in, 128)

    # Adjacency converted ONCE to int8 (0/1 exact) and reused by every layer.
    adj_i8 = jnp.zeros((n_pad, n_pad), jnp.int8).at[:N, :N].set(adj.astype(jnp.int8))

    h = jnp.zeros((n_pad, f_in_pad), jnp.bfloat16).at[:N, :f_in].set(
        x.astype(jnp.bfloat16)
    )

    # D^{-1/2}, add_self_loops=False; degree counts are exact in f32.
    deg = jnp.sum(adj_i8, axis=1, dtype=jnp.float32)
    dinv2d = jnp.where(deg > 0, jax.lax.rsqrt(deg), 0.0)[:, None].astype(jnp.float32)

    # Tiles chosen once (generation-aware) and shared across layers.
    f_out_max = max(_round_up(w.shape[1], 128) for (w, _) in params)
    tm, tk, vmem_limit = _choose_tiles(n_pad, f_out_max)
    n_bi, n_bk = n_pad // tm, n_pad // tk

    # Block-sparse schedule: per row block, the ascending list of non-empty k tiles,
    # clamped past nnz so the pipelined DMA index does not change (no extra traffic).
    occ = jnp.any(adj_i8.reshape(n_bi, tm, n_bk, tk) != 0, axis=(1, 3))
    nnz = jnp.sum(occ, axis=1).astype(jnp.int32)
    order = jnp.argsort(jnp.logical_not(occ), axis=1).astype(jnp.int32)
    last = jnp.where(
        nnz > 0, order[jnp.arange(n_bi), jnp.maximum(nnz - 1, 0)], 0
    ).astype(jnp.int32)
    pos = jnp.arange(n_bk, dtype=jnp.int32)[None, :]
    kmap_flat = jnp.where(pos < nnz[:, None], order, last[:, None]).astype(
        jnp.int32
    ).reshape(-1)

    n_layers = len(params)
    for li, (w, b) in enumerate(params):
        is_last = li == n_layers - 1
        z = gcn_transform(h, w, dinv2d)                    # bf16 (n_pad, f_out_pad)
        h = gcn_aggregate(
            adj_i8, z, dinv2d, b, nnz, kmap_flat,
            tm=tm, tk=tk, relu=not is_last,
            out_dtype=jnp.float32 if is_last else jnp.bfloat16,
            vmem_limit=vmem_limit,
        )
        # dropout(p, training=False) -> identity

    out_channels = params[-1][0].shape[1]
    return h[:N, :out_channels]


# ----------------------------------------------------------------------------
# Reference (plain JAX, f32) for sanity checking
# ----------------------------------------------------------------------------
def gcn_forward_ref(params, x, adj):
    deg = jnp.sum(adj, axis=1)
    dinv = jnp.where(deg > 0, jax.lax.rsqrt(deg), 0.0)
    a_norm = adj * dinv[:, None] * dinv[None, :]
    n_layers = len(params)
    for li, (w, b) in enumerate(params):
        x = a_norm @ (x @ w) + b[None, :]
        if li != n_layers - 1:
            x = jnp.maximum(x, 0.0)
    return x


if __name__ == "__main__":
    key = jax.random.PRNGKey(0)

    num_nodes = 600        # pads to 768 -> (3, 3) grid at (256, 256) tiles
    cluster = 350          # edges only among first 350 nodes -> some empty tiles (K-skip path)
    in_channels = 32
    hidden_channels = 64
    out_channels = 16
    num_layers = 3
    dropout = 0.5

    k_x, k_adj, k_p = jax.random.split(key, 3)
    x = jax.random.normal(k_x, (num_nodes, in_channels), jnp.float32)

    # random symmetric binary adjacency, no self loops, clustered in the first `cluster` nodes
    probs = jax.random.uniform(k_adj, (num_nodes, num_nodes))
    adj = (probs < 0.05).astype(jnp.float32)
    adj = jnp.maximum(adj, adj.T)
    adj = adj * (1.0 - jnp.eye(num_nodes, dtype=jnp.float32))
    mask = (jnp.arange(num_nodes) < cluster).astype(jnp.float32)
    adj = adj * mask[:, None] * mask[None, :]

    params = init_gcn_params(
        k_p, in_channels, hidden_channels, out_channels, num_layers
    )

    out = jax.jit(gcn_forward)(params, x, adj, dropout)
    out = jax.block_until_ready(out)

    ref = gcn_forward_ref(params, x, adj)
    assert out.shape == (num_nodes, out_channels)
    rel_err = jnp.linalg.norm(out - ref) / (jnp.linalg.norm(ref) + 1e-12)
    assert float(rel_err) < 2e-2, f"relative error too large: {float(rel_err)}"

    print("KERNEL_OK")
</pallas_src>

<mosaic_0001>
module attributes {stable_mosaic.version = 11 : i64} {
  func.func @_z_kernel(%arg0: i32, %arg1: memref<256x128xbf16, #tpu.memory_space<vmem>>, %arg2: memref<128x128xbf16, #tpu.memory_space<vmem>>, %arg3: memref<256x1xf32, #tpu.memory_space<vmem>>, %arg4: memref<256x128xbf16, #tpu.memory_space<vmem>>) attributes {dimension_semantics = [#tpu.dimension_semantics<parallel>], iteration_bounds = array<i64: 3>, scalar_prefetch = 0 : i64, scratch_operands = 0 : i64, tpu.core_type = #tpu.core_type<tc>, window_params = [{transform_indices = @transform_0, window_bounds = array<i64: 256, 128>}, {pipeline_mode = #tpu.pipeline_mode<synchronous>, transform_indices = @transform_1, window_bounds = array<i64: 128, 128>}, {transform_indices = @transform_2, window_bounds = array<i64: 256, 1>}, {transform_indices = @transform_3, window_bounds = array<i64: 256, 128>}]} {
    %c0 = arith.constant 0 : index
    %c0_0 = arith.constant 0 : index
    %0 = vector.load %arg1[%c0, %c0_0] : memref<256x128xbf16, #tpu.memory_space<vmem>>, vector<256x128xbf16>
    %c0_1 = arith.constant 0 : index
    %c0_2 = arith.constant 0 : index
    %1 = vector.load %arg2[%c0_1, %c0_2] : memref<128x128xbf16, #tpu.memory_space<vmem>>, vector<128x128xbf16>
    %cst = arith.constant dense<0.000000e+00> : vector<256x128xf32>
    %2 = tpu.matmul %0, %1, %cst {dimension_numbers = #tpu.dot_dimension_numbers<[1], [0], [0], [1], [0, 0, 1, 1], [], []>} : vector<256x128xbf16>, vector<128x128xbf16>, vector<256x128xf32> -> vector<256x128xf32>
    %c0_3 = arith.constant 0 : index
    %c0_4 = arith.constant 0 : index
    %3 = vector.load %arg3[%c0_3, %c0_4] : memref<256x1xf32, #tpu.memory_space<vmem>>, vector<256x1xf32>
    %4 = vector.broadcast %3 : vector<256x1xf32> to vector<256x128xf32>
    %5 = arith.mulf %2, %4 : vector<256x128xf32>
    %6 = arith.truncf %5 : vector<256x128xf32> to vector<256x128xbf16>
    %c0_5 = arith.constant 0 : index
    %c0_6 = arith.constant 0 : index
    %7 = vector.load %arg4[%c0_5, %c0_6] : memref<256x128xbf16, #tpu.memory_space<vmem>>, vector<256x128xbf16>
    tpu.vector_store %arg4[%c0_5, %c0_6], %6 {strides = array<i32>} : memref<256x128xbf16, #tpu.memory_space<vmem>>, vector<256x128xbf16>,
    return
  }
  func.func @transform_0(%arg0: i32) -> (i32, i32) {
    %c0_i32 = arith.constant 0 : i32
    %c0_i32_0 = arith.constant 0 : i32
    return %arg0, %c0_i32 : i32, i32
  }
  func.func @transform_1(%arg0: i32) -> (i32, i32) {
    %c0_i32 = arith.constant 0 : i32
    %c0_i32_0 = arith.constant 0 : i32
    %c0_i32_1 = arith.constant 0 : i32
    return %c0_i32, %c0_i32_0 : i32, i32
  }
  func.func @transform_2(%arg0: i32) -> (i32, i32) {
    %c0_i32 = arith.constant 0 : i32
    %c0_i32_0 = arith.constant 0 : i32
    return %arg0, %c0_i32 : i32, i32
  }
  func.func @transform_3(%arg0: i32) -> (i32, i32) {
    %c0_i32 = arith.constant 0 : i32
    %c0_i32_0 = arith.constant 0 : i32
    return %arg0, %c0_i32 : i32, i32
  }
}

module attributes {stable_mosaic.version = 11 : i64} {
  func.func @_agg_kernel(%arg0: i32, %arg1: i32, %arg2: memref<3xi32, #tpu.memory_space<smem>>, %arg3: memref<9xi32, #tpu.memory_space<smem>>, %arg4: memref<256x256xi8, #tpu.memory_space<vmem>>, %arg5: memref<768x128xbf16, #tpu.memory_space<vmem>>, %arg6: memref<256x1xf32, #tpu.memory_space<vmem>>, %arg7: memref<1x128xf32, #tpu.memory_space<vmem>>, %arg8: memref<256x128xbf16, #tpu.memory_space<vmem>>, %arg9: memref<256x128xf32, #tpu.memory_space<vmem>>) attributes {dimension_semantics = [#tpu.dimension_semantics<parallel>, #tpu.dimension_semantics<arbitrary>], iteration_bounds = array<i64: 3, 3>, scalar_prefetch = 2 : i64, scratch_operands = 1 : i64, tpu.core_type = #tpu.core_type<tc>, window_params = [{transform_indices = @transform_0, window_bounds = array<i64: 256, 256>}, {pipeline_mode = #tpu.pipeline_mode<synchronous>, transform_indices = @transform_1, window_bounds = array<i64: 768, 128>}, {transform_indices = @transform_2, window_bounds = array<i64: 256, 1>}, {pipeline_mode = #tpu.pipeline_mode<synchronous>, transform_indices = @transform_3, window_bounds = array<i64: 1, 128>}, {transform_indices = @transform_4, window_bounds = array<i64: 256, 128>}]} {
    %c0_i32 = arith.constant 0 : i32
    %0 = arith.cmpi eq, %arg1, %c0_i32 : i32
    %1 = arith.extui %0 : i1 to i32
    %c0_i32_0 = arith.constant 0 : i32
    %2 = arith.cmpi ne, %1, %c0_i32_0 : i32
    scf.if %2 {
      %cst = arith.constant 0.000000e+00 : f32
      %11 = vector.broadcast %cst : f32 to vector<256x128xf32>
      %c0 = arith.constant 0 : index
      %c0_3 = arith.constant 0 : index
      %12 = vector.load %arg9[%c0, %c0_3] : memref<256x128xf32, #tpu.memory_space<vmem>>, vector<256x128xf32>
      tpu.vector_store %arg9[%c0, %c0_3], %11 {strides = array<i32>} : memref<256x128xf32, #tpu.memory_space<vmem>>, vector<256x128xf32>,
    } else {
    }
    %3 = arith.index_cast %arg0 : i32 to index
    %4 = memref.load %arg2[%3] : memref<3xi32, #tpu.memory_space<smem>>
    %5 = arith.cmpi slt, %arg1, %4 : i32
    %6 = arith.extui %5 : i1 to i32
    %c0_i32_1 = arith.constant 0 : i32
    %7 = arith.cmpi ne, %6, %c0_i32_1 : i32
    scf.if %7 {
      %c0 = arith.constant 0 : index
      %c0_3 = arith.constant 0 : index
      %11 = vector.load %arg4[%c0, %c0_3] : memref<256x256xi8, #tpu.memory_space<vmem>>, vector<256x256xi8>
      %12 = arith.sitofp %11 : vector<256x256xi8> to vector<256x256xbf16>
      %c3_i32 = arith.constant 3 : i32
      %13 = arith.muli %arg0, %c3_i32 : i32
      %14 = arith.addi %13, %arg1 : i32
      %15 = arith.index_cast %14 : i32 to index
      %16 = memref.load %arg3[%15] : memref<9xi32, #tpu.memory_space<smem>>
      %c256_i32 = arith.constant 256 : i32
      %17 = arith.muli %16, %c256_i32 : i32
      %18 = tpu.assume_multiple %17, 256 : i32
      %19 = arith.index_cast %18 : i32 to index
      %c0_4 = arith.constant 0 : index
      %20 = vector.load %arg5[%19, %c0_4] : memref<768x128xbf16, #tpu.memory_space<vmem>>, vector<256x128xbf16>
      %c0_5 = arith.constant 0 : index
      %c0_6 = arith.constant 0 : index
      %21 = vector.load %arg9[%c0_5, %c0_6] : memref<256x128xf32, #tpu.memory_space<vmem>>, vector<256x128xf32>
      %cst = arith.constant dense<0.000000e+00> : vector<256x128xf32>
      %22 = tpu.matmul %12, %20, %cst {dimension_numbers = #tpu.dot_dimension_numbers<[1], [0], [0], [1], [0, 0, 1, 1], [], []>} : vector<256x256xbf16>, vector<256x128xbf16>, vector<256x128xf32> -> vector<256x128xf32>
      %23 = arith.addf %21, %22 : vector<256x128xf32>
      %c0_7 = arith.constant 0 : index
      %c0_8 = arith.constant 0 : index
      %24 = vector.load %arg9[%c0_7, %c0_8] : memref<256x128xf32, #tpu.memory_space<vmem>>, vector<256x128xf32>
      tpu.vector_store %arg9[%c0_7, %c0_8], %23 {strides = array<i32>} : memref<256x128xf32, #tpu.memory_space<vmem>>, vector<256x128xf32>,
    } else {
    }
    %c2_i32 = arith.constant 2 : i32
    %8 = arith.cmpi eq, %arg1, %c2_i32 : i32
    %9 = arith.extui %8 : i1 to i32
    %c0_i32_2 = arith.constant 0 : i32
    %10 = arith.cmpi ne, %9, %c0_i32_2 : i32
    scf.if %10 {
      %c0 = arith.constant 0 : index
      %c0_3 = arith.constant 0 : index
      %11 = vector.load %arg9[%c0, %c0_3] : memref<256x128xf32, #tpu.memory_space<vmem>>, vector<256x128xf32>
      %c0_4 = arith.constant 0 : index
      %c0_5 = arith.constant 0 : index
      %12 = vector.load %arg6[%c0_4, %c0_5] : memref<256x1xf32, #tpu.memory_space<vmem>>, vector<256x1xf32>
      %13 = vector.broadcast %12 : vector<256x1xf32> to vector<256x128xf32>
      %14 = arith.mulf %11, %13 : vector<256x128xf32>
      %c0_6 = arith.constant 0 : index
      %c0_7 = arith.constant 0 : index
      %15 = vector.load %arg7[%c0_6, %c0_7] : memref<1x128xf32, #tpu.memory_space<vmem>>, vector<1x128xf32>
      %16 = vector.broadcast %15 : vector<1x128xf32> to vector<256x128xf32>
      %17 = arith.addf %14, %16 : vector<256x128xf32>
      %cst = arith.constant 0.000000e+00 : f32
      %18 = vector.broadcast %cst : f32 to vector<256x128xf32>
      %19 = arith.maximumf %17, %18 : vector<256x128xf32>
      %20 = arith.truncf %19 : vector<256x128xf32> to vector<256x128xbf16>
      %c0_8 = arith.constant 0 : index
      %c0_9 = arith.constant 0 : index
      %21 = vector.load %arg8[%c0_8, %c0_9] : memref<256x128xbf16, #tpu.memory_space<vmem>>, vector<256x128xbf16>
      tpu.vector_store %arg8[%c0_8, %c0_9], %20 {strides = array<i32>} : memref<256x128xbf16, #tpu.memory_space<vmem>>, vector<256x128xbf16>,
    } else {
    }
    return
  }
  func.func @transform_0(%arg0: i32, %arg1: i32, %arg2: memref<3xi32, #tpu.memory_space<smem>>, %arg3: memref<9xi32, #tpu.memory_space<smem>>) -> (i32, i32) {
    %c3_i32 = arith.constant 3 : i32
    %0 = arith.muli %arg0, %c3_i32 : i32
    %1 = arith.addi %0, %arg1 : i32
    %2 = arith.index_cast %1 : i32 to index
    %3 = memref.load %arg3[%2] : memref<9xi32, #tpu.memory_space<smem>>
    %c0_i32 = arith.constant 0 : i32
    return %arg0, %3 : i32, i32
  }
  func.func @transform_1(%arg0: i32, %arg1: i32, %arg2: memref<3xi32, #tpu.memory_space<smem>>, %arg3: memref<9xi32, #tpu.memory_space<smem>>) -> (i32, i32) {
    %c0_i32 = arith.constant 0 : i32
    %c0_i32_0 = arith.constant 0 : i32
    %c0_i32_1 = arith.constant 0 : i32
    return %c0_i32, %c0_i32_0 : i32, i32
  }
  func.func @transform_2(%arg0: i32, %arg1: i32, %arg2: memref<3xi32, #tpu.memory_space<smem>>, %arg3: memref<9xi32, #tpu.memory_space<smem>>) -> (i32, i32) {
    %c0_i32 = arith.constant 0 : i32
    %c0_i32_0 = arith.constant 0 : i32
    return %arg0, %c0_i32 : i32, i32
  }
  func.func @transform_3(%arg0: i32, %arg1: i32, %arg2: memref<3xi32, #tpu.memory_space<smem>>, %arg3: memref<9xi32, #tpu.memory_space<smem>>) -> (i32, i32) {
    %c0_i32 = arith.constant 0 : i32
    %c0_i32_0 = arith.constant 0 : i32
    %c0_i32_1 = arith.constant 0 : i32
    return %c0_i32, %c0_i32_0 : i32, i32
  }
  func.func @transform_4(%arg0: i32, %arg1: i32, %arg2: memref<3xi32, #tpu.memory_space<smem>>, %arg3: memref<9xi32, #tpu.memory_space<smem>>) -> (i32, i32) {
    %c0_i32 = arith.constant 0 : i32
    %c0_i32_0 = arith.constant 0 : i32
    return %arg0, %c0_i32 : i32, i32
  }
}

module attributes {stable_mosaic.version = 11 : i64} {
  func.func @_agg_kernel(%arg0: i32, %arg1: i32, %arg2: memref<3xi32, #tpu.memory_space<smem>>, %arg3: memref<9xi32, #tpu.memory_space<smem>>, %arg4: memref<256x256xi8, #tpu.memory_space<vmem>>, %arg5: memref<768x128xbf16, #tpu.memory_space<vmem>>, %arg6: memref<256x1xf32, #tpu.memory_space<vmem>>, %arg7: memref<1x128xf32, #tpu.memory_space<vmem>>, %arg8: memref<256x128xf32, #tpu.memory_space<vmem>>, %arg9: memref<256x128xf32, #tpu.memory_space<vmem>>) attributes {dimension_semantics = [#tpu.dimension_semantics<parallel>, #tpu.dimension_semantics<arbitrary>], iteration_bounds = array<i64: 3, 3>, scalar_prefetch = 2 : i64, scratch_operands = 1 : i64, tpu.core_type = #tpu.core_type<tc>, window_params = [{transform_indices = @transform_0, window_bounds = array<i64: 256, 256>}, {pipeline_mode = #tpu.pipeline_mode<synchronous>, transform_indices = @transform_1, window_bounds = array<i64: 768, 128>}, {transform_indices = @transform_2, window_bounds = array<i64: 256, 1>}, {pipeline_mode = #tpu.pipeline_mode<synchronous>, transform_indices = @transform_3, window_bounds = array<i64: 1, 128>}, {transform_indices = @transform_4, window_bounds = array<i64: 256, 128>}]} {
    %c0_i32 = arith.constant 0 : i32
    %0 = arith.cmpi eq, %arg1, %c0_i32 : i32
    %1 = arith.extui %0 : i1 to i32
    %c0_i32_0 = arith.constant 0 : i32
    %2 = arith.cmpi ne, %1, %c0_i32_0 : i32
    scf.if %2 {
      %cst = arith.constant 0.000000e+00 : f32
      %11 = vector.broadcast %cst : f32 to vector<256x128xf32>
      %c0 = arith.constant 0 : index
      %c0_3 = arith.constant 0 : index
      %12 = vector.load %arg9[%c0, %c0_3] : memref<256x128xf32, #tpu.memory_space<vmem>>, vector<256x128xf32>
      tpu.vector_store %arg9[%c0, %c0_3], %11 {strides = array<i32>} : memref<256x128xf32, #tpu.memory_space<vmem>>, vector<256x128xf32>,
    } else {
    }
    %3 = arith.index_cast %arg0 : i32 to index
    %4 = memref.load %arg2[%3] : memref<3xi32, #tpu.memory_space<smem>>
    %5 = arith.cmpi slt, %arg1, %4 : i32
    %6 = arith.extui %5 : i1 to i32
    %c0_i32_1 = arith.constant 0 : i32
    %7 = arith.cmpi ne, %6, %c0_i32_1 : i32
    scf.if %7 {
      %c0 = arith.constant 0 : index
      %c0_3 = arith.constant 0 : index
      %11 = vector.load %arg4[%c0, %c0_3] : memref<256x256xi8, #tpu.memory_space<vmem>>, vector<256x256xi8>
      %12 = arith.sitofp %11 : vector<256x256xi8> to vector<256x256xbf16>
      %c3_i32 = arith.constant 3 : i32
      %13 = arith.muli %arg0, %c3_i32 : i32
      %14 = arith.addi %13, %arg1 : i32
      %15 = arith.index_cast %14 : i32 to index
      %16 = memref.load %arg3[%15] : memref<9xi32, #tpu.memory_space<smem>>
      %c256_i32 = arith.constant 256 : i32
      %17 = arith.muli %16, %c256_i32 : i32
      %18 = tpu.assume_multiple %17, 256 : i32
      %19 = arith.index_cast %18 : i32 to index
      %c0_4 = arith.constant 0 : index
      %20 = vector.load %arg5[%19, %c0_4] : memref<768x128xbf16, #tpu.memory_space<vmem>>, vector<256x128xbf16>
      %c0_5 = arith.constant 0 : index
      %c0_6 = arith.constant 0 : index
      %21 = vector.load %arg9[%c0_5, %c0_6] : memref<256x128xf32, #tpu.memory_space<vmem>>, vector<256x128xf32>
      %cst = arith.constant dense<0.000000e+00> : vector<256x128xf32>
      %22 = tpu.matmul %12, %20, %cst {dimension_numbers = #tpu.dot_dimension_numbers<[1], [0], [0], [1], [0, 0, 1, 1], [], []>} : vector<256x256xbf16>, vector<256x128xbf16>, vector<256x128xf32> -> vector<256x128xf32>
      %23 = arith.addf %21, %22 : vector<256x128xf32>
      %c0_7 = arith.constant 0 : index
      %c0_8 = arith.constant 0 : index
      %24 = vector.load %arg9[%c0_7, %c0_8] : memref<256x128xf32, #tpu.memory_space<vmem>>, vector<256x128xf32>
      tpu.vector_store %arg9[%c0_7, %c0_8], %23 {strides = array<i32>} : memref<256x128xf32, #tpu.memory_space<vmem>>, vector<256x128xf32>,
    } else {
    }
    %c2_i32 = arith.constant 2 : i32
    %8 = arith.cmpi eq, %arg1, %c2_i32 : i32
    %9 = arith.extui %8 : i1 to i32
    %c0_i32_2 = arith.constant 0 : i32
    %10 = arith.cmpi ne, %9, %c0_i32_2 : i32
    scf.if %10 {
      %c0 = arith.constant 0 : index
      %c0_3 = arith.constant 0 : index
      %11 = vector.load %arg9[%c0, %c0_3] : memref<256x128xf32, #tpu.memory_space<vmem>>, vector<256x128xf32>
      %c0_4 = arith.constant 0 : index
      %c0_5 = arith.constant 0 : index
      %12 = vector.load %arg6[%c0_4, %c0_5] : memref<256x1xf32, #tpu.memory_space<vmem>>, vector<256x1xf32>
      %13 = vector.broadcast %12 : vector<256x1xf32> to vector<256x128xf32>
      %14 = arith.mulf %11, %13 : vector<256x128xf32>
      %c0_6 = arith.constant 0 : index
      %c0_7 = arith.constant 0 : index
      %15 = vector.load %arg7[%c0_6, %c0_7] : memref<1x128xf32, #tpu.memory_space<vmem>>, vector<1x128xf32>
      %16 = vector.broadcast %15 : vector<1x128xf32> to vector<256x128xf32>
      %17 = arith.addf %14, %16 : vector<256x128xf32>
      %c0_8 = arith.constant 0 : index
      %c0_9 = arith.constant 0 : index
      %18 = vector.load %arg8[%c0_8, %c0_9] : memref<256x128xf32, #tpu.memory_space<vmem>>, vector<256x128xf32>
      tpu.vector_store %arg8[%c0_8, %c0_9], %17 {strides = array<i32>} : memref<256x128xf32, #tpu.memory_space<vmem>>, vector<256x128xf32>,
    } else {
    }
    return
  }
  func.func @transform_0(%arg0: i32, %arg1: i32, %arg2: memref<3xi32, #tpu.memory_space<smem>>, %arg3: memref<9xi32, #tpu.memory_space<smem>>) -> (i32, i32) {
    %c3_i32 = arith.constant 3 : i32
    %0 = arith.muli %arg0, %c3_i32 : i32
    %1 = arith.addi %0, %arg1 : i32
    %2 = arith.index_cast %1 : i32 to index
    %3 = memref.load %arg3[%2] : memref<9xi32, #tpu.memory_space<smem>>
    %c0_i32 = arith.constant 0 : i32
    return %arg0, %3 : i32, i32
  }
  func.func @transform_1(%arg0: i32, %arg1: i32, %arg2: memref<3xi32, #tpu.memory_space<smem>>, %arg3: memref<9xi32, #tpu.memory_space<smem>>) -> (i32, i32) {
    %c0_i32 = arith.constant 0 : i32
    %c0_i32_0 = arith.constant 0 : i32
    %c0_i32_1 = arith.constant 0 : i32
    return %c0_i32, %c0_i32_0 : i32, i32
  }
  func.func @transform_2(%arg0: i32, %arg1: i32, %arg2: memref<3xi32, #tpu.memory_space<smem>>, %arg3: memref<9xi32, #tpu.memory_space<smem>>) -> (i32, i32) {
    %c0_i32 = arith.constant 0 : i32
    %c0_i32_0 = arith.constant 0 : i32
    return %arg0, %c0_i32 : i32, i32
  }
  func.func @transform_3(%arg0: i32, %arg1: i32, %arg2: memref<3xi32, #tpu.memory_space<smem>>, %arg3: memref<9xi32, #tpu.memory_space<smem>>) -> (i32, i32) {
    %c0_i32 = arith.constant 0 : i32
    %c0_i32_0 = arith.constant 0 : i32
    %c0_i32_1 = arith.constant 0 : i32
    return %c0_i32, %c0_i32_0 : i32, i32
  }
  func.func @transform_4(%arg0: i32, %arg1: i32, %arg2: memref<3xi32, #tpu.memory_space<smem>>, %arg3: memref<9xi32, #tpu.memory_space<smem>>) -> (i32, i32) {
    %c0_i32 = arith.constant 0 : i32
    %c0_i32_0 = arith.constant 0 : i32
    return %arg0, %c0_i32 : i32, i32
  }
}

</mosaic_0001>

<bundles_post_ra>
// kernel: gcn_forward.6
= control target key start
LH: loop header
LB: loop body
LE: loop exit
PB: predicated region body
PF: predicated region fallthrough
CT: control target
= control target key end

     0   :  { %s1350_s12 = smov 0   ;;  %s1505_s0 = inlined_call_operand.vmem [shape: bf16[768,128], index: 0, kind: input, shape index: {}]   ;;  %s1506_s1 = inlined_call_operand.vmem [shape: bf16[128,128], index: 1, kind: input, shape index: {}]   ;;  %s1507_s2 = inlined_call_operand.vmem [shape: f32[768,1], index: 2, kind: input, shape index: {}]   ;;  %s1508_s3 = inlined_call_operand.vmem [shape: bf16[768,128], index: 3, kind: output, shape index: {}]  }
   0x1 LB: > { %s1002_s13 = sadd.s32 4294967295, %s1327_s12   ;;  %p1006_p0 = scmp.ge.s32.totalorder %s1327_s12, 1  ;;  %s1327_s12 = sphi %s1350_s12, %s13_s12  }
   0x2   : > { %p149_p1 = scmp.lt.s32.totalorder %s1327_s12, 4 }
   0x4   : > { %p150_p2 = pnand %p1006_p0, %p149_p1 }
   0x5   : > { %v1297_v0 = vld [vmem:[%s1506_s1] sm:$0xff] (!%p150_p2)   ;;  %v1298_v1 = vld [vmem:[%s1506_s1 + $0x8] sm:$0xff] (!%p150_p2)   ;;  %v1329_v2 = vmov (!%p150_p2), 0   ;;  %s1007_s18 = sshll.u32 (!%p150_p2), %s1002_s13, 5  ;;  %v1299_v3 = vld [vmem:[%s1506_s1 + $0x10] sm:$0xff] (!%p150_p2)  }
   0x6   : > { %153 = sbr.rel (%p150_p2) target bundleno = 283 (0x11b), region = 32  ;;  %1296 = vset.pattern.permute.xlu1 (!%p150_p2), %v1329_v2  ;;  %1295 = vset.pattern.permute.xlu0 (!%p150_p2), %v1329_v2  ;;  %p179_p3 = scmp.lt.s32.totalorder (!%p150_p2), %s1007_s18, 95  ;;  %v1300_v4 = vld [vmem:[%s1506_s1 + $0x18] sm:$0xff] (!%p150_p2)   ;;  %v1301_v11 = vld [vmem:[%s1506_s1 + $0x20] sm:$0xff] (!%p150_p2)   ;;  %v1302_v14 = vld [vmem:[%s1506_s1 + $0x28] sm:$0xff] (!%p150_p2)  }
   0x7   : > { %1222 = vmatprep.subr.bf16.mxu0 (!%p150_p2), %v1297_v0  ;;  %1270 = vmatprep.subr.bf16.mxu1 (!%p150_p2), %v1297_v0  ;;  %v1303_v17 = vld [vmem:[%s1506_s1 + $0x30] sm:$0xff] (!%p150_p2)   ;;  %v1304_v20 = vld [vmem:[%s1506_s1 + $0x38] sm:$0xff] (!%p150_p2)  }
   0x8   : > { %1223 = vmatpush3.bf16.msra.mxu0 (!%p150_p2), %v1297_v0  ;;  %1278 = vmatpush3.bf16.msra.mxu1 (!%p150_p2), %v1297_v0 }
   0x9   : > { %1224 = vmatprep.subr.bf16.mxu0 (!%p150_p2), %v1298_v1  ;;  %1271 = vmatprep.subr.bf16.mxu1 (!%p150_p2), %v1298_v1 }
   0xc   : > { %1225 = vmatpush3.bf16.msra.mxu0 (!%p150_p2), %v1298_v1  ;;  %1279 = vmatpush3.bf16.msra.mxu1 (!%p150_p2), %v1298_v1 }
   0xd   : > { %s1510_s18 = smov (!%p179_p3, %s1007_s18), 95  ;;  %1226 = vmatprep.subr.bf16.mxu0 %v1299_v3  ;;  %1272 = vmatprep.subr.bf16.mxu1 %v1299_v3 }
   0xe   : > { %s1010_s21 = sshll.u32 %s1510_s18, 3  ;;  %s1008_s25 = sshll.u32 %s1510_s18, 2 }
   0xf   : > { %s1373_s24 = scalar_lea.vmem %s1507_s2, %s1010_s21  ;;  %s1386_s30 = scalar_lea.vmem %s1505_s0, %s1008_s25 }
  0x10   : > { %v552_v5 = vld [vmem:[%s1373_s24 + $0x10] sm:$0xff]  ;;  %v550_v6 = vld [vmem:[%s1373_s24] sm:$0xff]  ;;  %v553_v7 = vld [vmem:[%s1373_s24 + $0x18] sm:$0xff]  ;;  %1227 = vmatpush3.bf16.msra.mxu0 %v1299_v3  ;;  %1280 = vmatpush3.bf16.msra.mxu1 %v1299_v3  ;;  %s1473_s15 = scalar_lea.vmem %s1508_s3, %s1008_s25 }
  0x11   : > { %594 = vperm.xlu1 %1296, %v552_v5   ;;  %584 = vperm.xlu0 %1295, %v550_v6   ;;  %v551_v8 = vld [vmem:[%s1373_s24 + $0x8] sm:$0xff]  ;;  %v1305_v9 = vld [vmem:[%s1386_s30] sm:$0xff]   ;;  %v557_v15 = vld [vmem:[%s1373_s24 + $0x38] sm:$0xff] }
  0x12   : > { %v1306_v10 = vld [vmem:[%s1386_s30 + $0x40] sm:$0xff]   ;;  %1228 = vmatprep.subr.bf16.mxu0 %v1300_v4  ;;  %1273 = vmatprep.subr.bf16.mxu1 %v1300_v4  ;;  %v555_v12 = vld [vmem:[%s1373_s24 + $0x28] sm:$0xff]  ;;  %v556_v16 = vld [vmem:[%s1373_s24 + $0x30] sm:$0xff] }
  0x13   : > { %v554_v13 = vld [vmem:[%s1373_s24 + $0x20] sm:$0xff]  ;;  %1238 = vmatprep.mubr.bf16.mxu0 %v1305_v9  ;;  %1254 = vmatprep.mubr.bf16.mxu1 %v1306_v10  ;;  %v559_v18 = vld [vmem:[%s1373_s24 + $0x48] sm:$0xff]  ;;  %v561_v21 = vld [vmem:[%s1373_s24 + $0x58] sm:$0xff] }
  0x14   : > { %1229 = vmatpush3.bf16.msra.mxu0 %v1300_v4  ;;  %1281 = vmatpush3.bf16.msra.mxu1 %v1300_v4  ;;  %v558_v19 = vld [vmem:[%s1373_s24 + $0x40] sm:$0xff]  ;;  %v560_v22 = vld [vmem:[%s1373_s24 + $0x50] sm:$0xff]  ;;  %v1307_v23 = vld [vmem:[%s1386_s30 + $0x8] sm:$0xff]  }
  0x15   : > { %599 = vperm.xlu1 %1296, %v553_v7   ;;  %589 = vperm.xlu0 %1295, %v551_v8   ;;  %v1308_v24 = vld [vmem:[%s1386_s30 + $0x48] sm:$0xff]   ;;  %v562_v26 = vld [vmem:[%s1373_s24 + $0x60] sm:$0xff]  ;;  %v1309_v27 = vld [vmem:[%s1386_s30 + $0x10] sm:$0xff]  }
  0x16   : > { %1230 = vmatprep.subr.bf16.mxu0 %v1301_v11  ;;  %1274 = vmatprep.subr.bf16.mxu1 %v1301_v11  ;;  %v563_v25 = vld [vmem:[%s1373_s24 + $0x68] sm:$0xff]  ;;  %v1310_v28 = vld [vmem:[%s1386_s30 + $0x50] sm:$0xff]   ;;  %v565_v29 = vld [vmem:[%s1373_s24 + $0x78] sm:$0xff] }
  0x17   : > { %v564_v30 = vld [vmem:[%s1373_s24 + $0x70] sm:$0xff]  ;;  %v1311_v31 = vld [vmem:[%s1386_s30 + $0x18] sm:$0xff]   ;;  %v567_v33 = vld [vmem:[%s1373_s24 + $0x88] sm:$0xff] }
  0x18   : > { %1231 = vmatpush3.bf16.msra.mxu0 %v1301_v11  ;;  %1282 = vmatpush3.bf16.msra.mxu1 %v1301_v11  ;;  %v1312_v32 = vld [vmem:[%s1386_s30 + $0x58] sm:$0xff]   ;;  %v566_v34 = vld [vmem:[%s1373_s24 + $0x80] sm:$0xff]  ;;  %v568_v38 = vld [vmem:[%s1373_s24 + $0x90] sm:$0xff] }
  0x19   : > { %609 = vperm.xlu1 %1296, %v555_v12   ;;  %604 = vperm.xlu0 %1295, %v554_v13   ;;  %v1313_v35 = vld [vmem:[%s1386_s30 + $0x20] sm:$0xff]   ;;  %v569_v37 = vld [vmem:[%s1373_s24 + $0x98] sm:$0xff]  ;;  %v1315_v39 = vld [vmem:[%s1386_s30 + $0x28] sm:$0xff]  }
  0x1a   : > { %1232 = vmatprep.subr.bf16.mxu0 %v1302_v14  ;;  %1275 = vmatprep.subr.bf16.mxu1 %v1302_v14  ;;  %v1314_v36 = vld [vmem:[%s1386_s30 + $0x60] sm:$0xff]   ;;  %v1316_v40 = vld [vmem:[%s1386_s30 + $0x68] sm:$0xff]   ;;  %v1317_v43 = vld [vmem:[%s1386_s30 + $0x30] sm:$0xff]  }
  0x1b   : > { %v571_v41 = vld [vmem:[%s1373_s24 + $0xa8] sm:$0xff]  ;;  %v570_v42 = vld [vmem:[%s1373_s24 + $0xa0] sm:$0xff]  ;;  %v1318_v44 = vld [vmem:[%s1386_s30 + $0x70] sm:$0xff]  }
  0x1c   : > { %1233 = vmatpush3.bf16.msra.mxu0 %v1302_v14  ;;  %1283 = vmatpush3.bf16.msra.mxu1 %v1302_v14  ;;  %v573_v45 = vld [vmem:[%s1373_s24 + $0xb8] sm:$0xff]  ;;  %v572_v46 = vld [vmem:[%s1373_s24 + $0xb0] sm:$0xff]  ;;  %v575_v49 = vld [vmem:[%s1373_s24 + $0xc8] sm:$0xff] }
  0x1d   : > { %619 = vperm.xlu1 %1296, %v557_v15   ;;  %614 = vperm.xlu0 %1295, %v556_v16   ;;  %v1319_v47 = vld [vmem:[%s1386_s30 + $0x38] sm:$0xff]   ;;  %v574_v50 = vld [vmem:[%s1373_s24 + $0xc0] sm:$0xff]  ;;  %v576_v52 = vld [vmem:[%s1373_s24 + $0xd0] sm:$0xff] }
  0x1e   : > { %1234 = vmatprep.subr.bf16.mxu0 %v1303_v17  ;;  %1276 = vmatprep.subr.bf16.mxu1 %v1303_v17  ;;  %v1320_v48 = vld [vmem:[%s1386_s30 + $0x78] sm:$0xff]   ;;  %v579_v53 = vld [vmem:[%s1373_s24 + $0xe8] sm:$0xff]  ;;  %v578_v54 = vld [vmem:[%s1373_s24 + $0xe0] sm:$0xff] }
  0x1f   : > { %v577_v51 = vld [vmem:[%s1373_s24 + $0xd8] sm:$0xff]  ;;  %v580_v56 = vld [vmem:[%s1373_s24 + $0xf0] sm:$0xff] }
  0x20   : > { %1235 = vmatpush3.bf16.msra.mxu0 %v1303_v17  ;;  %1284 = vmatpush3.bf16.msra.mxu1 %v1303_v17  ;;  %v581_v55 = vld [vmem:[%s1373_s24 + $0xf8] sm:$0xff] }
  0x21   : > { %629 = vperm.xlu1 %1296, %v559_v18   ;;  %624 = vperm.xlu0 %1295, %v558_v19  }
  0x22   : > { %1236 = vmatprep.subr.bf16.mxu0 %v1304_v20  ;;  %1277 = vmatprep.subr.bf16.mxu1 %v1304_v20 }
  0x24   : > { %1237 = vmatpush3.bf16.msra.mxu0 %v1304_v20  ;;  %1285 = vmatpush3.bf16.msra.mxu1 %v1304_v20 }
  0x25   : > { %639 = vperm.xlu1 %1296, %v561_v21   ;;  %634 = vperm.xlu0 %1295, %v560_v22  }
  0x27   : > { %1239 = vmatmul.mubr.bf16.vlgmr.msra.gmra.mrb[0].mxu0 %v1307_v23  ;;  %1255 = vmatmul.mubr.bf16.vlgmr.msra.gmra.mrb[0].mxu1 %v1308_v24 }
  0x28   : > { %1242 = vmatprep.mubr.bf16.mxu0 %v1309_v27  ;;  %1258 = vmatprep.mubr.bf16.mxu1 %v1310_v28 }
  0x29   : > { %649 = vperm.xlu1 %1296, %v563_v25   ;;  %644 = vperm.xlu0 %1295, %v562_v26  }
  0x2d   : > { %659 = vperm.xlu1 %1296, %v565_v29   ;;  %654 = vperm.xlu0 %1295, %v564_v30  }
  0x2f   : > { %1243 = vmatmul.mubr.bf16.gmra.mrb[4].mxu0 %v1311_v31  ;;  %1259 = vmatmul.mubr.bf16.gmra.mrb[4].mxu1 %v1312_v32 }
  0x30   : > { %1246 = vmatprep.mubr.bf16.mxu0 %v1313_v35  ;;  %1262 = vmatprep.mubr.bf16.mxu1 %v1314_v36 }
  0x31   : > { %669 = vperm.xlu1 %1296, %v567_v33   ;;  %664 = vperm.xlu0 %1295, %v566_v34  }
  0x35   : > { %679 = vperm.xlu1 %1296, %v569_v37   ;;  %674 = vperm.xlu0 %1295, %v568_v38  }
  0x37   : > { %1247 = vmatmul.mubr.bf16.gmra.mrb[8].mxu0 %v1315_v39  ;;  %1263 = vmatmul.mubr.bf16.gmra.mrb[8].mxu1 %v1316_v40 }
  0x38   : > { %1250 = vmatprep.mubr.bf16.mxu0 %v1317_v43  ;;  %1266 = vmatprep.mubr.bf16.mxu1 %v1318_v44 }
  0x39   : > { %689 = vperm.xlu1 %1296, %v571_v41   ;;  %684 = vperm.xlu0 %1295, %v570_v42  }
  0x3d   : > { %699 = vperm.xlu1 %1296, %v573_v45   ;;  %694 = vperm.xlu0 %1295, %v572_v46  }
  0x3f   : > { %1251 = vmatmul.mubr.bf16.gmra.mrb[12].mxu0 %v1319_v47  ;;  %1267 = vmatmul.mubr.bf16.gmra.mrb[12].mxu1 %v1320_v48 }
  0x41   : > { %709 = vperm.xlu1 %1296, %v575_v49   ;;  %704 = vperm.xlu0 %1295, %v574_v50  }
  0x45   : > { %719 = vperm.xlu1 %1296, %v577_v51   ;;  %714 = vperm.xlu0 %1295, %v576_v52  }
  0x49   : > { %729 = vperm.xlu1 %1296, %v579_v53   ;;  %724 = vperm.xlu0 %1295, %v578_v54  }
  0x4d   : > { %739 = vperm.xlu1 %1296, %v581_v55   ;;  %734 = vperm.xlu0 %1295, %v580_v56  }
  0x90   : > { %v595_v57 = vpop.permute.xlu1 %594  ;;  %v585_v58 = vpop.permute.xlu0 %584 }
  0x94   : > { %v600_v59 = vpop.permute.xlu1 %599  ;;  %v590_v60 = vpop.permute.xlu0 %589 }
  0x98   : > { %v1446_v61 = vpop.permute.xlu1 %609  ;;  %v605_v62 = vpop.permute.xlu0 %604 }
  0x9c   : > { %v620_v63 = vpop.permute.xlu1 %619  ;;  %v615_v0 = vpop.permute.xlu0 %614 }
  0xa0   : > { %v1448_v1 = vpop.permute.xlu1 %629  ;;  %v1450_v2 = vpop.permute.xlu0 %624 }
  0xa4   : > { %v1452_v3 = vpop.permute.xlu1 %639  ;;  %v1454_v4 = vpop.permute.xlu0 %634 }
  0xa8   : > { %v1456_v5 = vpop.permute.xlu1 %649  ;;  %v1458_v6 = vpop.permute.xlu0 %644 }
  0xac   : > { %v1460_v7 = vpop.permute.xlu1 %659  ;;  %v1462_v8 = vpop.permute.xlu0 %654 }
  0xb0   : > { %v670_v9 = vpop.permute.xlu1 %669  ;;  %v665_v10 = vpop.permute.xlu0 %664 }
  0xb4   : > { %v680_v11 = vpop.permute.xlu1 %679  ;;  %v675_v12 = vpop.permute.xlu0 %674 }
  0xb8   : > { %v690_v13 = vpop.permute.xlu1 %689  ;;  %v685_v14 = vpop.permute.xlu0 %684 }
  0xbc   : > { %v700_v15 = vpop.permute.xlu1 %699  ;;  %v695_v16 = vpop.permute.xlu0 %694 }
  0xc0   : > { %v1464_v17 = vpop.permute.xlu1 %709  ;;  %v1466_v18 = vpop.permute.xlu0 %704 }
  0xc4   : > { %v720_v39 = vpop.permute.xlu1 %719  ;;  %v715_v40 = vpop.permute.xlu0 %714 }
  0xfa   : > { %v1240_v19 = vpop.f32.mrb[0].mxu0  ;;  %v1256_v20 = vpop.f32.mrb[0].mxu1 }
  0xfb   : > { %v423_v21 = vpop.f32.mrb[1].mxu0  ;;  %v487_v22 = vpop.f32.mrb[1].mxu1  ;;  %v744_v25 = vmul.f32 %v1240_v19, %v595_v57  ;;  %v760_v26 = vmul.f32 %v1256_v20, %v675_v12 }
  0xfc   : > { %v1241_v23 = vpop.f32.mrb[2].mxu0  ;;  %v1257_v24 = vpop.f32.mrb[2].mxu1  ;;  %v742_v31 = vmul.f32 %v585_v58, %v423_v21  ;;  %v758_v32 = vmul.f32 %v665_v10, %v487_v22 }
  0xfd   : > { %v745_v27 = vmul.f32 %v1241_v23, %v600_v59  ;;  %v761_v28 = vmul.f32 %v1257_v24, %v680_v11  ;;  %v426_v29 = vpop.f32.mrb[3].mxu0  ;;  %v490_v30 = vpop.f32.mrb[3].mxu1 }
  0xfe   : > { %v743_v33 = vmul.f32 %v590_v60, %v426_v29  ;;  %v759_v34 = vmul.f32 %v670_v9, %v490_v30  ;;  %v730_v9 = vpop.permute.xlu1 %729 }
  0xff   : > { %v1111_v35 = vpack.c.bf16 %v745_v27, %v744_v25  ;;  %v1151_v36 = vpack.c.bf16 %v761_v28, %v760_v26 }
 0x100   : > { %v1106_v37 = vpack.c.bf16 %v743_v33, %v742_v31  ;;  %v1146_v38 = vpack.c.bf16 %v759_v34, %v758_v32 }
 0x101   : > { %1183 = vst [vmem:[%s1473_s15 + $0x8] sm:$0xff] %v1111_v35   ;;  %1191 = vst [vmem:[%s1473_s15 + $0x48] sm:$0xff] %v1151_v36  }
 0x102   : > { %1107 = vst [vmem:[%s1473_s15] sm:$0xff] %v1106_v37   ;;  %1190 = vst [vmem:[%s1473_s15 + $0x40] sm:$0xff] %v1146_v38   ;;  %v1244_v41 = vpop.f32.mrb[4].mxu0  ;;  %v1260_v42 = vpop.f32.mrb[4].mxu1 }
 0x103   : > { %v439_v43 = vpop.f32.mrb[5].mxu0  ;;  %v503_v44 = vpop.f32.mrb[5].mxu1  ;;  %v748_v47 = vmul.f32 %v1244_v41, %v615_v0  ;;  %v764_v48 = vmul.f32 %v1260_v42, %v695_v16 }
 0x104   : > { %v1245_v45 = vpop.f32.mrb[6].mxu0  ;;  %v1261_v46 = vpop.f32.mrb[6].mxu1  ;;  %v746_v53 = vmul.f32 %v605_v62, %v439_v43  ;;  %v762_v54 = vmul.f32 %v685_v14, %v503_v44 }
 0x105   : > { %v749_v49 = vmul.f32 %v1245_v45, %v620_v63  ;;  %v765_v50 = vmul.f32 %v1261_v46, %v700_v15  ;;  %v442_v51 = vpop.f32.mrb[7].mxu0  ;;  %v506_v52 = vpop.f32.mrb[7].mxu1 }
 0x106   : > { %v747_v55 = vmul.f32 %v1446_v61, %v442_v51  ;;  %v763_v56 = vmul.f32 %v690_v13, %v506_v52  ;;  %v725_v0 = vpop.permute.xlu0 %724  ;;  %v740_v28 = vpop.permute.xlu1 %739 }
 0x107   : > { %v1121_v57 = vpack.c.bf16 %v749_v49, %v748_v47  ;;  %v1161_v58 = vpack.c.bf16 %v765_v50, %v764_v48 }
 0x108   : > { %v1116_v59 = vpack.c.bf16 %v747_v55, %v746_v53  ;;  %v1156_v60 = vpack.c.bf16 %v763_v56, %v762_v54 }
 0x109   : > { %1185 = vst [vmem:[%s1473_s15 + $0x18] sm:$0xff] %v1121_v57   ;;  %1193 = vst [vmem:[%s1473_s15 + $0x58] sm:$0xff] %v1161_v58  }
 0x10a   : > { %1184 = vst [vmem:[%s1473_s15 + $0x10] sm:$0xff] %v1116_v59   ;;  %1192 = vst [vmem:[%s1473_s15 + $0x50] sm:$0xff] %v1156_v60   ;;  %v1248_v63 = vpop.f32.mrb[8].mxu0  ;;  %v1264_v10 = vpop.f32.mrb[8].mxu1 }
 0x10b   : > { %v455_v11 = vpop.f32.mrb[9].mxu0  ;;  %v519_v12 = vpop.f32.mrb[9].mxu1  ;;  %v752_v14 = vmul.f32 %v1248_v63, %v1454_v4  ;;  %v768_v61 = vmul.f32 %v1264_v10, %v715_v40 }
 0x10c   : > { %v1249_v15 = vpop.f32.mrb[10].mxu0  ;;  %v1265_v62 = vpop.f32.mrb[10].mxu1  ;;  %v750_v21 = vmul.f32 %v1450_v2, %v455_v11  ;;  %v766_v22 = vmul.f32 %v1466_v18, %v519_v12 }
 0x10d   : > { %v753_v13 = vmul.f32 %v1249_v15, %v1452_v3  ;;  %v769_v16 = vmul.f32 %v1265_v62, %v720_v39  ;;  %v458_v19 = vpop.f32.mrb[11].mxu0  ;;  %v522_v20 = vpop.f32.mrb[11].mxu1 }
 0x10e   : > { %v751_v23 = vmul.f32 %v1448_v1, %v458_v19  ;;  %v767_v24 = vmul.f32 %v1464_v17, %v522_v20  ;;  %v735_v29 = vpop.permute.xlu0 %734 }
 0x10f   : > { %v1131_v25 = vpack.c.bf16 %v753_v13, %v752_v14  ;;  %v1171_v4 = vpack.c.bf16 %v769_v16, %v768_v61 }
 0x110   : > { %v1126_v26 = vpack.c.bf16 %v751_v23, %v750_v21  ;;  %v1166_v27 = vpack.c.bf16 %v767_v24, %v766_v22 }
 0x111   : > { %1187 = vst [vmem:[%s1473_s15 + $0x28] sm:$0xff] %v1131_v25   ;;  %1195 = vst [vmem:[%s1473_s15 + $0x68] sm:$0xff] %v1171_v4  }
 0x112   : > { %1186 = vst [vmem:[%s1473_s15 + $0x20] sm:$0xff] %v1126_v26   ;;  %1194 = vst [vmem:[%s1473_s15 + $0x60] sm:$0xff] %v1166_v27   ;;  %v1252_v3 = vpop.f32.mrb[12].mxu0  ;;  %v1268_v30 = vpop.f32.mrb[12].mxu1 }
 0x113   : > { %v471_v31 = vpop.f32.mrb[13].mxu0  ;;  %v535_v2 = vpop.f32.mrb[13].mxu1  ;;  %v756_v1 = vmul.f32 %v1252_v3, %v1462_v8  ;;  %v772_v17 = vmul.f32 %v1268_v30, %v735_v29 }
 0x114   : > { %v1253_v32 = vpop.f32.mrb[14].mxu0  ;;  %v1269_v18 = vpop.f32.mrb[14].mxu1  ;;  %v754_v37 = vmul.f32 %v1458_v6, %v471_v31  ;;  %v770_v38 = vmul.f32 %v725_v0, %v535_v2 }
 0x115   : > { %v757_v33 = vmul.f32 %v1253_v32, %v1460_v7  ;;  %v773_v34 = vmul.f32 %v1269_v18, %v740_v28  ;;  %v474_v35 = vpop.f32.mrb[15].mxu0  ;;  %v538_v36 = vpop.f32.mrb[15].mxu1 }
 0x116   : > { %v755_v39 = vmul.f32 %v1456_v5, %v474_v35  ;;  %v771_v40 = vmul.f32 %v730_v9, %v538_v36 }
 0x117   : > { %v1141_v41 = vpack.c.bf16 %v757_v33, %v756_v1  ;;  %v1181_v42 = vpack.c.bf16 %v773_v34, %v772_v17 }
 0x118   : > { %v1136_v43 = vpack.c.bf16 %v755_v39, %v754_v37  ;;  %v1176_v44 = vpack.c.bf16 %v771_v40, %v770_v38 }
 0x119   : > { %1189 = vst [vmem:[%s1473_s15 + $0x38] sm:$0xff] %v1141_v41   ;;  %1197 = vst [vmem:[%s1473_s15 + $0x78] sm:$0xff] %v1181_v42  }
 0x11a   : > { %1188 = vst [vmem:[%s1473_s15 + $0x30] sm:$0xff] %v1136_v43   ;;  %1196 = vst [vmem:[%s1473_s15 + $0x70] sm:$0xff] %v1176_v44  }
 0x11b PF: > { %s13_s12 = sadd.s32 1, %s1327_s12  }
 0x11c   : > { %p10_p4 = scmp.ge.s32.totalorder %s13_s12, 5  }
 0x11e   :  { %12 = sbr.rel (!%p10_p4) target bundleno = 1 (0x1), region = 65 }

// kernel: gcn_forward.7
= control target key start
LH: loop header
LB: loop body
LE: loop exit
PB: predicated region body
PF: predicated region fallthrough
CT: control target
= control target key end

     0   :  { %s2169_s0 = inlined_call_operand.vmem [shape: s32[3], index: 0, kind: input, shape index: {}]   ;;  %s2170_s2 = inlined_call_operand.vmem [shape: s8[768,768], index: 2, kind: input, shape index: {}]   ;;  %s2171_s3 = inlined_call_operand.vmem [shape: bf16[768,128], index: 3, kind: input, shape index: {}]   ;;  %s2172_s4 = inlined_call_operand.vmem [shape: f32[768,1], index: 4, kind: input, shape index: {}]   ;;  %s2173_s5 = inlined_call_operand.vmem [shape: f32[1,128], index: 5, kind: input, shape index: {}]   ;;  %s2174_s6 = inlined_call_operand.vmem [shape: bf16[768,128], index: 6, kind: output, shape index: {}]   ;;  %s2175_s1 = inlined_call_operand.vmem [shape: s32[9], index: 1, kind: input, shape index: {}]  }
   0x1   :  { %s11_s23 = sshll.u32 %s2169_s0, 4  ;;  %s15_s26 = sshll.u32 %s2175_s1, 4  ;;  %s12_s23 = int_to_ptr.vmem [resolvable:$true] %s11_s23  ;;  %s16_s26 = int_to_ptr.vmem [resolvable:$true] %s15_s26 }
   0x2   :  { %s1784_s27 = scalar_lea.vmem %s12_s23, 16  ;;  %p1789_p1 = scmp.lt.s32.totalorder %s12_s23, %s12_s23 }
   0x3   :  { %p1785_p0 = scmp.ne.s32.totalorder %s12_s23, %s1784_s27  ;;  %p1790_p2 = scmp.lt.s32.totalorder %s1784_s27, %s1784_s27 }
   0x5   :  { %p1791_p3 = por %p1790_p2, %p1789_p1 }
   0x7   :  { %p1792_p4 = pnand %p1791_p3, %p1785_p0 }
   0x9   :  { %1795 = shalt.err (!%p1792_p4)  }
   0xa   :  { %s1866_s28 = smov [#allocation4]   ;;  %s1796_s29 = scalar_lea.vmem %s16_s26, 16 }
   0xb   :  { %14 = dma.vmem_to_smem %s12_s23, 16, %s1866_s28, [#allocation3] }
   0xc   :  { %p1797_p5 = scmp.ne.s32.totalorder %s16_s26, %s1796_s29  ;;  %p1801_p6 = scmp.lt.s32.totalorder %s16_s26, %s16_s26 }
   0xd   :  { %p1802_p7 = scmp.lt.s32.totalorder %s1796_s29, %s1796_s29 }
   0xf   :  { %p1803_p8 = por %p1802_p7, %p1801_p6 }
  0x11   :  { %p1804_p9 = pnand %p1803_p8, %p1797_p5 }
  0x13   :  { %1807 = shalt.err (!%p1804_p9)  }
  0x14   :  { %s1867_s0 = smov [#allocation5]  }
  0x15   :  { %18 = dma.vmem_to_smem %s16_s26, 16, %s1867_s0, [#allocation3] }
  0x16   :  { %1836 = dma.done.wait [#allocation3], 32 }
  0x17   :  { %1837 = vsyncadd [#allocation3], 4294967264 }
  0x18   :  { %20 = sfence }
  0x19   :  { %s1911_s1 = smov 0   ;;  %s1913_s30 = smov 0  }
  0x1a   :  { %s1915_s7 = smov 0   ;;  %s1917_s8 = smov 0  }
  0x1b   :  { %s1919_s9 = smov 0   ;;  %s1921_s10 = smov 0  }
  0x1c   :  { %s1923_s11 = smov 0  }
  0x1d LB: > { %s35_s12 = sadd.s32 1, %s1856_s9  ;;  %s38_s13 = sadd.s32 1, %s1860_s10  ;;  %s1864_s11 = sphi %s1923_s11, %s26_s11   ;;  %s1860_s10 = sphi %s1921_s10, %s2182_s10   ;;  %s1856_s9 = sphi %s1919_s9, %s2181_s9   ;;  %s1852_s8 = sphi %s1917_s8, %s2180_s8   ;;  %s1848_s7 = sphi %s1915_s7, %s2179_s7   ;;  %s1844_s30 = sphi %s1913_s30, %s2178_s30   ;;  %s1840_s1 = sphi %s1911_s1, %s2177_s1  }
  0x1e   : > { %p36_p10 = scmp.ge.s32.totalorder %s35_s12, 3  ;;  %s42_s14 = smul.u32 3, %s1860_s10 }
  0x1f   : > { %p60_p11 = scmp.ne.s32.totalorder %s1844_s30, %s1840_s1  ;;  %p61_p12 = scmp.eq.s32.totalorder %s1864_s11, 0 }
  0x20   : > { %s2184_s12 = smov (%p36_p10, %s35_s12), 0  ;;  %s2186_s13 = smov (!%p36_p10, %s38_s13), %s1860_s10 }
  0x21   : > { %p40_p13 = scmp.ge.s32.totalorder %s2186_s13, 3  ;;  %s43_s15 = sadd.s32 %s1856_s9, %s42_s14 }
  0x22   : > { %p1956_p0 = por %p61_p12, %p60_p11  ;;  %s44_s18 = sld [smem:[#allocation5 + %s43_s15]] }
  0x23   : > { %s2188_s13 = smov (%p40_p13, %s2186_s13), 0  ;;  %s53_s24 = sadd.s32 1, %s1844_s30 }
  0x24   : > { %s45_s17 = smul.u32 3, %s2188_s13  ;;  %s48_s21 = ssub.s32 %s1860_s10, %s2188_s13 }
  0x25   : > { %p1382_p2 = scmp.ge.s32.totalorder %s1864_s11, 9 }
  0x26   : > { %s46_s19 = sadd.s32 %s45_s17, %s2184_s12 }
  0x27   : > { %s47_s20 = sld [smem:[#allocation5 + %s46_s19]] }
  0x2b   : > { %186 = sbr.rel (%p1382_p2) target bundleno = 69 (0x45), region = 24 }
  0x2d   : > { %s49_s22 = ssub.s32 %s44_s18, %s47_s20 }
  0x2e   : > { %s50_s23 = sor.u32 %s49_s22, %s48_s21 }
  0x2f   : > { %p51_p1 = scmp.eq.s32.totalorder %s50_s23, 0 }
  0x31   : > { %s1968_s25 = scalar_select %p51_p1, %s1844_s30, %s53_s24  }
  0x32   : > { %189 = sbr.rel (!%p1956_p0) target bundleno = 69 (0x45), region = 28  ;;  %s196_s26 = sld [smem:[#allocation5 + %s43_s15]] (%p1956_p0) }
  0x33   : > { %s191_s27 = sand.u32 (%p1956_p0), 1, %s1844_s30   ;;  %s1705_s28 = smul.u32 (%p1956_p0), 48, %s1860_s10 }
  0x34   : > { %s1383_s29 = sshll.u32 (%p1956_p0), %s191_s27, 7 }
  0x35   : > { %s193_s15 = scalar_lea.vmem (%p1956_p0), [#allocation6], %s1383_s29 }
  0x38   : > { %s1385_s0 = sshll.u32 (%p1956_p0), %s196_s26, 1 }
  0x39   : > { %s200_s14 = sadd.s32 %s1705_s28, %s1385_s0 }
  0x3a   : > { %s1387_s17 = sshll.u32 %s200_s14, 3 }
  0x3b   : > { %s1978_s20 = scalar_lea.vmem %s2170_s2, %s1387_s17 }
  0x3c   : > { %v215_v0 = vld [vmem:[%s1978_s20] sm:$0xff]  ;;  %v217_v1 = vld [vmem:[%s1978_s20 + $0x8] sm:$0xff]  ;;  %v219_v2 = vld [vmem:[%s1978_s20 + $0x30] sm:$0xff] }
  0x3d   : > { %216 = vst [vmem:[%s193_s15] sm:$0xff] %v215_v0  ;;  %218 = vst [vmem:[%s193_s15 + $0x8] sm:$0xff] %v217_v1  ;;  %v221_v3 = vld [vmem:[%s1978_s20 + $0x38] sm:$0xff]  ;;  %v223_v4 = vld [vmem:[%s1978_s20 + $0x60] sm:$0xff] }
  0x3e   : > { %220 = vst [vmem:[%s193_s15 + $0x10] sm:$0xff] %v219_v2  ;;  %v225_v5 = vld [vmem:[%s1978_s20 + $0x68] sm:$0xff]  ;;  %222 = vst [vmem:[%s193_s15 + $0x18] sm:$0xff] %v221_v3  ;;  %v227_v6 = vld [vmem:[%s1978_s20 + $0x90] sm:$0xff] }
  0x3f   : > { %224 = vst [vmem:[%s193_s15 + $0x20] sm:$0xff] %v223_v4  ;;  %226 = vst [vmem:[%s193_s15 + $0x28] sm:$0xff] %v225_v5  ;;  %v229_v7 = vld [vmem:[%s1978_s20 + $0x98] sm:$0xff]  ;;  %v231_v8 = vld [vmem:[%s1978_s20 + $0xc0] sm:$0xff] }
  0x40   : > { %228 = vst [vmem:[%s193_s15 + $0x30] sm:$0xff] %v227_v6  ;;  %230 = vst [vmem:[%s193_s15 + $0x38] sm:$0xff] %v229_v7  ;;  %v233_v9 = vld [vmem:[%s1978_s20 + $0xc8] sm:$0xff]  ;;  %v235_v10 = vld [vmem:[%s1978_s20 + $0xf0] sm:$0xff] }
  0x41   : > { %232 = vst [vmem:[%s193_s15 + $0x40] sm:$0xff] %v231_v8  ;;  %v237_v11 = vld [vmem:[%s1978_s20 + $0xf8] sm:$0xff]  ;;  %234 = vst [vmem:[%s193_s15 + $0x48] sm:$0xff] %v233_v9  ;;  %v239_v12 = vld [vmem:[%s1978_s20 + $0x120] sm:$0xff] }
  0x42   : > { %236 = vst [vmem:[%s193_s15 + $0x50] sm:$0xff] %v235_v10  ;;  %238 = vst [vmem:[%s193_s15 + $0x58] sm:$0xff] %v237_v11  ;;  %v241_v13 = vld [vmem:[%s1978_s20 + $0x128] sm:$0xff]  ;;  %v243_v14 = vld [vmem:[%s1978_s20 + $0x150] sm:$0xff] }
  0x43   : > { %240 = vst [vmem:[%s193_s15 + $0x60] sm:$0xff] %v239_v12  ;;  %242 = vst [vmem:[%s193_s15 + $0x68] sm:$0xff] %v241_v13  ;;  %v245_v15 = vld [vmem:[%s1978_s20 + $0x158] sm:$0xff] }
  0x44   : > { %244 = vst [vmem:[%s193_s15 + $0x70] sm:$0xff] %v243_v14  ;;  %246 = vst [vmem:[%s193_s15 + $0x78] sm:$0xff] %v245_v15 }
  0x45 PF: > { %p1388_p3 = scmp.ge.s32.totalorder %s1864_s11, 1  ;;  %p260_p4 = scmp.lt.s32.totalorder %s1864_s11, 10 }
  0x47   : > { %p261_p5 = pnand %p1388_p3, %p260_p4 }
  0x48   : > { %s267_s16 = sand.u32 (!%p261_p5), 1, %s1840_s1   ;;  %s1390_s21 = sshll.u32 (!%p261_p5), %s1852_s8, 5 }
  0x49   : > { %264 = sbr.rel (%p261_p5) target bundleno = 627 (0x273), region = 55  ;;  %s1389_s22 = sshll.u32 (!%p261_p5), %s267_s16, 7 }
  0x4a   : > { %p303_p6 = scmp.lt.s32.totalorder (!%p261_p5), %s1390_s21, 95  ;;  %s2010_s17 = scalar_lea.vmem (!%p261_p5), [#allocation6], %s1389_s22 }
  0x4b   : > { %p1394_p7 = scmp.ne.s32.totalorder (!%p261_p5), %s1848_s7, 0 }
  0x50   : > { %s2190_s21 = smov (!%p303_p6, %s1390_s21), 95  ;;  %318 = sbr.rel (%p1394_p7) target bundleno = 98 (0x62), region = 63 }
  0x51   : > { %s1391_s23 = sshll.u32 %s2190_s21, 3  ;;  %s1393_s24 = sshll.u32 %s2190_s21, 2  ;;  %v1868_v16 = vmov (!%p1394_p7), 0.0  }
  0x52   : > { %s2003_s28 = scalar_lea.vmem %s2172_s4, %s1391_s23  ;;  %s2008_s14 = scalar_lea.vmem %s2174_s6, %s1393_s24  ;;  %319 = vst [vmem:[#allocation2] sm:$0xff] (!%p1394_p7), %v1868_v16  ;;  %320 = vst [vmem:[#allocation2 + $0x8] sm:$0xff] (!%p1394_p7), %v1868_v16 }
  0x53   : > { %321 = vst [vmem:[#allocation2 + $0x10] sm:$0xff] (!%p1394_p7), %v1868_v16  ;;  %322 = vst [vmem:[#allocation2 + $0x18] sm:$0xff] (!%p1394_p7), %v1868_v16 }
  0x54   : > { %323 = vst [vmem:[#allocation2 + $0x20] sm:$0xff] (!%p1394_p7), %v1868_v16  ;;  %324 = vst [vmem:[#allocation2 + $0x28] sm:$0xff] (!%p1394_p7), %v1868_v16 }
  0x55   : > { %325 = vst [vmem:[#allocation2 + $0x30] sm:$0xff] (!%p1394_p7), %v1868_v16  ;;  %326 = vst [vmem:[#allocation2 + $0x38] sm:$0xff] (!%p1394_p7), %v1868_v16 }
  0x56   : > { %327 = vst [vmem:[#allocation2 + $0x40] sm:$0xff] (!%p1394_p7), %v1868_v16  ;;  %328 = vst [vmem:[#allocation2 + $0x48] sm:$0xff] (!%p1394_p7), %v1868_v16 }
  0x57   : > { %329 = vst [vmem:[#allocation2 + $0x50] sm:$0xff] %v1868_v16  ;;  %330 = vst [vmem:[#allocation2 + $0x58] sm:$0xff] %v1868_v16 }
  0x58   : > { %331 = vst [vmem:[#allocation2 + $0x60] sm:$0xff] %v1868_v16  ;;  %332 = vst [vmem:[#allocation2 + $0x68] sm:$0xff] %v1868_v16 }
  0x59   : > { %333 = vst [vmem:[#allocation2 + $0x70] sm:$0xff] %v1868_v16  ;;  %334 = vst [vmem:[#allocation2 + $0x78] sm:$0xff] %v1868_v16 }
  0x5a   : > { %335 = vst [vmem:[#allocation2 + $0x80] sm:$0xff] %v1868_v16  ;;  %336 = vst [vmem:[#allocation2 + $0x88] sm:$0xff] %v1868_v16 }
  0x5b   : > { %337 = vst [vmem:[#allocation2 + $0x90] sm:$0xff] %v1868_v16  ;;  %338 = vst [vmem:[#allocation2 + $0x98] sm:$0xff] %v1868_v16 }
  0x5c   : > { %339 = vst [vmem:[#allocation2 + $0xa0] sm:$0xff] %v1868_v16  ;;  %340 = vst [vmem:[#allocation2 + $0xa8] sm:$0xff] %v1868_v16 }
  0x5d   : > { %341 = vst [vmem:[#allocation2 + $0xb0] sm:$0xff] %v1868_v16  ;;  %342 = vst [vmem:[#allocation2 + $0xb8] sm:$0xff] %v1868_v16 }
  0x5e   : > { %343 = vst [vmem:[#allocation2 + $0xc0] sm:$0xff] %v1868_v16  ;;  %344 = vst [vmem:[#allocation2 + $0xc8] sm:$0xff] %v1868_v16 }
  0x5f   : > { %345 = vst [vmem:[#allocation2 + $0xd0] sm:$0xff] %v1868_v16  ;;  %346 = vst [vmem:[#allocation2 + $0xd8] sm:$0xff] %v1868_v16 }
  0x60   : > { %347 = vst [vmem:[#allocation2 + $0xe0] sm:$0xff] %v1868_v16  ;;  %348 = vst [vmem:[#allocation2 + $0xe8] sm:$0xff] %v1868_v16 }
  0x61   : > { %349 = vst [vmem:[#allocation2 + $0xf0] sm:$0xff] %v1868_v16  ;;  %350 = vst [vmem:[#allocation2 + $0xf8] sm:$0xff] %v1868_v16 }
  0x62 PF: > { %s351_s1 = sld [smem:[#allocation4 + %s1852_s8]] }
  0x68   : > { %p1395_p8 = scmp.ge.s32.totalorder %s1848_s7, %s351_s1 }
  0x69   : > { %s404_s18 = smul.u32 (!%p1395_p8), 3, %s1852_s8  ;;  %v2017_v17 = vld [vmem:[%s2010_s17 + $0x8] sm:$0xff] (!%p1395_p8)  ;;  %v356_v37 = vld [vmem:[%s2010_s17] sm:$0xff] (!%p1395_p8)  ;;  %v359_v43 = vld [vmem:[%s2010_s17 + $0x18] sm:$0xff] (!%p1395_p8) }
  0x6a   : > { %355 = sbr.rel (%p1395_p8) target bundleno = 427 (0x1ab), region = 67  ;;  %v2020_v18 = vld [vmem:[%s2010_s17 + $0x48] sm:$0xff] (!%p1395_p8)  ;;  %v373_v19 = vunpack.c.l.s8.bf16 (!%p1395_p8), %v2017_v17  ;;  %v364_v38 = vld [vmem:[%s2010_s17 + $0x40] sm:$0xff] (!%p1395_p8)  ;;  %v372_v39 = vunpack.c.l.s8.bf16 (!%p1395_p8), %v356_v37  ;;  %v375_v41 = vunpack.c.h.s8.bf16 (!%p1395_p8), %v2017_v17  ;;  %v367_v44 = vld [vmem:[%s2010_s17 + $0x58] sm:$0xff] (!%p1395_p8)  ;;  %v374_v45 = vunpack.c.h.s8.bf16 (!%p1395_p8), %v356_v37 }
  0x6b   : > { %v389_v20 = vunpack.c.l.s8.bf16 (!%p1395_p8), %v2020_v18  ;;  %s405_s19 = sadd.s32 (!%p1395_p8), %s1848_s7, %s404_s18  ;;  %v388_v40 = vunpack.c.l.s8.bf16 (!%p1395_p8), %v364_v38  ;;  %v391_v42 = vunpack.c.h.s8.bf16 (!%p1395_p8), %v2020_v18  ;;  %v390_v46 = vunpack.c.h.s8.bf16 (!%p1395_p8), %v364_v38  ;;  %v358_v49 = vld [vmem:[%s2010_s17 + $0x10] sm:$0xff] (!%p1395_p8)  ;;  %v361_v55 = vld [vmem:[%s2010_s17 + $0x28] sm:$0xff] (!%p1395_p8)  ;;  %v360_v61 = vld [vmem:[%s2010_s17 + $0x20] sm:$0xff] (!%p1395_p8) }
  0x6c   : > { %s406_s20 = sld [smem:[#allocation5 + %s405_s19]] (!%p1395_p8)  ;;  %604 = vmatprep.mubr.bf16.mxu0 (!%p1395_p8), %v373_v19  ;;  %v377_v47 = vunpack.c.l.s8.bf16 (!%p1395_p8), %v359_v43  ;;  %v393_v48 = vunpack.c.l.s8.bf16 (!%p1395_p8), %v367_v44  ;;  %v366_v50 = vld [vmem:[%s2010_s17 + $0x50] sm:$0xff] (!%p1395_p8)  ;;  %v376_v51 = vunpack.c.l.s8.bf16 (!%p1395_p8), %v358_v49  ;;  %v379_v53 = vunpack.c.h.s8.bf16 (!%p1395_p8), %v359_v43  ;;  %v369_v56 = vld [vmem:[%s2010_s17 + $0x68] sm:$0xff] (!%p1395_p8)  ;;  %v368_v62 = vld [vmem:[%s2010_s17 + $0x60] sm:$0xff] (!%p1395_p8) }
  0x6d   : > { %668 = vmatprep.mubr.bf16.mxu1 (!%p1395_p8), %v389_v20  ;;  %v392_v52 = vunpack.c.l.s8.bf16 (!%p1395_p8), %v366_v50  ;;  %v395_v54 = vunpack.c.h.s8.bf16 (!%p1395_p8), %v367_v44  ;;  %v378_v57 = vunpack.c.h.s8.bf16 (!%p1395_p8), %v358_v49  ;;  %v394_v58 = vunpack.c.h.s8.bf16 (!%p1395_p8), %v366_v50  ;;  %v363_v3 = vld [vmem:[%s2010_s17 + $0x38] sm:$0xff] (!%p1395_p8)  ;;  %v362_v9 = vld [vmem:[%s2010_s17 + $0x30] sm:$0xff] (!%p1395_p8)  ;;  %v444_v19 = vld [vmem:[#allocation2] sm:$0xff] (!%p1395_p8) }
  0x6e   : > { %v381_v59 = vunpack.c.l.s8.bf16 (!%p1395_p8), %v361_v55  ;;  %v397_v60 = vunpack.c.l.s8.bf16 (!%p1395_p8), %v369_v56  ;;  %v380_v63 = vunpack.c.l.s8.bf16 (!%p1395_p8), %v360_v61  ;;  %v396_v0 = vunpack.c.l.s8.bf16 (!%p1395_p8), %v368_v62  ;;  %v371_v4 = vld [vmem:[%s2010_s17 + $0x78] sm:$0xff] (!%p1395_p8)  ;;  %v370_v10 = vld [vmem:[%s2010_s17 + $0x70] sm:$0xff] (!%p1395_p8) }
  0x6f   : > { %v383_v1 = vunpack.c.h.s8.bf16 (!%p1395_p8), %v361_v55  ;;  %v399_v2 = vunpack.c.h.s8.bf16 (!%p1395_p8), %v369_v56  ;;  %v382_v5 = vunpack.c.h.s8.bf16 (!%p1395_p8), %v360_v61  ;;  %v398_v6 = vunpack.c.h.s8.bf16 (!%p1395_p8), %v368_v62  ;;  %v463_v49 = vld [vmem:[#allocation2 + $0x98] sm:$0xff] (!%p1395_p8)  ;;  %v464_v61 = vld [vmem:[#allocation2 + $0xa0] sm:$0xff] (!%p1395_p8) }
  0x70   : > { %v385_v7 = vunpack.c.l.s8.bf16 (!%p1395_p8), %v363_v3  ;;  %v401_v8 = vunpack.c.l.s8.bf16 (!%p1395_p8), %v371_v4  ;;  %v384_v11 = vunpack.c.l.s8.bf16 (!%p1395_p8), %v362_v9  ;;  %v400_v12 = vunpack.c.l.s8.bf16 (!%p1395_p8), %v370_v10 }
  0x71   : > { %v387_v13 = vunpack.c.h.s8.bf16 %v363_v3  ;;  %v403_v14 = vunpack.c.h.s8.bf16 %v371_v4  ;;  %v386_v15 = vunpack.c.h.s8.bf16 %v362_v9  ;;  %v402_v16 = vunpack.c.h.s8.bf16 %v370_v10  ;;  %v449_v3 = vld [vmem:[#allocation2 + $0x28] sm:$0xff] }
  0x72   : > { %s1396_s15 = sshll.u32 %s406_s20, 8 }
  0x73   : > { %s408_s16 = sshra.s32 %s1396_s15, 3 }
  0x74   : > { %s1397_s21 = sshll.u32 %s408_s16, 2 }
  0x75   : > { %s2028_s24 = scalar_lea.vmem %s2171_s3, %s1397_s21 }
  0x76   : > { %v1766_v21 = vld [vmem:[%s2028_s24 + $0x40] sm:$0xff]   ;;  %v1768_v23 = vld [vmem:[%s2028_s24 + $0x48] sm:$0xff]   ;;  %v1770_v25 = vld [vmem:[%s2028_s24 + $0x50] sm:$0xff]  }
  0x77   : > { %v1767_v22 = vld [vmem:[%s2028_s24] sm:$0xff]   ;;  %1577 = vmatprep.subr.bf16.mxu0 %v1766_v21  ;;  %1689 = vmatprep.subr.bf16.mxu1 %v1766_v21  ;;  %v1769_v24 = vld [vmem:[%s2028_s24 + $0x8] sm:$0xff]   ;;  %v1771_v26 = vld [vmem:[%s2028_s24 + $0x10] sm:$0xff]  }
  0x78   : > { %1578 = vmatpush3.bf16.msra.mxu0 %v1767_v22  ;;  %1697 = vmatpush3.bf16.msra.mxu1 %v1767_v22  ;;  %v1772_v27 = vld [vmem:[%s2028_s24 + $0x58] sm:$0xff]   ;;  %v1774_v29 = vld [vmem:[%s2028_s24 + $0x60] sm:$0xff]   ;;  %v1776_v31 = vld [vmem:[%s2028_s24 + $0x68] sm:$0xff]  }
  0x79   : > { %1579 = vmatprep.subr.bf16.mxu0 %v1768_v23  ;;  %1690 = vmatprep.subr.bf16.mxu1 %v1768_v23  ;;  %v1773_v28 = vld [vmem:[%s2028_s24 + $0x18] sm:$0xff]   ;;  %v1775_v30 = vld [vmem:[%s2028_s24 + $0x20] sm:$0xff]   ;;  %v1777_v32 = vld [vmem:[%s2028_s24 + $0x28] sm:$0xff]  }
  0x7a   : > { %v1778_v33 = vld [vmem:[%s2028_s24 + $0x70] sm:$0xff]   ;;  %v1780_v35 = vld [vmem:[%s2028_s24 + $0x78] sm:$0xff]   ;;  %v460_v21 = vld [vmem:[#allocation2 + $0x80] sm:$0xff] }
  0x7b   : > { %v1779_v34 = vld [vmem:[%s2028_s24 + $0x30] sm:$0xff]   ;;  %v1781_v36 = vld [vmem:[%s2028_s24 + $0x38] sm:$0xff]  }
  0x7c   : > { %1580 = vmatpush3.bf16.msra.mxu0 %v1769_v24  ;;  %1698 = vmatpush3.bf16.msra.mxu1 %v1769_v24 }
  0x7d   : > { %1581 = vmatprep.subr.bf16.mxu0 %v1770_v25  ;;  %1691 = vmatprep.subr.bf16.mxu1 %v1770_v25 }
  0x80   : > { %1582 = vmatpush3.bf16.msra.mxu0 %v1771_v26  ;;  %1699 = vmatpush3.bf16.msra.mxu1 %v1771_v26 }
  0x81   : > { %1583 = vmatprep.subr.bf16.mxu0 %v1772_v27  ;;  %1692 = vmatprep.subr.bf16.mxu1 %v1772_v27  ;;  %v445_v27 = vld [vmem:[#allocation2 + $0x8] sm:$0xff] }
  0x84   : > { %1584 = vmatpush3.bf16.msra.mxu0 %v1773_v28  ;;  %1700 = vmatpush3.bf16.msra.mxu1 %v1773_v28 }
  0x85   : > { %1585 = vmatprep.subr.bf16.mxu0 %v1774_v29  ;;  %1693 = vmatprep.subr.bf16.mxu1 %v1774_v29  ;;  %v461_v29 = vld [vmem:[#allocation2 + $0x88] sm:$0xff] }
  0x88   : > { %1586 = vmatpush3.bf16.msra.mxu0 %v1775_v30  ;;  %1701 = vmatpush3.bf16.msra.mxu1 %v1775_v30 }
  0x89   : > { %1587 = vmatprep.subr.bf16.mxu0 %v1776_v31  ;;  %1694 = vmatprep.subr.bf16.mxu1 %v1776_v31 }
  0x8c   : > { %1588 = vmatpush3.bf16.msra.mxu0 %v1777_v32  ;;  %1702 = vmatpush3.bf16.msra.mxu1 %v1777_v32 }
  0x8d   : > { %1589 = vmatprep.subr.bf16.mxu0 %v1778_v33  ;;  %1695 = vmatprep.subr.bf16.mxu1 %v1778_v33 }
  0x90   : > { %1590 = vmatpush3.bf16.msra.mxu0 %v1779_v34  ;;  %1703 = vmatpush3.bf16.msra.mxu1 %v1779_v34 }
  0x91   : > { %1591 = vmatprep.subr.bf16.mxu0 %v1780_v35  ;;  %1696 = vmatprep.subr.bf16.mxu1 %v1780_v35 }
  0x94   : > { %1592 = vmatpush3.bf16.msra.mxu0 %v1781_v36  ;;  %1704 = vmatpush3.bf16.msra.mxu1 %v1781_v36 }
  0x97   : > { %605 = vmatmul.mubr.bf16.vlgmr.msra.gmra.mrb[0].mxu0 %v372_v39  ;;  %669 = vmatmul.mubr.bf16.vlgmr.msra.gmra.mrb[0].mxu1 %v388_v40  ;;  %v446_v39 = vld [vmem:[#allocation2 + $0x10] sm:$0xff] }
  0x98   : > { %612 = vmatprep.mubr.bf16.mxu0 %v375_v41  ;;  %676 = vmatprep.mubr.bf16.mxu1 %v391_v42  ;;  %v462_v41 = vld [vmem:[#allocation2 + $0x90] sm:$0xff] }
  0x9f   : > { %613 = vmatmul.mubr.bf16.gmra.mrb[4].mxu0 %v374_v45  ;;  %677 = vmatmul.mubr.bf16.gmra.mrb[4].mxu1 %v390_v46 }
  0xa0   : > { %620 = vmatprep.mubr.bf16.mxu0 %v377_v47  ;;  %684 = vmatprep.mubr.bf16.mxu1 %v393_v48  ;;  %v447_v47 = vld [vmem:[#allocation2 + $0x18] sm:$0xff] }
  0xa7   : > { %621 = vmatmul.mubr.bf16.gmra.mrb[8].mxu0 %v376_v51  ;;  %685 = vmatmul.mubr.bf16.gmra.mrb[8].mxu1 %v392_v52 }
  0xa8   : > { %628 = vmatprep.mubr.bf16.mxu0 %v379_v53  ;;  %692 = vmatprep.mubr.bf16.mxu1 %v395_v54 }
  0xaf   : > { %629 = vmatmul.mubr.bf16.gmra.mrb[12].mxu0 %v378_v57  ;;  %693 = vmatmul.mubr.bf16.gmra.mrb[12].mxu1 %v394_v58 }
  0xb0   : > { %636 = vmatprep.mubr.bf16.mxu0 %v381_v59  ;;  %700 = vmatprep.mubr.bf16.mxu1 %v397_v60  ;;  %v448_v59 = vld [vmem:[#allocation2 + $0x20] sm:$0xff] }
  0xb7   : > { %637 = vmatmul.mubr.bf16.gmra.mrb[16].mxu0 %v380_v63  ;;  %701 = vmatmul.mubr.bf16.gmra.mrb[16].mxu1 %v396_v0 }
  0xb8   : > { %644 = vmatprep.mubr.bf16.mxu0 %v383_v1  ;;  %708 = vmatprep.mubr.bf16.mxu1 %v399_v2 }
  0xbf   : > { %645 = vmatmul.mubr.bf16.gmra.mrb[20].mxu0 %v382_v5  ;;  %709 = vmatmul.mubr.bf16.gmra.mrb[20].mxu1 %v398_v6  ;;  %v465_v5 = vld [vmem:[#allocation2 + $0xa8] sm:$0xff] }
  0xc0   : > { %652 = vmatprep.mubr.bf16.mxu0 %v385_v7  ;;  %716 = vmatprep.mubr.bf16.mxu1 %v401_v8 }
  0xc7   : > { %653 = vmatmul.mubr.bf16.gmra.mrb[24].mxu0 %v384_v11  ;;  %717 = vmatmul.mubr.bf16.gmra.mrb[24].mxu1 %v400_v12 }
  0xc8   : > { %660 = vmatprep.mubr.bf16.mxu0 %v387_v13  ;;  %724 = vmatprep.mubr.bf16.mxu1 %v403_v14 }
  0xcf   : > { %661 = vmatmul.mubr.bf16.gmra.mrb[28].mxu0 %v386_v15  ;;  %725 = vmatmul.mubr.bf16.gmra.mrb[28].mxu1 %v402_v16  ;;  %v450_v15 = vld [vmem:[#allocation2 + $0x30] sm:$0xff] }
 0x16a   : > { %v1593_v17 = vpop.f32.mrb[0].mxu0  ;;  %v1641_v18 = vpop.f32.mrb[0].mxu1 }
 0x16b   : > { %v1594_v20 = vpop.f32.mrb[1].mxu0  ;;  %v1642_v22 = vpop.f32.mrb[1].mxu1 }
 0x16c   : > { %v1595_v23 = vadd.f32 %v1594_v20, %v1593_v17  ;;  %v1643_v24 = vadd.f32 %v1642_v22, %v1641_v18  ;;  %v1596_v25 = vpop.f32.mrb[2].mxu0  ;;  %v1644_v26 = vpop.f32.mrb[2].mxu1  ;;  %v466_v17 = vld [vmem:[#allocation2 + $0xb0] sm:$0xff] }
 0x16d   : > { %v1597_v28 = vpop.f32.mrb[3].mxu0  ;;  %v1645_v30 = vpop.f32.mrb[3].mxu1 }
 0x16e   : > { %v733_v31 = vadd.f32 %v1595_v23, %v444_v19  ;;  %v749_v32 = vadd.f32 %v1643_v24, %v460_v21  ;;  %v1598_v33 = vadd.f32 %v1597_v28, %v1596_v25  ;;  %v1646_v34 = vadd.f32 %v1645_v30, %v1644_v26  ;;  %v451_v23 = vld [vmem:[#allocation2 + $0x38] sm:$0xff] }
 0x16f   : > { %v467_v25 = vld [vmem:[#allocation2 + $0xb8] sm:$0xff] }
 0x170   : > { %765 = vst [vmem:[#allocation2] sm:$0xff] %v733_v31  ;;  %781 = vst [vmem:[#allocation2 + $0x80] sm:$0xff] %v749_v32  ;;  %v734_v35 = vadd.f32 %v1598_v33, %v445_v27  ;;  %v750_v36 = vadd.f32 %v1646_v34, %v461_v29 }
 0x172   : > { %766 = vst [vmem:[#allocation2 + $0x8] sm:$0xff] %v734_v35  ;;  %782 = vst [vmem:[#allocation2 + $0x88] sm:$0xff] %v750_v36  ;;  %v1599_v37 = vpop.f32.mrb[4].mxu0  ;;  %v1647_v38 = vpop.f32.mrb[4].mxu1  ;;  %v452_v35 = vld [vmem:[#allocation2 + $0x40] sm:$0xff] }
 0x173   : > { %v1600_v40 = vpop.f32.mrb[5].mxu0  ;;  %v1648_v42 = vpop.f32.mrb[5].mxu1 }
 0x174   : > { %v1601_v43 = vadd.f32 %v1600_v40, %v1599_v37  ;;  %v1649_v44 = vadd.f32 %v1648_v42, %v1647_v38  ;;  %v1602_v45 = vpop.f32.mrb[6].mxu0  ;;  %v1650_v46 = vpop.f32.mrb[6].mxu1  ;;  %v468_v37 = vld [vmem:[#allocation2 + $0xc0] sm:$0xff] }
 0x175   : > { %v1603_v48 = vpop.f32.mrb[7].mxu0  ;;  %v1651_v50 = vpop.f32.mrb[7].mxu1 }
 0x176   : > { %v735_v51 = vadd.f32 %v1601_v43, %v446_v39  ;;  %v751_v52 = vadd.f32 %v1649_v44, %v462_v41  ;;  %v1604_v53 = vadd.f32 %v1603_v48, %v1602_v45  ;;  %v1652_v54 = vadd.f32 %v1651_v50, %v1650_v46  ;;  %v453_v43 = vld [vmem:[#allocation2 + $0x48] sm:$0xff] }
 0x177   : > { %v469_v45 = vld [vmem:[#allocation2 + $0xc8] sm:$0xff] }
 0x178   : > { %767 = vst [vmem:[#allocation2 + $0x10] sm:$0xff] %v735_v51  ;;  %783 = vst [vmem:[#allocation2 + $0x90] sm:$0xff] %v751_v52  ;;  %v736_v55 = vadd.f32 %v1604_v53, %v447_v47  ;;  %v752_v56 = vadd.f32 %v1652_v54, %v463_v49 }
 0x17a   : > { %768 = vst [vmem:[#allocation2 + $0x18] sm:$0xff] %v736_v55  ;;  %784 = vst [vmem:[#allocation2 + $0x98] sm:$0xff] %v752_v56  ;;  %v1605_v57 = vpop.f32.mrb[8].mxu0  ;;  %v1653_v58 = vpop.f32.mrb[8].mxu1  ;;  %v454_v55 = vld [vmem:[#allocation2 + $0x50] sm:$0xff] }
 0x17b   : > { %v1606_v60 = vpop.f32.mrb[9].mxu0  ;;  %v1654_v62 = vpop.f32.mrb[9].mxu1 }
 0x17c   : > { %v1607_v63 = vadd.f32 %v1606_v60, %v1605_v57  ;;  %v1655_v0 = vadd.f32 %v1654_v62, %v1653_v58  ;;  %v1608_v1 = vpop.f32.mrb[10].mxu0  ;;  %v1656_v2 = vpop.f32.mrb[10].mxu1  ;;  %v470_v57 = vld [vmem:[#allocation2 + $0xd0] sm:$0xff] }
 0x17d   : > { %v1609_v4 = vpop.f32.mrb[11].mxu0  ;;  %v1657_v6 = vpop.f32.mrb[11].mxu1 }
 0x17e   : > { %v737_v7 = vadd.f32 %v1607_v63, %v448_v59  ;;  %v753_v8 = vadd.f32 %v1655_v0, %v464_v61  ;;  %v1610_v9 = vadd.f32 %v1609_v4, %v1608_v1  ;;  %v1658_v10 = vadd.f32 %v1657_v6, %v1656_v2  ;;  %v455_v63 = vld [vmem:[#allocation2 + $0x58] sm:$0xff] }
 0x17f   : > { %v471_v1 = vld [vmem:[#allocation2 + $0xd8] sm:$0xff] }
 0x180   : > { %769 = vst [vmem:[#allocation2 + $0x20] sm:$0xff] %v737_v7  ;;  %785 = vst [vmem:[#allocation2 + $0xa0] sm:$0xff] %v753_v8  ;;  %v738_v11 = vadd.f32 %v1610_v9, %v449_v3  ;;  %v754_v12 = vadd.f32 %v1658_v10, %v465_v5 }
 0x182   : > { %770 = vst [vmem:[#allocation2 + $0x28] sm:$0xff] %v738_v11  ;;  %786 = vst [vmem:[#allocation2 + $0xa8] sm:$0xff] %v754_v12  ;;  %v1611_v13 = vpop.f32.mrb[12].mxu0  ;;  %v1659_v14 = vpop.f32.mrb[12].mxu1  ;;  %v456_v11 = vld [vmem:[#allocation2 + $0x60] sm:$0xff] }
 0x183   : > { %v1612_v16 = vpop.f32.mrb[13].mxu0  ;;  %v1660_v18 = vpop.f32.mrb[13].mxu1 }
 0x184   : > { %v1613_v19 = vadd.f32 %v1612_v16, %v1611_v13  ;;  %v1661_v20 = vadd.f32 %v1660_v18, %v1659_v14  ;;  %v1614_v21 = vpop.f32.mrb[14].mxu0  ;;  %v1662_v22 = vpop.f32.mrb[14].mxu1  ;;  %v472_v13 = vld [vmem:[#allocation2 + $0xe0] sm:$0xff] }
 0x185   : > { %v1615_v24 = vpop.f32.mrb[15].mxu0  ;;  %v1663_v26 = vpop.f32.mrb[15].mxu1 }
 0x186   : > { %v739_v27 = vadd.f32 %v1613_v19, %v450_v15  ;;  %v755_v28 = vadd.f32 %v1661_v20, %v466_v17  ;;  %v1616_v29 = vadd.f32 %v1615_v24, %v1614_v21  ;;  %v1664_v30 = vadd.f32 %v1663_v26, %v1662_v22  ;;  %v457_v19 = vld [vmem:[#allocation2 + $0x68] sm:$0xff] }
 0x187   : > { %v473_v21 = vld [vmem:[#allocation2 + $0xe8] sm:$0xff] }
 0x188   : > { %771 = vst [vmem:[#allocation2 + $0x30] sm:$0xff] %v739_v27  ;;  %787 = vst [vmem:[#allocation2 + $0xb0] sm:$0xff] %v755_v28  ;;  %v740_v31 = vadd.f32 %v1616_v29, %v451_v23  ;;  %v756_v32 = vadd.f32 %v1664_v30, %v467_v25 }
 0x18a   : > { %772 = vst [vmem:[#allocation2 + $0x38] sm:$0xff] %v740_v31  ;;  %788 = vst [vmem:[#allocation2 + $0xb8] sm:$0xff] %v756_v32  ;;  %v1617_v33 = vpop.f32.mrb[16].mxu0  ;;  %v1665_v34 = vpop.f32.mrb[16].mxu1  ;;  %v458_v31 = vld [vmem:[#allocation2 + $0x70] sm:$0xff] }
 0x18b   : > { %v1618_v36 = vpop.f32.mrb[17].mxu0  ;;  %v1666_v38 = vpop.f32.mrb[17].mxu1 }
 0x18c   : > { %v1619_v39 = vadd.f32 %v1618_v36, %v1617_v33  ;;  %v1667_v40 = vadd.f32 %v1666_v38, %v1665_v34  ;;  %v1620_v41 = vpop.f32.mrb[18].mxu0  ;;  %v1668_v42 = vpop.f32.mrb[18].mxu1  ;;  %v474_v33 = vld [vmem:[#allocation2 + $0xf0] sm:$0xff] }
 0x18d   : > { %v1621_v44 = vpop.f32.mrb[19].mxu0  ;;  %v1669_v46 = vpop.f32.mrb[19].mxu1 }
 0x18e   : > { %v741_v47 = vadd.f32 %v1619_v39, %v452_v35  ;;  %v757_v48 = vadd.f32 %v1667_v40, %v468_v37  ;;  %v1622_v49 = vadd.f32 %v1621_v44, %v1620_v41  ;;  %v1670_v50 = vadd.f32 %v1669_v46, %v1668_v42  ;;  %v459_v39 = vld [vmem:[#allocation2 + $0x78] sm:$0xff] }
 0x18f   : > { %v475_v41 = vld [vmem:[#allocation2 + $0xf8] sm:$0xff] }
 0x190   : > { %773 = vst [vmem:[#allocation2 + $0x40] sm:$0xff] %v741_v47  ;;  %789 = vst [vmem:[#allocation2 + $0xc0] sm:$0xff] %v757_v48  ;;  %v742_v51 = vadd.f32 %v1622_v49, %v453_v43  ;;  %v758_v52 = vadd.f32 %v1670_v50, %v469_v45 }
 0x192   : > { %774 = vst [vmem:[#allocation2 + $0x48] sm:$0xff] %v742_v51  ;;  %790 = vst [vmem:[#allocation2 + $0xc8] sm:$0xff] %v758_v52  ;;  %v1623_v53 = vpop.f32.mrb[20].mxu0  ;;  %v1671_v54 = vpop.f32.mrb[20].mxu1 }
 0x193   : > { %v1624_v56 = vpop.f32.mrb[21].mxu0  ;;  %v1672_v58 = vpop.f32.mrb[21].mxu1 }
 0x194   : > { %v1625_v59 = vadd.f32 %v1624_v56, %v1623_v53  ;;  %v1673_v60 = vadd.f32 %v1672_v58, %v1671_v54  ;;  %v1626_v61 = vpop.f32.mrb[22].mxu0  ;;  %v1674_v62 = vpop.f32.mrb[22].mxu1 }
 0x195   : > { %v1627_v0 = vpop.f32.mrb[23].mxu0  ;;  %v1675_v2 = vpop.f32.mrb[23].mxu1 }
 0x196   : > { %v743_v3 = vadd.f32 %v1625_v59, %v454_v55  ;;  %v759_v4 = vadd.f32 %v1673_v60, %v470_v57  ;;  %v1628_v5 = vadd.f32 %v1627_v0, %v1626_v61  ;;  %v1676_v6 = vadd.f32 %v1675_v2, %v1674_v62 }
 0x198   : > { %775 = vst [vmem:[#allocation2 + $0x50] sm:$0xff] %v743_v3  ;;  %791 = vst [vmem:[#allocation2 + $0xd0] sm:$0xff] %v759_v4  ;;  %v744_v7 = vadd.f32 %v1628_v5, %v455_v63  ;;  %v760_v8 = vadd.f32 %v1676_v6, %v471_v1 }
 0x19a   : > { %776 = vst [vmem:[#allocation2 + $0x58] sm:$0xff] %v744_v7  ;;  %792 = vst [vmem:[#allocation2 + $0xd8] sm:$0xff] %v760_v8  ;;  %v1629_v9 = vpop.f32.mrb[24].mxu0  ;;  %v1677_v10 = vpop.f32.mrb[24].mxu1 }
 0x19b   : > { %v1630_v12 = vpop.f32.mrb[25].mxu0  ;;  %v1678_v14 = vpop.f32.mrb[25].mxu1 }
 0x19c   : > { %v1631_v15 = vadd.f32 %v1630_v12, %v1629_v9  ;;  %v1679_v16 = vadd.f32 %v1678_v14, %v1677_v10  ;;  %v1632_v17 = vpop.f32.mrb[26].mxu0  ;;  %v1680_v18 = vpop.f32.mrb[26].mxu1 }
 0x19d   : > { %v1633_v20 = vpop.f32.mrb[27].mxu0  ;;  %v1681_v22 = vpop.f32.mrb[27].mxu1 }
 0x19e   : > { %v745_v23 = vadd.f32 %v1631_v15, %v456_v11  ;;  %v761_v24 = vadd.f32 %v1679_v16, %v472_v13  ;;  %v1634_v25 = vadd.f32 %v1633_v20, %v1632_v17  ;;  %v1682_v26 = vadd.f32 %v1681_v22, %v1680_v18 }
 0x1a0   : > { %777 = vst [vmem:[#allocation2 + $0x60] sm:$0xff] %v745_v23  ;;  %793 = vst [vmem:[#allocation2 + $0xe0] sm:$0xff] %v761_v24  ;;  %v746_v27 = vadd.f32 %v1634_v25, %v457_v19  ;;  %v762_v28 = vadd.f32 %v1682_v26, %v473_v21 }
 0x1a2   : > { %778 = vst [vmem:[#allocation2 + $0x68] sm:$0xff] %v746_v27  ;;  %794 = vst [vmem:[#allocation2 + $0xe8] sm:$0xff] %v762_v28  ;;  %v1635_v29 = vpop.f32.mrb[28].mxu0  ;;  %v1683_v30 = vpop.f32.mrb[28].mxu1 }
 0x1a3   : > { %v1636_v32 = vpop.f32.mrb[29].mxu0  ;;  %v1684_v34 = vpop.f32.mrb[29].mxu1 }
 0x1a4   : > { %v1637_v35 = vadd.f32 %v1636_v32, %v1635_v29  ;;  %v1685_v36 = vadd.f32 %v1684_v34, %v1683_v30  ;;  %v1638_v37 = vpop.f32.mrb[30].mxu0  ;;  %v1686_v38 = vpop.f32.mrb[30].mxu1 }
 0x1a5   : > { %v1639_v40 = vpop.f32.mrb[31].mxu0  ;;  %v1687_v42 = vpop.f32.mrb[31].mxu1 }
 0x1a6   : > { %v747_v43 = vadd.f32 %v1637_v35, %v458_v31  ;;  %v763_v44 = vadd.f32 %v1685_v36, %v474_v33  ;;  %v1640_v45 = vadd.f32 %v1639_v40, %v1638_v37  ;;  %v1688_v46 = vadd.f32 %v1687_v42, %v1686_v38 }
 0x1a8   : > { %779 = vst [vmem:[#allocation2 + $0x70] sm:$0xff] %v747_v43  ;;  %795 = vst [vmem:[#allocation2 + $0xf0] sm:$0xff] %v763_v44  ;;  %v748_v47 = vadd.f32 %v1640_v45, %v459_v39  ;;  %v764_v48 = vadd.f32 %v1688_v46, %v475_v41 }
 0x1aa   : > { %780 = vst [vmem:[#allocation2 + $0x78] sm:$0xff] %v748_v47  ;;  %796 = vst [vmem:[#allocation2 + $0xf8] sm:$0xff] %v764_v48 }
 0x1ab PF: > { %p1414_p9 = scmp.ne.s32.totalorder %s1848_s7, 2 }
 0x1ac   : > { %v835_v49 = vld [vmem:[%s2003_s28 + $0x10] sm:$0xff] (!%p1414_p9)  ;;  %v833_v50 = vld [vmem:[%s2003_s28] sm:$0xff] (!%p1414_p9)  ;;  %v1869_v51 = vmov (!%p1414_p9), 0   ;;  %v836_v52 = vld [vmem:[%s2003_s28 + $0x18] sm:$0xff] (!%p1414_p9) }
 0x1ad   : > { %800 = sbr.rel (%p1414_p9) target bundleno = 627 (0x273), region = 71  ;;  %1783 = vset.pattern.permute.xlu1 (!%p1414_p9), %v1869_v51  ;;  %1782 = vset.pattern.permute.xlu0 (!%p1414_p9), %v1869_v51  ;;  %v834_v53 = vld [vmem:[%s2003_s28 + $0x8] sm:$0xff] (!%p1414_p9)  ;;  %v837_v55 = vld [vmem:[%s2003_s28 + $0x20] sm:$0xff] (!%p1414_p9)  ;;  %v840_v56 = vld [vmem:[%s2003_s28 + $0x38] sm:$0xff] (!%p1414_p9) }
 0x1ae   : > { %877 = vperm.xlu1 (!%p1414_p9), %1783, %v835_v49   ;;  %867 = vperm.xlu0 (!%p1414_p9), %1782, %v833_v50   ;;  %v838_v54 = vld [vmem:[%s2003_s28 + $0x28] sm:$0xff] (!%p1414_p9)  ;;  %v839_v57 = vld [vmem:[%s2003_s28 + $0x30] sm:$0xff] (!%p1414_p9)  ;;  %v841_v59 = vld [vmem:[%s2003_s28 + $0x40] sm:$0xff] (!%p1414_p9) }
 0x1af   : > { %v842_v58 = vld [vmem:[%s2003_s28 + $0x48] sm:$0xff] (!%p1414_p9)  ;;  %v844_v60 = vld [vmem:[%s2003_s28 + $0x58] sm:$0xff] (!%p1414_p9)  ;;  %v843_v61 = vld [vmem:[%s2003_s28 + $0x50] sm:$0xff] (!%p1414_p9) }
 0x1b0   : > { %v846_v62 = vld [vmem:[%s2003_s28 + $0x68] sm:$0xff] (!%p1414_p9)  ;;  %v845_v63 = vld [vmem:[%s2003_s28 + $0x60] sm:$0xff] (!%p1414_p9)  ;;  %v848_v0 = vld [vmem:[%s2003_s28 + $0x78] sm:$0xff] (!%p1414_p9) }
 0x1b1   : > { %v847_v1 = vld [vmem:[%s2003_s28 + $0x70] sm:$0xff] (!%p1414_p9)  ;;  %v850_v2 = vld [vmem:[%s2003_s28 + $0x88] sm:$0xff] (!%p1414_p9)  ;;  %v849_v3 = vld [vmem:[%s2003_s28 + $0x80] sm:$0xff] (!%p1414_p9) }
 0x1b2   : > { %882 = vperm.xlu1 (!%p1414_p9), %1783, %v836_v52   ;;  %872 = vperm.xlu0 (!%p1414_p9), %1782, %v834_v53   ;;  %v852_v4 = vld [vmem:[%s2003_s28 + $0x98] sm:$0xff] (!%p1414_p9)  ;;  %v851_v5 = vld [vmem:[%s2003_s28 + $0x90] sm:$0xff] (!%p1414_p9)  ;;  %v854_v6 = vld [vmem:[%s2003_s28 + $0xa8] sm:$0xff] (!%p1414_p9) }
 0x1b3   : > { %v853_v7 = vld [vmem:[%s2003_s28 + $0xa0] sm:$0xff] (!%p1414_p9)  ;;  %v856_v8 = vld [vmem:[%s2003_s28 + $0xb8] sm:$0xff] (!%p1414_p9)  ;;  %v855_v9 = vld [vmem:[%s2003_s28 + $0xb0] sm:$0xff] (!%p1414_p9) }
 0x1b4   : > { %v858_v10 = vld [vmem:[%s2003_s28 + $0xc8] sm:$0xff]  ;;  %v857_v11 = vld [vmem:[%s2003_s28 + $0xc0] sm:$0xff]  ;;  %v860_v12 = vld [vmem:[%s2003_s28 + $0xd8] sm:$0xff] }
 0x1b5   : > { %v859_v13 = vld [vmem:[%s2003_s28 + $0xd0] sm:$0xff]  ;;  %v862_v14 = vld [vmem:[%s2003_s28 + $0xe8] sm:$0xff]  ;;  %v861_v15 = vld [vmem:[%s2003_s28 + $0xe0] sm:$0xff] }
 0x1b6   : > { %892 = vperm.xlu1 %1783, %v838_v54   ;;  %887 = vperm.xlu0 %1782, %v837_v55   ;;  %v864_v16 = vld [vmem:[%s2003_s28 + $0xf8] sm:$0xff]  ;;  %v863_v17 = vld [vmem:[%s2003_s28 + $0xf0] sm:$0xff]  ;;  %v801_v19 = vld [vmem:[#allocation2] sm:$0xff] }
 0x1b7   : > { %v803_v18 = vld [vmem:[#allocation2 + $0x10] sm:$0xff]  ;;  %v2098_v22 = vld [vmem:[%s2173_s5] ss:$0 sm:$0xff]  ;;  %v804_v25 = vld [vmem:[#allocation2 + $0x18] sm:$0xff] }
 0x1b8   : > { %v802_v26 = vld [vmem:[#allocation2 + $0x8] sm:$0xff]  ;;  %v805_v34 = vld [vmem:[#allocation2 + $0x20] sm:$0xff]  ;;  %v808_v45 = vld [vmem:[#allocation2 + $0x38] sm:$0xff] }
 0x1b9   : > { %v806_v33 = vld [vmem:[#allocation2 + $0x28] sm:$0xff]  ;;  %v807_v46 = vld [vmem:[#allocation2 + $0x30] sm:$0xff] }
 0x1ba   : > { %902 = vperm.xlu1 %1783, %v840_v56   ;;  %897 = vperm.xlu0 %1782, %v839_v57   ;;  %v810_v57 = vld [vmem:[#allocation2 + $0x48] sm:$0xff] }
 0x1be   : > { %912 = vperm.xlu1 %1783, %v842_v58   ;;  %907 = vperm.xlu0 %1782, %v841_v59   ;;  %v809_v58 = vld [vmem:[#allocation2 + $0x40] sm:$0xff] }
 0x1c2   : > { %922 = vperm.xlu1 %1783, %v844_v60   ;;  %917 = vperm.xlu0 %1782, %v843_v61  }
 0x1c6   : > { %932 = vperm.xlu1 %1783, %v846_v62   ;;  %927 = vperm.xlu0 %1782, %v845_v63  }
 0x1ca   : > { %942 = vperm.xlu1 %1783, %v848_v0   ;;  %937 = vperm.xlu0 %1782, %v847_v1  }
 0x1ce   : > { %952 = vperm.xlu1 %1783, %v850_v2   ;;  %947 = vperm.xlu0 %1782, %v849_v3  }
 0x1d2   : > { %962 = vperm.xlu1 %1783, %v852_v4   ;;  %957 = vperm.xlu0 %1782, %v851_v5   ;;  %v812_v4 = vld [vmem:[#allocation2 + $0x58] sm:$0xff]  ;;  %v811_v5 = vld [vmem:[#allocation2 + $0x50] sm:$0xff] }
 0x1d6   : > { %972 = vperm.xlu1 %1783, %v854_v6   ;;  %967 = vperm.xlu0 %1782, %v853_v7  }
 0x1da   : > { %982 = vperm.xlu1 %1783, %v856_v8   ;;  %977 = vperm.xlu0 %1782, %v855_v9  }
 0x1de   : > { %992 = vperm.xlu1 %1783, %v858_v10   ;;  %987 = vperm.xlu0 %1782, %v857_v11  }
 0x1e2   : > { %1002 = vperm.xlu1 %1783, %v860_v12   ;;  %997 = vperm.xlu0 %1782, %v859_v13  }
 0x1e6   : > { %1012 = vperm.xlu1 %1783, %v862_v14   ;;  %1007 = vperm.xlu0 %1782, %v861_v15   ;;  %v814_v15 = vld [vmem:[#allocation2 + $0x68] sm:$0xff] }
 0x1ea   : > { %1022 = vperm.xlu1 %1783, %v864_v16   ;;  %1017 = vperm.xlu0 %1782, %v863_v17   ;;  %v813_v16 = vld [vmem:[#allocation2 + $0x60] sm:$0xff] }
 0x22d   : > { %v878_v20 = vpop.permute.xlu1 %877  ;;  %v868_v21 = vpop.permute.xlu0 %867 }
 0x22e   : > { %v1027_v23 = vmul.f32 %v878_v20, %v803_v18  ;;  %v1025_v24 = vmul.f32 %v868_v21, %v801_v19 }
 0x230   : > { %v1066_v27 = vadd.f32 %v2098_v22, %v1027_v23  ;;  %v1064_v28 = vadd.f32 %v2098_v22, %v1025_v24 }
 0x231   : > { %v883_v29 = vpop.permute.xlu1 %882  ;;  %v873_v30 = vpop.permute.xlu0 %872 }
 0x232   : > { %v1028_v31 = vmul.f32 %v883_v29, %v804_v25  ;;  %v1026_v32 = vmul.f32 %v873_v30, %v802_v26  ;;  %v1098_v37 = vmax.f32 %v1066_v27, 0.0  ;;  %v1096_v38 = vmax.f32 %v1064_v28, 0.0  ;;  %v816_v27 = vld [vmem:[#allocation2 + $0x78] sm:$0xff]  ;;  %v815_v28 = vld [vmem:[#allocation2 + $0x70] sm:$0xff] }
 0x234   : > { %v1067_v35 = vadd.f32 %v2098_v22, %v1028_v31  ;;  %v1065_v36 = vadd.f32 %v2098_v22, %v1026_v32 }
 0x235   : > { %v893_v39 = vpop.permute.xlu1 %892  ;;  %v888_v40 = vpop.permute.xlu0 %887 }
 0x236   : > { %v1099_v41 = vmax.f32 %v1067_v35, 0.0  ;;  %v1097_v42 = vmax.f32 %v1065_v36, 0.0  ;;  %v1030_v43 = vmul.f32 %v893_v39, %v806_v33  ;;  %v1029_v44 = vmul.f32 %v888_v40, %v805_v34  ;;  %v817_v39 = vld [vmem:[#allocation2 + $0x80] sm:$0xff] }
 0x238   : > { %v1490_v47 = vpack.c.bf16 %v1099_v41, %v1098_v37  ;;  %v1485_v48 = vpack.c.bf16 %v1097_v42, %v1096_v38  ;;  %v1069_v49 = vadd.f32 %v2098_v22, %v1030_v43  ;;  %v1068_v50 = vadd.f32 %v2098_v22, %v1029_v44  ;;  %v818_v38 = vld [vmem:[#allocation2 + $0x88] sm:$0xff] }
 0x239   : > { %v903_v51 = vpop.permute.xlu1 %902  ;;  %v898_v52 = vpop.permute.xlu0 %897 }
 0x23a   : > { %1562 = vst [vmem:[%s2008_s14 + $0x8] sm:$0xff] %v1490_v47   ;;  %1486 = vst [vmem:[%s2008_s14] sm:$0xff] %v1485_v48   ;;  %v1101_v53 = vmax.f32 %v1069_v49, 0.0  ;;  %v1100_v54 = vmax.f32 %v1068_v50, 0.0  ;;  %v1032_v55 = vmul.f32 %v903_v51, %v808_v45  ;;  %v1031_v56 = vmul.f32 %v898_v52, %v807_v46  ;;  %v820_v49 = vld [vmem:[#allocation2 + $0x98] sm:$0xff]  ;;  %v819_v50 = vld [vmem:[#allocation2 + $0x90] sm:$0xff] }
 0x23c   : > { %v1495_v59 = vpack.c.bf16 %v1101_v53, %v1100_v54  ;;  %v1071_v60 = vadd.f32 %v2098_v22, %v1032_v55  ;;  %v1070_v61 = vadd.f32 %v2098_v22, %v1031_v56 }
 0x23d   : > { %v913_v62 = vpop.permute.xlu1 %912  ;;  %v908_v63 = vpop.permute.xlu0 %907 }
 0x23e   : > { %1563 = vst [vmem:[%s2008_s14 + $0x10] sm:$0xff] %v1495_v59   ;;  %v1103_v0 = vmax.f32 %v1071_v60, 0.0  ;;  %v1102_v1 = vmax.f32 %v1070_v61, 0.0  ;;  %v1034_v2 = vmul.f32 %v913_v62, %v810_v57  ;;  %v1033_v3 = vmul.f32 %v908_v63, %v809_v58  ;;  %v822_v60 = vld [vmem:[#allocation2 + $0xa8] sm:$0xff]  ;;  %v821_v61 = vld [vmem:[#allocation2 + $0xa0] sm:$0xff] }
 0x240   : > { %v1500_v6 = vpack.c.bf16 %v1103_v0, %v1102_v1  ;;  %v1073_v7 = vadd.f32 %v2098_v22, %v1034_v2  ;;  %v1072_v8 = vadd.f32 %v2098_v22, %v1033_v3 }
 0x241   : > { %v923_v9 = vpop.permute.xlu1 %922  ;;  %v918_v10 = vpop.permute.xlu0 %917 }
 0x242   : > { %1564 = vst [vmem:[%s2008_s14 + $0x18] sm:$0xff] %v1500_v6   ;;  %v1105_v11 = vmax.f32 %v1073_v7, 0.0  ;;  %v1104_v12 = vmax.f32 %v1072_v8, 0.0  ;;  %v1036_v13 = vmul.f32 %v923_v9, %v812_v4  ;;  %v1035_v14 = vmul.f32 %v918_v10, %v811_v5  ;;  %v824_v7 = vld [vmem:[#allocation2 + $0xb8] sm:$0xff]  ;;  %v823_v8 = vld [vmem:[#allocation2 + $0xb0] sm:$0xff] }
 0x244   : > { %v1505_v17 = vpack.c.bf16 %v1105_v11, %v1104_v12  ;;  %v1075_v18 = vadd.f32 %v2098_v22, %v1036_v13  ;;  %v1074_v19 = vadd.f32 %v2098_v22, %v1035_v14 }
 0x245   : > { %v933_v20 = vpop.permute.xlu1 %932  ;;  %v928_v21 = vpop.permute.xlu0 %927 }
 0x246   : > { %1565 = vst [vmem:[%s2008_s14 + $0x20] sm:$0xff] %v1505_v17   ;;  %v1107_v23 = vmax.f32 %v1075_v18, 0.0  ;;  %v1106_v24 = vmax.f32 %v1074_v19, 0.0  ;;  %v1038_v25 = vmul.f32 %v933_v20, %v814_v15  ;;  %v1037_v26 = vmul.f32 %v928_v21, %v813_v16  ;;  %v826_v18 = vld [vmem:[#allocation2 + $0xc8] sm:$0xff]  ;;  %v825_v19 = vld [vmem:[#allocation2 + $0xc0] sm:$0xff] }
 0x248   : > { %v1510_v29 = vpack.c.bf16 %v1107_v23, %v1106_v24  ;;  %v1077_v30 = vadd.f32 %v2098_v22, %v1038_v25  ;;  %v1076_v31 = vadd.f32 %v2098_v22, %v1037_v26 }
 0x249   : > { %v943_v32 = vpop.permute.xlu1 %942  ;;  %v938_v33 = vpop.permute.xlu0 %937 }
 0x24a   : > { %1566 = vst [vmem:[%s2008_s14 + $0x28] sm:$0xff] %v1510_v29   ;;  %v1109_v34 = vmax.f32 %v1077_v30, 0.0  ;;  %v1108_v35 = vmax.f32 %v1076_v31, 0.0  ;;  %v1040_v36 = vmul.f32 %v943_v32, %v816_v27  ;;  %v1039_v37 = vmul.f32 %v938_v33, %v815_v28  ;;  %v828_v30 = vld [vmem:[#allocation2 + $0xd8] sm:$0xff]  ;;  %v827_v31 = vld [vmem:[#allocation2 + $0xd0] sm:$0xff] }
 0x24c   : > { %v1515_v40 = vpack.c.bf16 %v1109_v34, %v1108_v35  ;;  %v1079_v41 = vadd.f32 %v2098_v22, %v1040_v36  ;;  %v1078_v42 = vadd.f32 %v2098_v22, %v1039_v37 }
 0x24d   : > { %v953_v43 = vpop.permute.xlu1 %952  ;;  %v948_v44 = vpop.permute.xlu0 %947 }
 0x24e   : > { %1567 = vst [vmem:[%s2008_s14 + $0x30] sm:$0xff] %v1515_v40   ;;  %v1111_v45 = vmax.f32 %v1079_v41, 0.0  ;;  %v1110_v46 = vmax.f32 %v1078_v42, 0.0  ;;  %v1042_v47 = vmul.f32 %v953_v43, %v818_v38  ;;  %v1041_v48 = vmul.f32 %v948_v44, %v817_v39  ;;  %v830_v41 = vld [vmem:[#allocation2 + $0xe8] sm:$0xff]  ;;  %v829_v42 = vld [vmem:[#allocation2 + $0xe0] sm:$0xff] }
 0x250   : > { %v1520_v51 = vpack.c.bf16 %v1111_v45, %v1110_v46  ;;  %v1081_v52 = vadd.f32 %v2098_v22, %v1042_v47  ;;  %v1080_v53 = vadd.f32 %v2098_v22, %v1041_v48 }
 0x251   : > { %v963_v54 = vpop.permute.xlu1 %962  ;;  %v958_v55 = vpop.permute.xlu0 %957 }
 0x252   : > { %1568 = vst [vmem:[%s2008_s14 + $0x38] sm:$0xff] %v1520_v51   ;;  %v1113_v56 = vmax.f32 %v1081_v52, 0.0  ;;  %v1112_v57 = vmax.f32 %v1080_v53, 0.0  ;;  %v1044_v58 = vmul.f32 %v963_v54, %v820_v49  ;;  %v1043_v59 = vmul.f32 %v958_v55, %v819_v50  ;;  %v832_v52 = vld [vmem:[#allocation2 + $0xf8] sm:$0xff]  ;;  %v831_v53 = vld [vmem:[#allocation2 + $0xf0] sm:$0xff] }
 0x254   : > { %v1525_v62 = vpack.c.bf16 %v1113_v56, %v1112_v57  ;;  %v1083_v63 = vadd.f32 %v2098_v22, %v1044_v58  ;;  %v1082_v0 = vadd.f32 %v2098_v22, %v1043_v59 }
 0x255   : > { %v973_v1 = vpop.permute.xlu1 %972  ;;  %v968_v2 = vpop.permute.xlu0 %967 }
 0x256   : > { %1569 = vst [vmem:[%s2008_s14 + $0x40] sm:$0xff] %v1525_v62   ;;  %v1115_v3 = vmax.f32 %v1083_v63, 0.0  ;;  %v1114_v4 = vmax.f32 %v1082_v0, 0.0  ;;  %v1046_v5 = vmul.f32 %v973_v1, %v822_v60  ;;  %v1045_v6 = vmul.f32 %v968_v2, %v821_v61 }
 0x258   : > { %v1530_v9 = vpack.c.bf16 %v1115_v3, %v1114_v4  ;;  %v1085_v10 = vadd.f32 %v2098_v22, %v1046_v5  ;;  %v1084_v11 = vadd.f32 %v2098_v22, %v1045_v6 }
 0x259   : > { %v983_v12 = vpop.permute.xlu1 %982  ;;  %v978_v13 = vpop.permute.xlu0 %977 }
 0x25a   : > { %1570 = vst [vmem:[%s2008_s14 + $0x48] sm:$0xff] %v1530_v9   ;;  %v1117_v14 = vmax.f32 %v1085_v10, 0.0  ;;  %v1116_v15 = vmax.f32 %v1084_v11, 0.0  ;;  %v1048_v16 = vmul.f32 %v983_v12, %v824_v7  ;;  %v1047_v17 = vmul.f32 %v978_v13, %v823_v8 }
 0x25c   : > { %v1535_v20 = vpack.c.bf16 %v1117_v14, %v1116_v15  ;;  %v1087_v21 = vadd.f32 %v2098_v22, %v1048_v16  ;;  %v1086_v23 = vadd.f32 %v2098_v22, %v1047_v17 }
 0x25d   : > { %v993_v24 = vpop.permute.xlu1 %992  ;;  %v988_v25 = vpop.permute.xlu0 %987 }
 0x25e   : > { %1571 = vst [vmem:[%s2008_s14 + $0x50] sm:$0xff] %v1535_v20   ;;  %v1119_v26 = vmax.f32 %v1087_v21, 0.0  ;;  %v1118_v27 = vmax.f32 %v1086_v23, 0.0  ;;  %v1050_v28 = vmul.f32 %v993_v24, %v826_v18  ;;  %v1049_v29 = vmul.f32 %v988_v25, %v825_v19 }
 0x260   : > { %v1540_v32 = vpack.c.bf16 %v1119_v26, %v1118_v27  ;;  %v1089_v33 = vadd.f32 %v2098_v22, %v1050_v28  ;;  %v1088_v34 = vadd.f32 %v2098_v22, %v1049_v29 }
 0x261   : > { %v1003_v35 = vpop.permute.xlu1 %1002  ;;  %v998_v36 = vpop.permute.xlu0 %997 }
 0x262   : > { %1572 = vst [vmem:[%s2008_s14 + $0x58] sm:$0xff] %v1540_v32   ;;  %v1121_v37 = vmax.f32 %v1089_v33, 0.0  ;;  %v1120_v38 = vmax.f32 %v1088_v34, 0.0  ;;  %v1052_v39 = vmul.f32 %v1003_v35, %v828_v30  ;;  %v1051_v40 = vmul.f32 %v998_v36, %v827_v31 }
 0x264   : > { %v1545_v43 = vpack.c.bf16 %v1121_v37, %v1120_v38  ;;  %v1091_v44 = vadd.f32 %v2098_v22, %v1052_v39  ;;  %v1090_v45 = vadd.f32 %v2098_v22, %v1051_v40 }
 0x265   : > { %v1013_v46 = vpop.permute.xlu1 %1012  ;;  %v1008_v47 = vpop.permute.xlu0 %1007 }
 0x266   : > { %1573 = vst [vmem:[%s2008_s14 + $0x60] sm:$0xff] %v1545_v43   ;;  %v1123_v48 = vmax.f32 %v1091_v44, 0.0  ;;  %v1122_v49 = vmax.f32 %v1090_v45, 0.0  ;;  %v1054_v50 = vmul.f32 %v1013_v46, %v830_v41  ;;  %v1053_v51 = vmul.f32 %v1008_v47, %v829_v42 }
 0x268   : > { %v1550_v54 = vpack.c.bf16 %v1123_v48, %v1122_v49  ;;  %v1093_v55 = vadd.f32 %v2098_v22, %v1054_v50  ;;  %v1092_v56 = vadd.f32 %v2098_v22, %v1053_v51 }
 0x269   : > { %v1023_v57 = vpop.permute.xlu1 %1022  ;;  %v1018_v58 = vpop.permute.xlu0 %1017 }
 0x26a   : > { %1574 = vst [vmem:[%s2008_s14 + $0x68] sm:$0xff] %v1550_v54   ;;  %v1125_v59 = vmax.f32 %v1093_v55, 0.0  ;;  %v1124_v60 = vmax.f32 %v1092_v56, 0.0  ;;  %v1056_v61 = vmul.f32 %v1023_v57, %v832_v52  ;;  %v1055_v62 = vmul.f32 %v1018_v58, %v831_v53 }
 0x26c   : > { %v1555_v63 = vpack.c.bf16 %v1125_v59, %v1124_v60  ;;  %v1095_v0 = vadd.f32 %v2098_v22, %v1056_v61  ;;  %v1094_v1 = vadd.f32 %v2098_v22, %v1055_v62 }
 0x26e   : > { %1575 = vst [vmem:[%s2008_s14 + $0x70] sm:$0xff] %v1555_v63   ;;  %v1127_v2 = vmax.f32 %v1095_v0, 0.0  ;;  %v1126_v3 = vmax.f32 %v1094_v1, 0.0 }
 0x270   : > { %v1560_v4 = vpack.c.bf16 %v1127_v2, %v1126_v3 }
 0x272   : > { %1576 = vst [vmem:[%s2008_s14 + $0x78] sm:$0xff] %v1560_v4  }
 0x273 PF: > { %s26_s11 = sadd.s32 1, %s1864_s11   ;;  %s2177_s1 = smov %s1844_s30 }
 0x274   : > { %p23_p10 = scmp.ge.s32.totalorder %s26_s11, 11   ;;  %s2178_s30 = smov %s1968_s25 }
 0x275   : > { %s2179_s7 = smov %s1856_s9  ;;  %s2180_s8 = smov %s1860_s10 }
 0x276   : > { %s2181_s9 = smov %s2184_s12  ;;  %s2182_s10 = smov %s2188_s13 }
 0x277   :  { %25 = sbr.rel (!%p23_p10) target bundleno = 29 (0x1d), region = 110 }

// kernel: gcn_forward.11
= control target key start
LH: loop header
LB: loop body
LE: loop exit
PB: predicated region body
PF: predicated region fallthrough
CT: control target
= control target key end

     0   :  { %s1866_s0 = inlined_call_operand.vmem [shape: s32[3], index: 0, kind: input, shape index: {}]   ;;  %s1867_s2 = inlined_call_operand.vmem [shape: s8[768,768], index: 2, kind: input, shape index: {}]   ;;  %s1868_s3 = inlined_call_operand.vmem [shape: bf16[768,128], index: 3, kind: input, shape index: {}]   ;;  %s1869_s4 = inlined_call_operand.vmem [shape: f32[768,1], index: 4, kind: input, shape index: {}]   ;;  %s1870_s5 = inlined_call_operand.vmem [shape: f32[1,128], index: 5, kind: input, shape index: {}]   ;;  %s1871_s6 = inlined_call_operand.vmem [shape: f32[768,128], index: 6, kind: output, shape index: {}]   ;;  %s1872_s1 = inlined_call_operand.vmem [shape: s32[9], index: 1, kind: input, shape index: {}]  }
   0x1   :  { %s11_s23 = sshll.u32 %s1866_s0, 4  ;;  %s15_s26 = sshll.u32 %s1872_s1, 4  ;;  %s12_s23 = int_to_ptr.vmem [resolvable:$true] %s11_s23  ;;  %s16_s26 = int_to_ptr.vmem [resolvable:$true] %s15_s26 }
   0x2   :  { %s1465_s27 = scalar_lea.vmem %s12_s23, 16  ;;  %p1470_p1 = scmp.lt.s32.totalorder %s12_s23, %s12_s23 }
   0x3   :  { %p1466_p0 = scmp.ne.s32.totalorder %s12_s23, %s1465_s27  ;;  %p1471_p2 = scmp.lt.s32.totalorder %s1465_s27, %s1465_s27 }
   0x5   :  { %p1472_p3 = por %p1471_p2, %p1470_p1 }
   0x7   :  { %p1473_p4 = pnand %p1472_p3, %p1466_p0 }
   0x9   :  { %1476 = shalt.err (!%p1473_p4)  }
   0xa   :  { %s1547_s28 = smov [#allocation4]   ;;  %s1477_s29 = scalar_lea.vmem %s16_s26, 16 }
   0xb   :  { %14 = dma.vmem_to_smem %s12_s23, 16, %s1547_s28, [#allocation3] }
   0xc   :  { %p1478_p5 = scmp.ne.s32.totalorder %s16_s26, %s1477_s29  ;;  %p1482_p6 = scmp.lt.s32.totalorder %s16_s26, %s16_s26 }
   0xd   :  { %p1483_p7 = scmp.lt.s32.totalorder %s1477_s29, %s1477_s29 }
   0xf   :  { %p1484_p8 = por %p1483_p7, %p1482_p6 }
  0x11   :  { %p1485_p9 = pnand %p1484_p8, %p1478_p5 }
  0x13   :  { %1488 = shalt.err (!%p1485_p9)  }
  0x14   :  { %s1548_s0 = smov [#allocation5]  }
  0x15   :  { %18 = dma.vmem_to_smem %s16_s26, 16, %s1548_s0, [#allocation3] }
  0x16   :  { %1517 = dma.done.wait [#allocation3], 32 }
  0x17   :  { %1518 = vsyncadd [#allocation3], 4294967264 }
  0x18   :  { %20 = sfence }
  0x19   :  { %s1592_s1 = smov 0   ;;  %s1594_s30 = smov 0  }
  0x1a   :  { %s1596_s7 = smov 0   ;;  %s1598_s8 = smov 0  }
  0x1b   :  { %s1600_s9 = smov 0   ;;  %s1602_s10 = smov 0  }
  0x1c   :  { %s1604_s11 = smov 0  }
  0x1d LB: > { %s35_s12 = sadd.s32 1, %s1537_s9  ;;  %s38_s13 = sadd.s32 1, %s1541_s10  ;;  %s1545_s11 = sphi %s1604_s11, %s26_s11   ;;  %s1541_s10 = sphi %s1602_s10, %s1879_s10   ;;  %s1537_s9 = sphi %s1600_s9, %s1878_s9   ;;  %s1533_s8 = sphi %s1598_s8, %s1877_s8   ;;  %s1529_s7 = sphi %s1596_s7, %s1876_s7   ;;  %s1525_s30 = sphi %s1594_s30, %s1875_s30   ;;  %s1521_s1 = sphi %s1592_s1, %s1874_s1  }
  0x1e   : > { %p36_p10 = scmp.ge.s32.totalorder %s35_s12, 3  ;;  %s42_s14 = smul.u32 3, %s1541_s10 }
  0x1f   : > { %p60_p11 = scmp.ne.s32.totalorder %s1525_s30, %s1521_s1  ;;  %p61_p12 = scmp.eq.s32.totalorder %s1545_s11, 0 }
  0x20   : > { %s1881_s12 = smov (%p36_p10, %s35_s12), 0  ;;  %s1883_s13 = smov (!%p36_p10, %s38_s13), %s1541_s10 }
  0x21   : > { %p40_p13 = scmp.ge.s32.totalorder %s1883_s13, 3  ;;  %s43_s15 = sadd.s32 %s1537_s9, %s42_s14 }
  0x22   : > { %p1637_p0 = por %p61_p12, %p60_p11  ;;  %s44_s18 = sld [smem:[#allocation5 + %s43_s15]] }
  0x23   : > { %s1885_s13 = smov (%p40_p13, %s1883_s13), 0  ;;  %s53_s24 = sadd.s32 1, %s1525_s30 }
  0x24   : > { %s45_s17 = smul.u32 3, %s1885_s13  ;;  %s48_s21 = ssub.s32 %s1541_s10, %s1885_s13 }
  0x25   : > { %p1222_p2 = scmp.ge.s32.totalorder %s1545_s11, 9 }
  0x26   : > { %s46_s19 = sadd.s32 %s45_s17, %s1881_s12 }
  0x27   : > { %s47_s20 = sld [smem:[#allocation5 + %s46_s19]] }
  0x2b   : > { %186 = sbr.rel (%p1222_p2) target bundleno = 69 (0x45), region = 24 }
  0x2d   : > { %s49_s22 = ssub.s32 %s44_s18, %s47_s20 }
  0x2e   : > { %s50_s23 = sor.u32 %s49_s22, %s48_s21 }
  0x2f   : > { %p51_p1 = scmp.eq.s32.totalorder %s50_s23, 0 }
  0x31   : > { %s1649_s25 = scalar_select %p51_p1, %s1525_s30, %s53_s24  }
  0x32   : > { %189 = sbr.rel (!%p1637_p0) target bundleno = 69 (0x45), region = 28  ;;  %s196_s26 = sld [smem:[#allocation5 + %s43_s15]] (%p1637_p0) }
  0x33   : > { %s191_s27 = sand.u32 (%p1637_p0), 1, %s1525_s30   ;;  %s1386_s28 = smul.u32 (%p1637_p0), 48, %s1541_s10 }
  0x34   : > { %s1223_s29 = sshll.u32 (%p1637_p0), %s191_s27, 7 }
  0x35   : > { %s193_s15 = scalar_lea.vmem (%p1637_p0), [#allocation6], %s1223_s29 }
  0x38   : > { %s1225_s0 = sshll.u32 (%p1637_p0), %s196_s26, 1 }
  0x39   : > { %s200_s14 = sadd.s32 %s1386_s28, %s1225_s0 }
  0x3a   : > { %s1227_s17 = sshll.u32 %s200_s14, 3 }
  0x3b   : > { %s1659_s20 = scalar_lea.vmem %s1867_s2, %s1227_s17 }
  0x3c   : > { %v215_v0 = vld [vmem:[%s1659_s20] sm:$0xff]  ;;  %v217_v1 = vld [vmem:[%s1659_s20 + $0x8] sm:$0xff]  ;;  %v219_v2 = vld [vmem:[%s1659_s20 + $0x30] sm:$0xff] }
  0x3d   : > { %216 = vst [vmem:[%s193_s15] sm:$0xff] %v215_v0  ;;  %218 = vst [vmem:[%s193_s15 + $0x8] sm:$0xff] %v217_v1  ;;  %v221_v3 = vld [vmem:[%s1659_s20 + $0x38] sm:$0xff]  ;;  %v223_v4 = vld [vmem:[%s1659_s20 + $0x60] sm:$0xff] }
  0x3e   : > { %220 = vst [vmem:[%s193_s15 + $0x10] sm:$0xff] %v219_v2  ;;  %v225_v5 = vld [vmem:[%s1659_s20 + $0x68] sm:$0xff]  ;;  %222 = vst [vmem:[%s193_s15 + $0x18] sm:$0xff] %v221_v3  ;;  %v227_v6 = vld [vmem:[%s1659_s20 + $0x90] sm:$0xff] }
  0x3f   : > { %224 = vst [vmem:[%s193_s15 + $0x20] sm:$0xff] %v223_v4  ;;  %226 = vst [vmem:[%s193_s15 + $0x28] sm:$0xff] %v225_v5  ;;  %v229_v7 = vld [vmem:[%s1659_s20 + $0x98] sm:$0xff]  ;;  %v231_v8 = vld [vmem:[%s1659_s20 + $0xc0] sm:$0xff] }
  0x40   : > { %228 = vst [vmem:[%s193_s15 + $0x30] sm:$0xff] %v227_v6  ;;  %230 = vst [vmem:[%s193_s15 + $0x38] sm:$0xff] %v229_v7  ;;  %v233_v9 = vld [vmem:[%s1659_s20 + $0xc8] sm:$0xff]  ;;  %v235_v10 = vld [vmem:[%s1659_s20 + $0xf0] sm:$0xff] }
  0x41   : > { %232 = vst [vmem:[%s193_s15 + $0x40] sm:$0xff] %v231_v8  ;;  %v237_v11 = vld [vmem:[%s1659_s20 + $0xf8] sm:$0xff]  ;;  %234 = vst [vmem:[%s193_s15 + $0x48] sm:$0xff] %v233_v9  ;;  %v239_v12 = vld [vmem:[%s1659_s20 + $0x120] sm:$0xff] }
  0x42   : > { %236 = vst [vmem:[%s193_s15 + $0x50] sm:$0xff] %v235_v10  ;;  %238 = vst [vmem:[%s193_s15 + $0x58] sm:$0xff] %v237_v11  ;;  %v241_v13 = vld [vmem:[%s1659_s20 + $0x128] sm:$0xff]  ;;  %v243_v14 = vld [vmem:[%s1659_s20 + $0x150] sm:$0xff] }
  0x43   : > { %240 = vst [vmem:[%s193_s15 + $0x60] sm:$0xff] %v239_v12  ;;  %242 = vst [vmem:[%s193_s15 + $0x68] sm:$0xff] %v241_v13  ;;  %v245_v15 = vld [vmem:[%s1659_s20 + $0x158] sm:$0xff] }
  0x44   : > { %244 = vst [vmem:[%s193_s15 + $0x70] sm:$0xff] %v243_v14  ;;  %246 = vst [vmem:[%s193_s15 + $0x78] sm:$0xff] %v245_v15 }
  0x45 PF: > { %p1228_p3 = scmp.ge.s32.totalorder %s1545_s11, 1  ;;  %p260_p4 = scmp.lt.s32.totalorder %s1545_s11, 10 }
  0x47   : > { %p261_p5 = pnand %p1228_p3, %p260_p4 }
  0x48   : > { %s267_s16 = sand.u32 (!%p261_p5), 1, %s1521_s1   ;;  %s1230_s21 = sshll.u32 (!%p261_p5), %s1533_s8, 5 }
  0x49   : > { %264 = sbr.rel (%p261_p5) target bundleno = 623 (0x26f), region = 55  ;;  %s1229_s22 = sshll.u32 (!%p261_p5), %s267_s16, 7 }
  0x4a   : > { %p303_p6 = scmp.lt.s32.totalorder (!%p261_p5), %s1230_s21, 95  ;;  %s1691_s14 = scalar_lea.vmem (!%p261_p5), [#allocation6], %s1229_s22 }
  0x4b   : > { %p1234_p7 = scmp.ne.s32.totalorder (!%p261_p5), %s1529_s7, 0 }
  0x50   : > { %s1887_s21 = smov (!%p303_p6, %s1230_s21), 95  ;;  %318 = sbr.rel (%p1234_p7) target bundleno = 98 (0x62), region = 63 }
  0x51   : > { %s1231_s23 = sshll.u32 %s1887_s21, 3  ;;  %v1549_v16 = vmov (!%p1234_p7), 0.0  }
  0x52   : > { %s1684_s27 = scalar_lea.vmem %s1869_s4, %s1231_s23  ;;  %s1689_s0 = scalar_lea.vmem %s1871_s6, %s1231_s23  ;;  %319 = vst [vmem:[#allocation2] sm:$0xff] (!%p1234_p7), %v1549_v16  ;;  %320 = vst [vmem:[#allocation2 + $0x8] sm:$0xff] (!%p1234_p7), %v1549_v16 }
  0x53   : > { %321 = vst [vmem:[#allocation2 + $0x10] sm:$0xff] (!%p1234_p7), %v1549_v16  ;;  %322 = vst [vmem:[#allocation2 + $0x18] sm:$0xff] (!%p1234_p7), %v1549_v16 }
  0x54   : > { %323 = vst [vmem:[#allocation2 + $0x20] sm:$0xff] (!%p1234_p7), %v1549_v16  ;;  %324 = vst [vmem:[#allocation2 + $0x28] sm:$0xff] (!%p1234_p7), %v1549_v16 }
  0x55   : > { %325 = vst [vmem:[#allocation2 + $0x30] sm:$0xff] (!%p1234_p7), %v1549_v16  ;;  %326 = vst [vmem:[#allocation2 + $0x38] sm:$0xff] (!%p1234_p7), %v1549_v16 }
  0x56   : > { %327 = vst [vmem:[#allocation2 + $0x40] sm:$0xff] (!%p1234_p7), %v1549_v16  ;;  %328 = vst [vmem:[#allocation2 + $0x48] sm:$0xff] (!%p1234_p7), %v1549_v16 }
  0x57   : > { %329 = vst [vmem:[#allocation2 + $0x50] sm:$0xff] %v1549_v16  ;;  %330 = vst [vmem:[#allocation2 + $0x58] sm:$0xff] %v1549_v16 }
  0x58   : > { %331 = vst [vmem:[#allocation2 + $0x60] sm:$0xff] %v1549_v16  ;;  %332 = vst [vmem:[#allocation2 + $0x68] sm:$0xff] %v1549_v16 }
  0x59   : > { %333 = vst [vmem:[#allocation2 + $0x70] sm:$0xff] %v1549_v16  ;;  %334 = vst [vmem:[#allocation2 + $0x78] sm:$0xff] %v1549_v16 }
  0x5a   : > { %335 = vst [vmem:[#allocation2 + $0x80] sm:$0xff] %v1549_v16  ;;  %336 = vst [vmem:[#allocation2 + $0x88] sm:$0xff] %v1549_v16 }
  0x5b   : > { %337 = vst [vmem:[#allocation2 + $0x90] sm:$0xff] %v1549_v16  ;;  %338 = vst [vmem:[#allocation2 + $0x98] sm:$0xff] %v1549_v16 }
  0x5c   : > { %339 = vst [vmem:[#allocation2 + $0xa0] sm:$0xff] %v1549_v16  ;;  %340 = vst [vmem:[#allocation2 + $0xa8] sm:$0xff] %v1549_v16 }
  0x5d   : > { %341 = vst [vmem:[#allocation2 + $0xb0] sm:$0xff] %v1549_v16  ;;  %342 = vst [vmem:[#allocation2 + $0xb8] sm:$0xff] %v1549_v16 }
  0x5e   : > { %343 = vst [vmem:[#allocation2 + $0xc0] sm:$0xff] %v1549_v16  ;;  %344 = vst [vmem:[#allocation2 + $0xc8] sm:$0xff] %v1549_v16 }
  0x5f   : > { %345 = vst [vmem:[#allocation2 + $0xd0] sm:$0xff] %v1549_v16  ;;  %346 = vst [vmem:[#allocation2 + $0xd8] sm:$0xff] %v1549_v16 }
  0x60   : > { %347 = vst [vmem:[#allocation2 + $0xe0] sm:$0xff] %v1549_v16  ;;  %348 = vst [vmem:[#allocation2 + $0xe8] sm:$0xff] %v1549_v16 }
  0x61   : > { %349 = vst [vmem:[#allocation2 + $0xf0] sm:$0xff] %v1549_v16  ;;  %350 = vst [vmem:[#allocation2 + $0xf8] sm:$0xff] %v1549_v16 }
  0x62 PF: > { %s351_s1 = sld [smem:[#allocation4 + %s1533_s8]] }
  0x68   : > { %p1235_p8 = scmp.ge.s32.totalorder %s1529_s7, %s351_s1 }
  0x69   : > { %s404_s17 = smul.u32 (!%p1235_p8), 3, %s1533_s8  ;;  %v1698_v17 = vld [vmem:[%s1691_s14 + $0x8] sm:$0xff] (!%p1235_p8)  ;;  %v356_v37 = vld [vmem:[%s1691_s14] sm:$0xff] (!%p1235_p8)  ;;  %v359_v43 = vld [vmem:[%s1691_s14 + $0x18] sm:$0xff] (!%p1235_p8) }
  0x6a   : > { %355 = sbr.rel (%p1235_p8) target bundleno = 427 (0x1ab), region = 67  ;;  %v1701_v18 = vld [vmem:[%s1691_s14 + $0x48] sm:$0xff] (!%p1235_p8)  ;;  %v373_v19 = vunpack.c.l.s8.bf16 (!%p1235_p8), %v1698_v17  ;;  %v364_v38 = vld [vmem:[%s1691_s14 + $0x40] sm:$0xff] (!%p1235_p8)  ;;  %v372_v39 = vunpack.c.l.s8.bf16 (!%p1235_p8), %v356_v37  ;;  %v375_v41 = vunpack.c.h.s8.bf16 (!%p1235_p8), %v1698_v17  ;;  %v367_v44 = vld [vmem:[%s1691_s14 + $0x58] sm:$0xff] (!%p1235_p8)  ;;  %v374_v45 = vunpack.c.h.s8.bf16 (!%p1235_p8), %v356_v37 }
  0x6b   : > { %v389_v20 = vunpack.c.l.s8.bf16 (!%p1235_p8), %v1701_v18  ;;  %s405_s18 = sadd.s32 (!%p1235_p8), %s1529_s7, %s404_s17  ;;  %v388_v40 = vunpack.c.l.s8.bf16 (!%p1235_p8), %v364_v38  ;;  %v391_v42 = vunpack.c.h.s8.bf16 (!%p1235_p8), %v1701_v18  ;;  %v390_v46 = vunpack.c.h.s8.bf16 (!%p1235_p8), %v364_v38  ;;  %v358_v49 = vld [vmem:[%s1691_s14 + $0x10] sm:$0xff] (!%p1235_p8)  ;;  %v361_v55 = vld [vmem:[%s1691_s14 + $0x28] sm:$0xff] (!%p1235_p8)  ;;  %v360_v61 = vld [vmem:[%s1691_s14 + $0x20] sm:$0xff] (!%p1235_p8) }
  0x6c   : > { %s406_s19 = sld [smem:[#allocation5 + %s405_s18]] (!%p1235_p8)  ;;  %604 = vmatprep.mubr.bf16.mxu0 (!%p1235_p8), %v373_v19  ;;  %v377_v47 = vunpack.c.l.s8.bf16 (!%p1235_p8), %v359_v43  ;;  %v393_v48 = vunpack.c.l.s8.bf16 (!%p1235_p8), %v367_v44  ;;  %v366_v50 = vld [vmem:[%s1691_s14 + $0x50] sm:$0xff] (!%p1235_p8)  ;;  %v376_v51 = vunpack.c.l.s8.bf16 (!%p1235_p8), %v358_v49  ;;  %v379_v53 = vunpack.c.h.s8.bf16 (!%p1235_p8), %v359_v43  ;;  %v369_v56 = vld [vmem:[%s1691_s14 + $0x68] sm:$0xff] (!%p1235_p8)  ;;  %v368_v62 = vld [vmem:[%s1691_s14 + $0x60] sm:$0xff] (!%p1235_p8) }
  0x6d   : > { %668 = vmatprep.mubr.bf16.mxu1 (!%p1235_p8), %v389_v20  ;;  %v392_v52 = vunpack.c.l.s8.bf16 (!%p1235_p8), %v366_v50  ;;  %v395_v54 = vunpack.c.h.s8.bf16 (!%p1235_p8), %v367_v44  ;;  %v378_v57 = vunpack.c.h.s8.bf16 (!%p1235_p8), %v358_v49  ;;  %v394_v58 = vunpack.c.h.s8.bf16 (!%p1235_p8), %v366_v50  ;;  %v363_v3 = vld [vmem:[%s1691_s14 + $0x38] sm:$0xff] (!%p1235_p8)  ;;  %v362_v9 = vld [vmem:[%s1691_s14 + $0x30] sm:$0xff] (!%p1235_p8)  ;;  %v444_v19 = vld [vmem:[#allocation2] sm:$0xff] (!%p1235_p8) }
  0x6e   : > { %v381_v59 = vunpack.c.l.s8.bf16 (!%p1235_p8), %v361_v55  ;;  %v397_v60 = vunpack.c.l.s8.bf16 (!%p1235_p8), %v369_v56  ;;  %v380_v63 = vunpack.c.l.s8.bf16 (!%p1235_p8), %v360_v61  ;;  %v396_v0 = vunpack.c.l.s8.bf16 (!%p1235_p8), %v368_v62  ;;  %v371_v4 = vld [vmem:[%s1691_s14 + $0x78] sm:$0xff] (!%p1235_p8)  ;;  %v370_v10 = vld [vmem:[%s1691_s14 + $0x70] sm:$0xff] (!%p1235_p8) }
  0x6f   : > { %v383_v1 = vunpack.c.h.s8.bf16 (!%p1235_p8), %v361_v55  ;;  %v399_v2 = vunpack.c.h.s8.bf16 (!%p1235_p8), %v369_v56  ;;  %v382_v5 = vunpack.c.h.s8.bf16 (!%p1235_p8), %v360_v61  ;;  %v398_v6 = vunpack.c.h.s8.bf16 (!%p1235_p8), %v368_v62  ;;  %v463_v49 = vld [vmem:[#allocation2 + $0x98] sm:$0xff] (!%p1235_p8)  ;;  %v464_v61 = vld [vmem:[#allocation2 + $0xa0] sm:$0xff] (!%p1235_p8) }
  0x70   : > { %v385_v7 = vunpack.c.l.s8.bf16 (!%p1235_p8), %v363_v3  ;;  %v401_v8 = vunpack.c.l.s8.bf16 (!%p1235_p8), %v371_v4  ;;  %v384_v11 = vunpack.c.l.s8.bf16 (!%p1235_p8), %v362_v9  ;;  %v400_v12 = vunpack.c.l.s8.bf16 (!%p1235_p8), %v370_v10 }
  0x71   : > { %v387_v13 = vunpack.c.h.s8.bf16 %v363_v3  ;;  %v403_v14 = vunpack.c.h.s8.bf16 %v371_v4  ;;  %v386_v15 = vunpack.c.h.s8.bf16 %v362_v9  ;;  %v402_v16 = vunpack.c.h.s8.bf16 %v370_v10  ;;  %v449_v3 = vld [vmem:[#allocation2 + $0x28] sm:$0xff] }
  0x72   : > { %s1236_s20 = sshll.u32 %s406_s19, 8 }
  0x73   : > { %s408_s15 = sshra.s32 %s1236_s20, 3 }
  0x74   : > { %s1237_s16 = sshll.u32 %s408_s15, 2 }
  0x75   : > { %s1709_s23 = scalar_lea.vmem %s1868_s3, %s1237_s16 }
  0x76   : > { %v1447_v21 = vld [vmem:[%s1709_s23 + $0x40] sm:$0xff]   ;;  %v1449_v23 = vld [vmem:[%s1709_s23 + $0x48] sm:$0xff]   ;;  %v1451_v25 = vld [vmem:[%s1709_s23 + $0x50] sm:$0xff]  }
  0x77   : > { %v1448_v22 = vld [vmem:[%s1709_s23] sm:$0xff]   ;;  %1258 = vmatprep.subr.bf16.mxu0 %v1447_v21  ;;  %1370 = vmatprep.subr.bf16.mxu1 %v1447_v21  ;;  %v1450_v24 = vld [vmem:[%s1709_s23 + $0x8] sm:$0xff]   ;;  %v1452_v26 = vld [vmem:[%s1709_s23 + $0x10] sm:$0xff]  }
  0x78   : > { %1259 = vmatpush3.bf16.msra.mxu0 %v1448_v22  ;;  %1378 = vmatpush3.bf16.msra.mxu1 %v1448_v22  ;;  %v1453_v27 = vld [vmem:[%s1709_s23 + $0x58] sm:$0xff]   ;;  %v1455_v29 = vld [vmem:[%s1709_s23 + $0x60] sm:$0xff]   ;;  %v1457_v31 = vld [vmem:[%s1709_s23 + $0x68] sm:$0xff]  }
  0x79   : > { %1260 = vmatprep.subr.bf16.mxu0 %v1449_v23  ;;  %1371 = vmatprep.subr.bf16.mxu1 %v1449_v23  ;;  %v1454_v28 = vld [vmem:[%s1709_s23 + $0x18] sm:$0xff]   ;;  %v1456_v30 = vld [vmem:[%s1709_s23 + $0x20] sm:$0xff]   ;;  %v1458_v32 = vld [vmem:[%s1709_s23 + $0x28] sm:$0xff]  }
  0x7a   : > { %v1459_v33 = vld [vmem:[%s1709_s23 + $0x70] sm:$0xff]   ;;  %v1461_v35 = vld [vmem:[%s1709_s23 + $0x78] sm:$0xff]   ;;  %v460_v21 = vld [vmem:[#allocation2 + $0x80] sm:$0xff] }
  0x7b   : > { %v1460_v34 = vld [vmem:[%s1709_s23 + $0x30] sm:$0xff]   ;;  %v1462_v36 = vld [vmem:[%s1709_s23 + $0x38] sm:$0xff]  }
  0x7c   : > { %1261 = vmatpush3.bf16.msra.mxu0 %v1450_v24  ;;  %1379 = vmatpush3.bf16.msra.mxu1 %v1450_v24 }
  0x7d   : > { %1262 = vmatprep.subr.bf16.mxu0 %v1451_v25  ;;  %1372 = vmatprep.subr.bf16.mxu1 %v1451_v25 }
  0x80   : > { %1263 = vmatpush3.bf16.msra.mxu0 %v1452_v26  ;;  %1380 = vmatpush3.bf16.msra.mxu1 %v1452_v26 }
  0x81   : > { %1264 = vmatprep.subr.bf16.mxu0 %v1453_v27  ;;  %1373 = vmatprep.subr.bf16.mxu1 %v1453_v27  ;;  %v445_v27 = vld [vmem:[#allocation2 + $0x8] sm:$0xff] }
  0x84   : > { %1265 = vmatpush3.bf16.msra.mxu0 %v1454_v28  ;;  %1381 = vmatpush3.bf16.msra.mxu1 %v1454_v28 }
  0x85   : > { %1266 = vmatprep.subr.bf16.mxu0 %v1455_v29  ;;  %1374 = vmatprep.subr.bf16.mxu1 %v1455_v29  ;;  %v461_v29 = vld [vmem:[#allocation2 + $0x88] sm:$0xff] }
  0x88   : > { %1267 = vmatpush3.bf16.msra.mxu0 %v1456_v30  ;;  %1382 = vmatpush3.bf16.msra.mxu1 %v1456_v30 }
  0x89   : > { %1268 = vmatprep.subr.bf16.mxu0 %v1457_v31  ;;  %1375 = vmatprep.subr.bf16.mxu1 %v1457_v31 }
  0x8c   : > { %1269 = vmatpush3.bf16.msra.mxu0 %v1458_v32  ;;  %1383 = vmatpush3.bf16.msra.mxu1 %v1458_v32 }
  0x8d   : > { %1270 = vmatprep.subr.bf16.mxu0 %v1459_v33  ;;  %1376 = vmatprep.subr.bf16.mxu1 %v1459_v33 }
  0x90   : > { %1271 = vmatpush3.bf16.msra.mxu0 %v1460_v34  ;;  %1384 = vmatpush3.bf16.msra.mxu1 %v1460_v34 }
  0x91   : > { %1272 = vmatprep.subr.bf16.mxu0 %v1461_v35  ;;  %1377 = vmatprep.subr.bf16.mxu1 %v1461_v35 }
  0x94   : > { %1273 = vmatpush3.bf16.msra.mxu0 %v1462_v36  ;;  %1385 = vmatpush3.bf16.msra.mxu1 %v1462_v36 }
  0x97   : > { %605 = vmatmul.mubr.bf16.vlgmr.msra.gmra.mrb[0].mxu0 %v372_v39  ;;  %669 = vmatmul.mubr.bf16.vlgmr.msra.gmra.mrb[0].mxu1 %v388_v40  ;;  %v446_v39 = vld [vmem:[#allocation2 + $0x10] sm:$0xff] }
  0x98   : > { %612 = vmatprep.mubr.bf16.mxu0 %v375_v41  ;;  %676 = vmatprep.mubr.bf16.mxu1 %v391_v42  ;;  %v462_v41 = vld [vmem:[#allocation2 + $0x90] sm:$0xff] }
  0x9f   : > { %613 = vmatmul.mubr.bf16.gmra.mrb[4].mxu0 %v374_v45  ;;  %677 = vmatmul.mubr.bf16.gmra.mrb[4].mxu1 %v390_v46 }
  0xa0   : > { %620 = vmatprep.mubr.bf16.mxu0 %v377_v47  ;;  %684 = vmatprep.mubr.bf16.mxu1 %v393_v48  ;;  %v447_v47 = vld [vmem:[#allocation2 + $0x18] sm:$0xff] }
  0xa7   : > { %621 = vmatmul.mubr.bf16.gmra.mrb[8].mxu0 %v376_v51  ;;  %685 = vmatmul.mubr.bf16.gmra.mrb[8].mxu1 %v392_v52 }
  0xa8   : > { %628 = vmatprep.mubr.bf16.mxu0 %v379_v53  ;;  %692 = vmatprep.mubr.bf16.mxu1 %v395_v54 }
  0xaf   : > { %629 = vmatmul.mubr.bf16.gmra.mrb[12].mxu0 %v378_v57  ;;  %693 = vmatmul.mubr.bf16.gmra.mrb[12].mxu1 %v394_v58 }
  0xb0   : > { %636 = vmatprep.mubr.bf16.mxu0 %v381_v59  ;;  %700 = vmatprep.mubr.bf16.mxu1 %v397_v60  ;;  %v448_v59 = vld [vmem:[#allocation2 + $0x20] sm:$0xff] }
  0xb7   : > { %637 = vmatmul.mubr.bf16.gmra.mrb[16].mxu0 %v380_v63  ;;  %701 = vmatmul.mubr.bf16.gmra.mrb[16].mxu1 %v396_v0 }
  0xb8   : > { %644 = vmatprep.mubr.bf16.mxu0 %v383_v1  ;;  %708 = vmatprep.mubr.bf16.mxu1 %v399_v2 }
  0xbf   : > { %645 = vmatmul.mubr.bf16.gmra.mrb[20].mxu0 %v382_v5  ;;  %709 = vmatmul.mubr.bf16.gmra.mrb[20].mxu1 %v398_v6  ;;  %v465_v5 = vld [vmem:[#allocation2 + $0xa8] sm:$0xff] }
  0xc0   : > { %652 = vmatprep.mubr.bf16.mxu0 %v385_v7  ;;  %716 = vmatprep.mubr.bf16.mxu1 %v401_v8 }
  0xc7   : > { %653 = vmatmul.mubr.bf16.gmra.mrb[24].mxu0 %v384_v11  ;;  %717 = vmatmul.mubr.bf16.gmra.mrb[24].mxu1 %v400_v12 }
  0xc8   : > { %660 = vmatprep.mubr.bf16.mxu0 %v387_v13  ;;  %724 = vmatprep.mubr.bf16.mxu1 %v403_v14 }
  0xcf   : > { %661 = vmatmul.mubr.bf16.gmra.mrb[28].mxu0 %v386_v15  ;;  %725 = vmatmul.mubr.bf16.gmra.mrb[28].mxu1 %v402_v16  ;;  %v450_v15 = vld [vmem:[#allocation2 + $0x30] sm:$0xff] }
 0x16a   : > { %v1274_v17 = vpop.f32.mrb[0].mxu0  ;;  %v1322_v18 = vpop.f32.mrb[0].mxu1 }
 0x16b   : > { %v1275_v20 = vpop.f32.mrb[1].mxu0  ;;  %v1323_v22 = vpop.f32.mrb[1].mxu1 }
 0x16c   : > { %v1276_v23 = vadd.f32 %v1275_v20, %v1274_v17  ;;  %v1324_v24 = vadd.f32 %v1323_v22, %v1322_v18  ;;  %v1277_v25 = vpop.f32.mrb[2].mxu0  ;;  %v1325_v26 = vpop.f32.mrb[2].mxu1  ;;  %v466_v17 = vld [vmem:[#allocation2 + $0xb0] sm:$0xff] }
 0x16d   : > { %v1278_v28 = vpop.f32.mrb[3].mxu0  ;;  %v1326_v30 = vpop.f32.mrb[3].mxu1 }
 0x16e   : > { %v733_v31 = vadd.f32 %v1276_v23, %v444_v19  ;;  %v749_v32 = vadd.f32 %v1324_v24, %v460_v21  ;;  %v1279_v33 = vadd.f32 %v1278_v28, %v1277_v25  ;;  %v1327_v34 = vadd.f32 %v1326_v30, %v1325_v26  ;;  %v451_v23 = vld [vmem:[#allocation2 + $0x38] sm:$0xff] }
 0x16f   : > { %v467_v25 = vld [vmem:[#allocation2 + $0xb8] sm:$0xff] }
 0x170   : > { %765 = vst [vmem:[#allocation2] sm:$0xff] %v733_v31  ;;  %781 = vst [vmem:[#allocation2 + $0x80] sm:$0xff] %v749_v32  ;;  %v734_v35 = vadd.f32 %v1279_v33, %v445_v27  ;;  %v750_v36 = vadd.f32 %v1327_v34, %v461_v29 }
 0x172   : > { %766 = vst [vmem:[#allocation2 + $0x8] sm:$0xff] %v734_v35  ;;  %782 = vst [vmem:[#allocation2 + $0x88] sm:$0xff] %v750_v36  ;;  %v1280_v37 = vpop.f32.mrb[4].mxu0  ;;  %v1328_v38 = vpop.f32.mrb[4].mxu1  ;;  %v452_v35 = vld [vmem:[#allocation2 + $0x40] sm:$0xff] }
 0x173   : > { %v1281_v40 = vpop.f32.mrb[5].mxu0  ;;  %v1329_v42 = vpop.f32.mrb[5].mxu1 }
 0x174   : > { %v1282_v43 = vadd.f32 %v1281_v40, %v1280_v37  ;;  %v1330_v44 = vadd.f32 %v1329_v42, %v1328_v38  ;;  %v1283_v45 = vpop.f32.mrb[6].mxu0  ;;  %v1331_v46 = vpop.f32.mrb[6].mxu1  ;;  %v468_v37 = vld [vmem:[#allocation2 + $0xc0] sm:$0xff] }
 0x175   : > { %v1284_v48 = vpop.f32.mrb[7].mxu0  ;;  %v1332_v50 = vpop.f32.mrb[7].mxu1 }
 0x176   : > { %v735_v51 = vadd.f32 %v1282_v43, %v446_v39  ;;  %v751_v52 = vadd.f32 %v1330_v44, %v462_v41  ;;  %v1285_v53 = vadd.f32 %v1284_v48, %v1283_v45  ;;  %v1333_v54 = vadd.f32 %v1332_v50, %v1331_v46  ;;  %v453_v43 = vld [vmem:[#allocation2 + $0x48] sm:$0xff] }
 0x177   : > { %v469_v45 = vld [vmem:[#allocation2 + $0xc8] sm:$0xff] }
 0x178   : > { %767 = vst [vmem:[#allocation2 + $0x10] sm:$0xff] %v735_v51  ;;  %783 = vst [vmem:[#allocation2 + $0x90] sm:$0xff] %v751_v52  ;;  %v736_v55 = vadd.f32 %v1285_v53, %v447_v47  ;;  %v752_v56 = vadd.f32 %v1333_v54, %v463_v49 }
 0x17a   : > { %768 = vst [vmem:[#allocation2 + $0x18] sm:$0xff] %v736_v55  ;;  %784 = vst [vmem:[#allocation2 + $0x98] sm:$0xff] %v752_v56  ;;  %v1286_v57 = vpop.f32.mrb[8].mxu0  ;;  %v1334_v58 = vpop.f32.mrb[8].mxu1  ;;  %v454_v55 = vld [vmem:[#allocation2 + $0x50] sm:$0xff] }
 0x17b   : > { %v1287_v60 = vpop.f32.mrb[9].mxu0  ;;  %v1335_v62 = vpop.f32.mrb[9].mxu1 }
 0x17c   : > { %v1288_v63 = vadd.f32 %v1287_v60, %v1286_v57  ;;  %v1336_v0 = vadd.f32 %v1335_v62, %v1334_v58  ;;  %v1289_v1 = vpop.f32.mrb[10].mxu0  ;;  %v1337_v2 = vpop.f32.mrb[10].mxu1  ;;  %v470_v57 = vld [vmem:[#allocation2 + $0xd0] sm:$0xff] }
 0x17d   : > { %v1290_v4 = vpop.f32.mrb[11].mxu0  ;;  %v1338_v6 = vpop.f32.mrb[11].mxu1 }
 0x17e   : > { %v737_v7 = vadd.f32 %v1288_v63, %v448_v59  ;;  %v753_v8 = vadd.f32 %v1336_v0, %v464_v61  ;;  %v1291_v9 = vadd.f32 %v1290_v4, %v1289_v1  ;;  %v1339_v10 = vadd.f32 %v1338_v6, %v1337_v2  ;;  %v455_v63 = vld [vmem:[#allocation2 + $0x58] sm:$0xff] }
 0x17f   : > { %v471_v1 = vld [vmem:[#allocation2 + $0xd8] sm:$0xff] }
 0x180   : > { %769 = vst [vmem:[#allocation2 + $0x20] sm:$0xff] %v737_v7  ;;  %785 = vst [vmem:[#allocation2 + $0xa0] sm:$0xff] %v753_v8  ;;  %v738_v11 = vadd.f32 %v1291_v9, %v449_v3  ;;  %v754_v12 = vadd.f32 %v1339_v10, %v465_v5 }
 0x182   : > { %770 = vst [vmem:[#allocation2 + $0x28] sm:$0xff] %v738_v11  ;;  %786 = vst [vmem:[#allocation2 + $0xa8] sm:$0xff] %v754_v12  ;;  %v1292_v13 = vpop.f32.mrb[12].mxu0  ;;  %v1340_v14 = vpop.f32.mrb[12].mxu1  ;;  %v456_v11 = vld [vmem:[#allocation2 + $0x60] sm:$0xff] }
 0x183   : > { %v1293_v16 = vpop.f32.mrb[13].mxu0  ;;  %v1341_v18 = vpop.f32.mrb[13].mxu1 }
 0x184   : > { %v1294_v19 = vadd.f32 %v1293_v16, %v1292_v13  ;;  %v1342_v20 = vadd.f32 %v1341_v18, %v1340_v14  ;;  %v1295_v21 = vpop.f32.mrb[14].mxu0  ;;  %v1343_v22 = vpop.f32.mrb[14].mxu1  ;;  %v472_v13 = vld [vmem:[#allocation2 + $0xe0] sm:$0xff] }
 0x185   : > { %v1296_v24 = vpop.f32.mrb[15].mxu0  ;;  %v1344_v26 = vpop.f32.mrb[15].mxu1 }
 0x186   : > { %v739_v27 = vadd.f32 %v1294_v19, %v450_v15  ;;  %v755_v28 = vadd.f32 %v1342_v20, %v466_v17  ;;  %v1297_v29 = vadd.f32 %v1296_v24, %v1295_v21  ;;  %v1345_v30 = vadd.f32 %v1344_v26, %v1343_v22  ;;  %v457_v19 = vld [vmem:[#allocation2 + $0x68] sm:$0xff] }
 0x187   : > { %v473_v21 = vld [vmem:[#allocation2 + $0xe8] sm:$0xff] }
 0x188   : > { %771 = vst [vmem:[#allocation2 + $0x30] sm:$0xff] %v739_v27  ;;  %787 = vst [vmem:[#allocation2 + $0xb0] sm:$0xff] %v755_v28  ;;  %v740_v31 = vadd.f32 %v1297_v29, %v451_v23  ;;  %v756_v32 = vadd.f32 %v1345_v30, %v467_v25 }
 0x18a   : > { %772 = vst [vmem:[#allocation2 + $0x38] sm:$0xff] %v740_v31  ;;  %788 = vst [vmem:[#allocation2 + $0xb8] sm:$0xff] %v756_v32  ;;  %v1298_v33 = vpop.f32.mrb[16].mxu0  ;;  %v1346_v34 = vpop.f32.mrb[16].mxu1  ;;  %v458_v31 = vld [vmem:[#allocation2 + $0x70] sm:$0xff] }
 0x18b   : > { %v1299_v36 = vpop.f32.mrb[17].mxu0  ;;  %v1347_v38 = vpop.f32.mrb[17].mxu1 }
 0x18c   : > { %v1300_v39 = vadd.f32 %v1299_v36, %v1298_v33  ;;  %v1348_v40 = vadd.f32 %v1347_v38, %v1346_v34  ;;  %v1301_v41 = vpop.f32.mrb[18].mxu0  ;;  %v1349_v42 = vpop.f32.mrb[18].mxu1  ;;  %v474_v33 = vld [vmem:[#allocation2 + $0xf0] sm:$0xff] }
 0x18d   : > { %v1302_v44 = vpop.f32.mrb[19].mxu0  ;;  %v1350_v46 = vpop.f32.mrb[19].mxu1 }
 0x18e   : > { %v741_v47 = vadd.f32 %v1300_v39, %v452_v35  ;;  %v757_v48 = vadd.f32 %v1348_v40, %v468_v37  ;;  %v1303_v49 = vadd.f32 %v1302_v44, %v1301_v41  ;;  %v1351_v50 = vadd.f32 %v1350_v46, %v1349_v42  ;;  %v459_v39 = vld [vmem:[#allocation2 + $0x78] sm:$0xff] }
 0x18f   : > { %v475_v41 = vld [vmem:[#allocation2 + $0xf8] sm:$0xff] }
 0x190   : > { %773 = vst [vmem:[#allocation2 + $0x40] sm:$0xff] %v741_v47  ;;  %789 = vst [vmem:[#allocation2 + $0xc0] sm:$0xff] %v757_v48  ;;  %v742_v51 = vadd.f32 %v1303_v49, %v453_v43  ;;  %v758_v52 = vadd.f32 %v1351_v50, %v469_v45 }
 0x192   : > { %774 = vst [vmem:[#allocation2 + $0x48] sm:$0xff] %v742_v51  ;;  %790 = vst [vmem:[#allocation2 + $0xc8] sm:$0xff] %v758_v52  ;;  %v1304_v53 = vpop.f32.mrb[20].mxu0  ;;  %v1352_v54 = vpop.f32.mrb[20].mxu1 }
 0x193   : > { %v1305_v56 = vpop.f32.mrb[21].mxu0  ;;  %v1353_v58 = vpop.f32.mrb[21].mxu1 }
 0x194   : > { %v1306_v59 = vadd.f32 %v1305_v56, %v1304_v53  ;;  %v1354_v60 = vadd.f32 %v1353_v58, %v1352_v54  ;;  %v1307_v61 = vpop.f32.mrb[22].mxu0  ;;  %v1355_v62 = vpop.f32.mrb[22].mxu1 }
 0x195   : > { %v1308_v0 = vpop.f32.mrb[23].mxu0  ;;  %v1356_v2 = vpop.f32.mrb[23].mxu1 }
 0x196   : > { %v743_v3 = vadd.f32 %v1306_v59, %v454_v55  ;;  %v759_v4 = vadd.f32 %v1354_v60, %v470_v57  ;;  %v1309_v5 = vadd.f32 %v1308_v0, %v1307_v61  ;;  %v1357_v6 = vadd.f32 %v1356_v2, %v1355_v62 }
 0x198   : > { %775 = vst [vmem:[#allocation2 + $0x50] sm:$0xff] %v743_v3  ;;  %791 = vst [vmem:[#allocation2 + $0xd0] sm:$0xff] %v759_v4  ;;  %v744_v7 = vadd.f32 %v1309_v5, %v455_v63  ;;  %v760_v8 = vadd.f32 %v1357_v6, %v471_v1 }
 0x19a   : > { %776 = vst [vmem:[#allocation2 + $0x58] sm:$0xff] %v744_v7  ;;  %792 = vst [vmem:[#allocation2 + $0xd8] sm:$0xff] %v760_v8  ;;  %v1310_v9 = vpop.f32.mrb[24].mxu0  ;;  %v1358_v10 = vpop.f32.mrb[24].mxu1 }
 0x19b   : > { %v1311_v12 = vpop.f32.mrb[25].mxu0  ;;  %v1359_v14 = vpop.f32.mrb[25].mxu1 }
 0x19c   : > { %v1312_v15 = vadd.f32 %v1311_v12, %v1310_v9  ;;  %v1360_v16 = vadd.f32 %v1359_v14, %v1358_v10  ;;  %v1313_v17 = vpop.f32.mrb[26].mxu0  ;;  %v1361_v18 = vpop.f32.mrb[26].mxu1 }
 0x19d   : > { %v1314_v20 = vpop.f32.mrb[27].mxu0  ;;  %v1362_v22 = vpop.f32.mrb[27].mxu1 }
 0x19e   : > { %v745_v23 = vadd.f32 %v1312_v15, %v456_v11  ;;  %v761_v24 = vadd.f32 %v1360_v16, %v472_v13  ;;  %v1315_v25 = vadd.f32 %v1314_v20, %v1313_v17  ;;  %v1363_v26 = vadd.f32 %v1362_v22, %v1361_v18 }
 0x1a0   : > { %777 = vst [vmem:[#allocation2 + $0x60] sm:$0xff] %v745_v23  ;;  %793 = vst [vmem:[#allocation2 + $0xe0] sm:$0xff] %v761_v24  ;;  %v746_v27 = vadd.f32 %v1315_v25, %v457_v19  ;;  %v762_v28 = vadd.f32 %v1363_v26, %v473_v21 }
 0x1a2   : > { %778 = vst [vmem:[#allocation2 + $0x68] sm:$0xff] %v746_v27  ;;  %794 = vst [vmem:[#allocation2 + $0xe8] sm:$0xff] %v762_v28  ;;  %v1316_v29 = vpop.f32.mrb[28].mxu0  ;;  %v1364_v30 = vpop.f32.mrb[28].mxu1 }
 0x1a3   : > { %v1317_v32 = vpop.f32.mrb[29].mxu0  ;;  %v1365_v34 = vpop.f32.mrb[29].mxu1 }
 0x1a4   : > { %v1318_v35 = vadd.f32 %v1317_v32, %v1316_v29  ;;  %v1366_v36 = vadd.f32 %v1365_v34, %v1364_v30  ;;  %v1319_v37 = vpop.f32.mrb[30].mxu0  ;;  %v1367_v38 = vpop.f32.mrb[30].mxu1 }
 0x1a5   : > { %v1320_v40 = vpop.f32.mrb[31].mxu0  ;;  %v1368_v42 = vpop.f32.mrb[31].mxu1 }
 0x1a6   : > { %v747_v43 = vadd.f32 %v1318_v35, %v458_v31  ;;  %v763_v44 = vadd.f32 %v1366_v36, %v474_v33  ;;  %v1321_v45 = vadd.f32 %v1320_v40, %v1319_v37  ;;  %v1369_v46 = vadd.f32 %v1368_v42, %v1367_v38 }
 0x1a8   : > { %779 = vst [vmem:[#allocation2 + $0x70] sm:$0xff] %v747_v43  ;;  %795 = vst [vmem:[#allocation2 + $0xf0] sm:$0xff] %v763_v44  ;;  %v748_v47 = vadd.f32 %v1321_v45, %v459_v39  ;;  %v764_v48 = vadd.f32 %v1369_v46, %v475_v41 }
 0x1aa   : > { %780 = vst [vmem:[#allocation2 + $0x78] sm:$0xff] %v748_v47  ;;  %796 = vst [vmem:[#allocation2 + $0xf8] sm:$0xff] %v764_v48 }
 0x1ab PF: > { %p1254_p9 = scmp.ne.s32.totalorder %s1529_s7, 2 }
 0x1ac   : > { %v835_v49 = vld [vmem:[%s1684_s27 + $0x10] sm:$0xff] (!%p1254_p9)  ;;  %v833_v50 = vld [vmem:[%s1684_s27] sm:$0xff] (!%p1254_p9)  ;;  %v1550_v51 = vmov (!%p1254_p9), 0   ;;  %v836_v52 = vld [vmem:[%s1684_s27 + $0x18] sm:$0xff] (!%p1254_p9) }
 0x1ad   : > { %800 = sbr.rel (%p1254_p9) target bundleno = 623 (0x26f), region = 71  ;;  %1464 = vset.pattern.permute.xlu1 (!%p1254_p9), %v1550_v51  ;;  %1463 = vset.pattern.permute.xlu0 (!%p1254_p9), %v1550_v51  ;;  %v834_v53 = vld [vmem:[%s1684_s27 + $0x8] sm:$0xff] (!%p1254_p9)  ;;  %v837_v55 = vld [vmem:[%s1684_s27 + $0x20] sm:$0xff] (!%p1254_p9)  ;;  %v840_v56 = vld [vmem:[%s1684_s27 + $0x38] sm:$0xff] (!%p1254_p9) }
 0x1ae   : > { %877 = vperm.xlu1 (!%p1254_p9), %1464, %v835_v49   ;;  %867 = vperm.xlu0 (!%p1254_p9), %1463, %v833_v50   ;;  %v838_v54 = vld [vmem:[%s1684_s27 + $0x28] sm:$0xff] (!%p1254_p9)  ;;  %v839_v57 = vld [vmem:[%s1684_s27 + $0x30] sm:$0xff] (!%p1254_p9)  ;;  %v841_v59 = vld [vmem:[%s1684_s27 + $0x40] sm:$0xff] (!%p1254_p9) }
 0x1af   : > { %v842_v58 = vld [vmem:[%s1684_s27 + $0x48] sm:$0xff] (!%p1254_p9)  ;;  %v844_v60 = vld [vmem:[%s1684_s27 + $0x58] sm:$0xff] (!%p1254_p9)  ;;  %v843_v61 = vld [vmem:[%s1684_s27 + $0x50] sm:$0xff] (!%p1254_p9) }
 0x1b0   : > { %v846_v62 = vld [vmem:[%s1684_s27 + $0x68] sm:$0xff] (!%p1254_p9)  ;;  %v845_v63 = vld [vmem:[%s1684_s27 + $0x60] sm:$0xff] (!%p1254_p9)  ;;  %v848_v0 = vld [vmem:[%s1684_s27 + $0x78] sm:$0xff] (!%p1254_p9) }
 0x1b1   : > { %v847_v1 = vld [vmem:[%s1684_s27 + $0x70] sm:$0xff] (!%p1254_p9)  ;;  %v850_v2 = vld [vmem:[%s1684_s27 + $0x88] sm:$0xff] (!%p1254_p9)  ;;  %v849_v3 = vld [vmem:[%s1684_s27 + $0x80] sm:$0xff] (!%p1254_p9) }
 0x1b2   : > { %882 = vperm.xlu1 (!%p1254_p9), %1464, %v836_v52   ;;  %872 = vperm.xlu0 (!%p1254_p9), %1463, %v834_v53   ;;  %v852_v4 = vld [vmem:[%s1684_s27 + $0x98] sm:$0xff] (!%p1254_p9)  ;;  %v851_v5 = vld [vmem:[%s1684_s27 + $0x90] sm:$0xff] (!%p1254_p9)  ;;  %v854_v6 = vld [vmem:[%s1684_s27 + $0xa8] sm:$0xff] (!%p1254_p9) }
 0x1b3   : > { %v853_v7 = vld [vmem:[%s1684_s27 + $0xa0] sm:$0xff] (!%p1254_p9)  ;;  %v856_v8 = vld [vmem:[%s1684_s27 + $0xb8] sm:$0xff] (!%p1254_p9)  ;;  %v855_v9 = vld [vmem:[%s1684_s27 + $0xb0] sm:$0xff] (!%p1254_p9) }
 0x1b4   : > { %v858_v10 = vld [vmem:[%s1684_s27 + $0xc8] sm:$0xff]  ;;  %v857_v11 = vld [vmem:[%s1684_s27 + $0xc0] sm:$0xff]  ;;  %v860_v12 = vld [vmem:[%s1684_s27 + $0xd8] sm:$0xff] }
 0x1b5   : > { %v859_v13 = vld [vmem:[%s1684_s27 + $0xd0] sm:$0xff]  ;;  %v862_v14 = vld [vmem:[%s1684_s27 + $0xe8] sm:$0xff]  ;;  %v861_v15 = vld [vmem:[%s1684_s27 + $0xe0] sm:$0xff] }
 0x1b6   : > { %892 = vperm.xlu1 %1464, %v838_v54   ;;  %887 = vperm.xlu0 %1463, %v837_v55   ;;  %v864_v16 = vld [vmem:[%s1684_s27 + $0xf8] sm:$0xff]  ;;  %v863_v17 = vld [vmem:[%s1684_s27 + $0xf0] sm:$0xff]  ;;  %v801_v19 = vld [vmem:[#allocation2] sm:$0xff] }
 0x1b7   : > { %v803_v18 = vld [vmem:[#allocation2 + $0x10] sm:$0xff]  ;;  %v1779_v20 = vld [vmem:[%s1870_s5] ss:$0 sm:$0xff]  ;;  %v804_v25 = vld [vmem:[#allocation2 + $0x18] sm:$0xff] }
 0x1b8   : > { %v802_v26 = vld [vmem:[#allocation2 + $0x8] sm:$0xff]  ;;  %v805_v34 = vld [vmem:[#allocation2 + $0x20] sm:$0xff]  ;;  %v808_v41 = vld [vmem:[#allocation2 + $0x38] sm:$0xff] }
 0x1b9   : > { %v806_v33 = vld [vmem:[#allocation2 + $0x28] sm:$0xff]  ;;  %v807_v42 = vld [vmem:[#allocation2 + $0x30] sm:$0xff]  ;;  %v809_v50 = vld [vmem:[#allocation2 + $0x40] sm:$0xff] }
 0x1ba   : > { %902 = vperm.xlu1 %1464, %v840_v56   ;;  %897 = vperm.xlu0 %1463, %v839_v57   ;;  %v810_v49 = vld [vmem:[#allocation2 + $0x48] sm:$0xff]  ;;  %v812_v57 = vld [vmem:[#allocation2 + $0x58] sm:$0xff] }
 0x1be   : > { %912 = vperm.xlu1 %1464, %v842_v58   ;;  %907 = vperm.xlu0 %1463, %v841_v59   ;;  %v811_v58 = vld [vmem:[#allocation2 + $0x50] sm:$0xff] }
 0x1c2   : > { %922 = vperm.xlu1 %1464, %v844_v60   ;;  %917 = vperm.xlu0 %1463, %v843_v61  }
 0x1c6   : > { %932 = vperm.xlu1 %1464, %v846_v62   ;;  %927 = vperm.xlu0 %1463, %v845_v63  }
 0x1ca   : > { %942 = vperm.xlu1 %1464, %v848_v0   ;;  %937 = vperm.xlu0 %1463, %v847_v1   ;;  %v814_v1 = vld [vmem:[#allocation2 + $0x68] sm:$0xff] }
 0x1ce   : > { %952 = vperm.xlu1 %1464, %v850_v2   ;;  %947 = vperm.xlu0 %1463, %v849_v3   ;;  %v813_v2 = vld [vmem:[#allocation2 + $0x60] sm:$0xff] }
 0x1d2   : > { %962 = vperm.xlu1 %1464, %v852_v4   ;;  %957 = vperm.xlu0 %1463, %v851_v5  }
 0x1d6   : > { %972 = vperm.xlu1 %1464, %v854_v6   ;;  %967 = vperm.xlu0 %1463, %v853_v7  }
 0x1da   : > { %982 = vperm.xlu1 %1464, %v856_v8   ;;  %977 = vperm.xlu0 %1463, %v855_v9   ;;  %v816_v9 = vld [vmem:[#allocation2 + $0x78] sm:$0xff] }
 0x1de   : > { %992 = vperm.xlu1 %1464, %v858_v10   ;;  %987 = vperm.xlu0 %1463, %v857_v11   ;;  %v815_v10 = vld [vmem:[#allocation2 + $0x70] sm:$0xff] }
 0x1e2   : > { %1002 = vperm.xlu1 %1464, %v860_v12   ;;  %997 = vperm.xlu0 %1463, %v859_v13  }
 0x1e6   : > { %1012 = vperm.xlu1 %1464, %v862_v14   ;;  %1007 = vperm.xlu0 %1463, %v861_v15  }
 0x1ea   : > { %1022 = vperm.xlu1 %1464, %v864_v16   ;;  %1017 = vperm.xlu0 %1463, %v863_v17   ;;  %v818_v17 = vld [vmem:[#allocation2 + $0x88] sm:$0xff] }
 0x22d   : > { %v878_v21 = vpop.permute.xlu1 %877  ;;  %v868_v22 = vpop.permute.xlu0 %867 }
 0x22e   : > { %v1027_v23 = vmul.f32 %v878_v21, %v803_v18  ;;  %v1025_v24 = vmul.f32 %v868_v22, %v801_v19  ;;  %v817_v18 = vld [vmem:[#allocation2 + $0x80] sm:$0xff] }
 0x230   : > { %v1066_v27 = vadd.f32 %v1779_v20, %v1027_v23  ;;  %v1064_v28 = vadd.f32 %v1779_v20, %v1025_v24 }
 0x231   : > { %v883_v29 = vpop.permute.xlu1 %882  ;;  %v873_v30 = vpop.permute.xlu0 %872 }
 0x232   : > { %1098 = vst [vmem:[%s1689_s0 + $0x10] sm:$0xff] %v1066_v27  ;;  %1096 = vst [vmem:[%s1689_s0] sm:$0xff] %v1064_v28  ;;  %v1028_v31 = vmul.f32 %v883_v29, %v804_v25  ;;  %v1026_v32 = vmul.f32 %v873_v30, %v802_v26  ;;  %v820_v26 = vld [vmem:[#allocation2 + $0x98] sm:$0xff]  ;;  %v819_v27 = vld [vmem:[#allocation2 + $0x90] sm:$0xff] }
 0x234   : > { %v1067_v35 = vadd.f32 %v1779_v20, %v1028_v31  ;;  %v1065_v36 = vadd.f32 %v1779_v20, %v1026_v32 }
 0x235   : > { %v893_v37 = vpop.permute.xlu1 %892  ;;  %v888_v38 = vpop.permute.xlu0 %887 }
 0x236   : > { %1099 = vst [vmem:[%s1689_s0 + $0x18] sm:$0xff] %v1067_v35  ;;  %1097 = vst [vmem:[%s1689_s0 + $0x8] sm:$0xff] %v1065_v36  ;;  %v1030_v39 = vmul.f32 %v893_v37, %v806_v33  ;;  %v1029_v40 = vmul.f32 %v888_v38, %v805_v34  ;;  %v822_v34 = vld [vmem:[#allocation2 + $0xa8] sm:$0xff]  ;;  %v821_v35 = vld [vmem:[#allocation2 + $0xa0] sm:$0xff] }
 0x238   : > { %v1069_v43 = vadd.f32 %v1779_v20, %v1030_v39  ;;  %v1068_v44 = vadd.f32 %v1779_v20, %v1029_v40 }
 0x239   : > { %v903_v45 = vpop.permute.xlu1 %902  ;;  %v898_v46 = vpop.permute.xlu0 %897 }
 0x23a   : > { %1101 = vst [vmem:[%s1689_s0 + $0x28] sm:$0xff] %v1069_v43  ;;  %1100 = vst [vmem:[%s1689_s0 + $0x20] sm:$0xff] %v1068_v44  ;;  %v1032_v47 = vmul.f32 %v903_v45, %v808_v41  ;;  %v1031_v48 = vmul.f32 %v898_v46, %v807_v42  ;;  %v824_v42 = vld [vmem:[#allocation2 + $0xb8] sm:$0xff]  ;;  %v823_v43 = vld [vmem:[#allocation2 + $0xb0] sm:$0xff] }
 0x23c   : > { %v1071_v51 = vadd.f32 %v1779_v20, %v1032_v47  ;;  %v1070_v52 = vadd.f32 %v1779_v20, %v1031_v48 }
 0x23d   : > { %v913_v53 = vpop.permute.xlu1 %912  ;;  %v908_v54 = vpop.permute.xlu0 %907 }
 0x23e   : > { %1103 = vst [vmem:[%s1689_s0 + $0x38] sm:$0xff] %v1071_v51  ;;  %1102 = vst [vmem:[%s1689_s0 + $0x30] sm:$0xff] %v1070_v52  ;;  %v1034_v55 = vmul.f32 %v913_v53, %v810_v49  ;;  %v1033_v56 = vmul.f32 %v908_v54, %v809_v50  ;;  %v826_v50 = vld [vmem:[#allocation2 + $0xc8] sm:$0xff]  ;;  %v825_v51 = vld [vmem:[#allocation2 + $0xc0] sm:$0xff] }
 0x240   : > { %v1073_v59 = vadd.f32 %v1779_v20, %v1034_v55  ;;  %v1072_v60 = vadd.f32 %v1779_v20, %v1033_v56 }
 0x241   : > { %v923_v61 = vpop.permute.xlu1 %922  ;;  %v918_v62 = vpop.permute.xlu0 %917 }
 0x242   : > { %1105 = vst [vmem:[%s1689_s0 + $0x48] sm:$0xff] %v1073_v59  ;;  %1104 = vst [vmem:[%s1689_s0 + $0x40] sm:$0xff] %v1072_v60  ;;  %v1036_v63 = vmul.f32 %v923_v61, %v812_v57  ;;  %v1035_v0 = vmul.f32 %v918_v62, %v811_v58  ;;  %v828_v58 = vld [vmem:[#allocation2 + $0xd8] sm:$0xff]  ;;  %v827_v59 = vld [vmem:[#allocation2 + $0xd0] sm:$0xff] }
 0x244   : > { %v1075_v3 = vadd.f32 %v1779_v20, %v1036_v63  ;;  %v1074_v4 = vadd.f32 %v1779_v20, %v1035_v0 }
 0x245   : > { %v933_v5 = vpop.permute.xlu1 %932  ;;  %v928_v6 = vpop.permute.xlu0 %927 }
 0x246   : > { %1107 = vst [vmem:[%s1689_s0 + $0x58] sm:$0xff] %v1075_v3  ;;  %1106 = vst [vmem:[%s1689_s0 + $0x50] sm:$0xff] %v1074_v4  ;;  %v1038_v7 = vmul.f32 %v933_v5, %v814_v1  ;;  %v1037_v8 = vmul.f32 %v928_v6, %v813_v2  ;;  %v830_v2 = vld [vmem:[#allocation2 + $0xe8] sm:$0xff]  ;;  %v829_v3 = vld [vmem:[#allocation2 + $0xe0] sm:$0xff] }
 0x248   : > { %v1077_v11 = vadd.f32 %v1779_v20, %v1038_v7  ;;  %v1076_v12 = vadd.f32 %v1779_v20, %v1037_v8 }
 0x249   : > { %v943_v13 = vpop.permute.xlu1 %942  ;;  %v938_v14 = vpop.permute.xlu0 %937 }
 0x24a   : > { %1109 = vst [vmem:[%s1689_s0 + $0x68] sm:$0xff] %v1077_v11  ;;  %1108 = vst [vmem:[%s1689_s0 + $0x60] sm:$0xff] %v1076_v12  ;;  %v1040_v15 = vmul.f32 %v943_v13, %v816_v9  ;;  %v1039_v16 = vmul.f32 %v938_v14, %v815_v10  ;;  %v832_v10 = vld [vmem:[#allocation2 + $0xf8] sm:$0xff]  ;;  %v831_v11 = vld [vmem:[#allocation2 + $0xf0] sm:$0xff] }
 0x24c   : > { %v1079_v19 = vadd.f32 %v1779_v20, %v1040_v15  ;;  %v1078_v21 = vadd.f32 %v1779_v20, %v1039_v16 }
 0x24d   : > { %v953_v22 = vpop.permute.xlu1 %952  ;;  %v948_v23 = vpop.permute.xlu0 %947 }
 0x24e   : > { %1111 = vst [vmem:[%s1689_s0 + $0x78] sm:$0xff] %v1079_v19  ;;  %1110 = vst [vmem:[%s1689_s0 + $0x70] sm:$0xff] %v1078_v21  ;;  %v1042_v24 = vmul.f32 %v953_v22, %v818_v17  ;;  %v1041_v25 = vmul.f32 %v948_v23, %v817_v18 }
 0x250   : > { %v1081_v28 = vadd.f32 %v1779_v20, %v1042_v24  ;;  %v1080_v29 = vadd.f32 %v1779_v20, %v1041_v25 }
 0x251   : > { %v963_v30 = vpop.permute.xlu1 %962  ;;  %v958_v31 = vpop.permute.xlu0 %957 }
 0x252   : > { %1113 = vst [vmem:[%s1689_s0 + $0x88] sm:$0xff] %v1081_v28  ;;  %1112 = vst [vmem:[%s1689_s0 + $0x80] sm:$0xff] %v1080_v29  ;;  %v1044_v32 = vmul.f32 %v963_v30, %v820_v26  ;;  %v1043_v33 = vmul.f32 %v958_v31, %v819_v27 }
 0x254   : > { %v1083_v36 = vadd.f32 %v1779_v20, %v1044_v32  ;;  %v1082_v37 = vadd.f32 %v1779_v20, %v1043_v33 }
 0x255   : > { %v973_v38 = vpop.permute.xlu1 %972  ;;  %v968_v39 = vpop.permute.xlu0 %967 }
 0x256   : > { %1115 = vst [vmem:[%s1689_s0 + $0x98] sm:$0xff] %v1083_v36  ;;  %1114 = vst [vmem:[%s1689_s0 + $0x90] sm:$0xff] %v1082_v37  ;;  %v1046_v40 = vmul.f32 %v973_v38, %v822_v34  ;;  %v1045_v41 = vmul.f32 %v968_v39, %v821_v35 }
 0x258   : > { %v1085_v44 = vadd.f32 %v1779_v20, %v1046_v40  ;;  %v1084_v45 = vadd.f32 %v1779_v20, %v1045_v41 }
 0x259   : > { %v983_v46 = vpop.permute.xlu1 %982  ;;  %v978_v47 = vpop.permute.xlu0 %977 }
 0x25a   : > { %1117 = vst [vmem:[%s1689_s0 + $0xa8] sm:$0xff] %v1085_v44  ;;  %1116 = vst [vmem:[%s1689_s0 + $0xa0] sm:$0xff] %v1084_v45  ;;  %v1048_v48 = vmul.f32 %v983_v46, %v824_v42  ;;  %v1047_v49 = vmul.f32 %v978_v47, %v823_v43 }
 0x25c   : > { %v1087_v52 = vadd.f32 %v1779_v20, %v1048_v48  ;;  %v1086_v53 = vadd.f32 %v1779_v20, %v1047_v49 }
 0x25d   : > { %v993_v54 = vpop.permute.xlu1 %992  ;;  %v988_v55 = vpop.permute.xlu0 %987 }
 0x25e   : > { %1119 = vst [vmem:[%s1689_s0 + $0xb8] sm:$0xff] %v1087_v52  ;;  %1118 = vst [vmem:[%s1689_s0 + $0xb0] sm:$0xff] %v1086_v53  ;;  %v1050_v56 = vmul.f32 %v993_v54, %v826_v50  ;;  %v1049_v57 = vmul.f32 %v988_v55, %v825_v51 }
 0x260   : > { %v1089_v60 = vadd.f32 %v1779_v20, %v1050_v56  ;;  %v1088_v61 = vadd.f32 %v1779_v20, %v1049_v57 }
 0x261   : > { %v1003_v62 = vpop.permute.xlu1 %1002  ;;  %v998_v63 = vpop.permute.xlu0 %997 }
 0x262   : > { %1121 = vst [vmem:[%s1689_s0 + $0xc8] sm:$0xff] %v1089_v60  ;;  %1120 = vst [vmem:[%s1689_s0 + $0xc0] sm:$0xff] %v1088_v61  ;;  %v1052_v0 = vmul.f32 %v1003_v62, %v828_v58  ;;  %v1051_v1 = vmul.f32 %v998_v63, %v827_v59 }
 0x264   : > { %v1091_v4 = vadd.f32 %v1779_v20, %v1052_v0  ;;  %v1090_v5 = vadd.f32 %v1779_v20, %v1051_v1 }
 0x265   : > { %v1013_v6 = vpop.permute.xlu1 %1012  ;;  %v1008_v7 = vpop.permute.xlu0 %1007 }
 0x266   : > { %1123 = vst [vmem:[%s1689_s0 + $0xd8] sm:$0xff] %v1091_v4  ;;  %1122 = vst [vmem:[%s1689_s0 + $0xd0] sm:$0xff] %v1090_v5  ;;  %v1054_v8 = vmul.f32 %v1013_v6, %v830_v2  ;;  %v1053_v9 = vmul.f32 %v1008_v7, %v829_v3 }
 0x268   : > { %v1093_v12 = vadd.f32 %v1779_v20, %v1054_v8  ;;  %v1092_v13 = vadd.f32 %v1779_v20, %v1053_v9 }
 0x269   : > { %v1023_v14 = vpop.permute.xlu1 %1022  ;;  %v1018_v15 = vpop.permute.xlu0 %1017 }
 0x26a   : > { %1125 = vst [vmem:[%s1689_s0 + $0xe8] sm:$0xff] %v1093_v12  ;;  %1124 = vst [vmem:[%s1689_s0 + $0xe0] sm:$0xff] %v1092_v13  ;;  %v1056_v16 = vmul.f32 %v1023_v14, %v832_v10  ;;  %v1055_v17 = vmul.f32 %v1018_v15, %v831_v11 }
 0x26c   : > { %v1095_v18 = vadd.f32 %v1779_v20, %v1056_v16  ;;  %v1094_v19 = vadd.f32 %v1779_v20, %v1055_v17 }
 0x26e   : > { %1127 = vst [vmem:[%s1689_s0 + $0xf8] sm:$0xff] %v1095_v18  ;;  %1126 = vst [vmem:[%s1689_s0 + $0xf0] sm:$0xff] %v1094_v19 }
 0x26f PF: > { %s26_s11 = sadd.s32 1, %s1545_s11   ;;  %s1874_s1 = smov %s1525_s30 }
 0x270   : > { %p23_p10 = scmp.ge.s32.totalorder %s26_s11, 11   ;;  %s1875_s30 = smov %s1649_s25 }
 0x271   : > { %s1876_s7 = smov %s1537_s9  ;;  %s1877_s8 = smov %s1541_s10 }
 0x272   : > { %s1878_s9 = smov %s1881_s12  ;;  %s1879_s10 = smov %s1885_s13 }
 0x273   :  { %25 = sbr.rel (!%p23_p10) target bundleno = 29 (0x1d), region = 110 }

</bundles_post_ra>
